<compile_context>
chip_gen: v7x
topology: tpu7x:2x2x1
jax: 0.10.0
libtpu: 0.0.40
codegen_flags: <defaults>
</compile_context>

<pallas_src>
import functools
import numpy as np
import jax
import jax.numpy as jnp
from jax.experimental import pallas as pl
from jax.experimental.pallas import tpu as pltpu

RATES = (1, 6, 12, 18)
BN_EPS = 1e-5


# ----------------------------- Pallas kernels ------------------------------ #

def _aspp_conv1x1_kernel(x_ref, w_ref, b_ref, scale_ref, shift_ref, o_ref,
                         xpad_ref, *, H, W, Cin, rates, pad):
    """Fused _ASPP (4 dilated 3x3 convs) + concat + conv1x1 + ReLU + BN(eval).

    Channel-flattened (lane-dense) layout:
      x_ref:     (1, H, W*Cin)             bf16 input block (one batch element)
      w_ref:     (4*9, W*Cin, W*Cout)      bf16 pre-contracted, kron-expanded taps
      b_ref:     (1, W*Cout)               f32 fused bias (tiled over W)
      scale_ref: (1, W*Cout)               f32 BN scale  (tiled over W)
      shift_ref: (1, W*Cout)               f32 BN shift  (tiled over W)
      o_ref:     (1, H, W*Cout)            bf16 output block
      xpad_ref:  (H+2*pad, (W+2*pad)*Cin)  f32 VMEM scratch (zero-padded image)
    """
    WCi = W * Cin
    WCo = o_ref.shape[-1]

    # Build the zero-padded image in VMEM (no host-side jnp.pad / HBM copy).
    xpad_ref[...] = jnp.zeros_like(xpad_ref)
    xpad_ref[pad:pad + H, pad * Cin:(pad + W) * Cin] = x_ref[0].astype(jnp.float32)
    xp = xpad_ref[...]                                  # (Hp, Wp*Cin) f32

    acc = jnp.zeros((H, WCo), jnp.float32)
    t = 0
    for r in rates:
        for kh in range(3):
            for kw in range(3):
                h0 = pad + (kh - 1) * r
                w0 = (pad + (kw - 1) * r) * Cin
                patch = xp[h0:h0 + H, w0:w0 + WCi].astype(jnp.bfloat16)
                acc += jnp.dot(patch, w_ref[t],
                               preferred_element_type=jnp.float32)
                t += 1

    acc = jnp.maximum(acc + b_ref[...], 0.0)            # bias + ReLU   (f32)
    acc = acc * scale_ref[...] + shift_ref[...]         # BN (eval) affine (f32)
    o_ref[0] = acc.astype(o_ref.dtype)


def _up_conv3x3_kernel(x_ref, uh_ref, uwc_ref, w_ref, b_ref, scale_ref,
                       shift_ref, o_ref, upad_ref, *, H, W, C):
    """Fused bilinear 2x upsample (align_corners=False) + conv3x3(pad=1)
    + ReLU + BN(eval).  The upsample is two lane-dense matmuls (rows:
    (2H,H)@(H,W*C); cols: kron'd (W*C,2W*C)) so the upsampled tensor never
    leaves VMEM.

      x_ref:    (1, H, W*C)        bf16
      uh_ref:   (2H, H)            bf16 row-upsample matrix
      uwc_ref:  (W*C, 2W*C)        bf16 col-upsample kron'd with channel identity
      w_ref:    (9, 2W*C, 2W*C)    bf16 kron-expanded 3x3 taps
      b/scale/shift: (1, 2W*C)     f32
      o_ref:    (1, 2H, 2W*C)      f32
      upad_ref: (2H+2, (2W+2)*C)   f32 scratch (padded upsampled image)
    """
    H2, W2 = 2 * H, 2 * W
    W2C = W2 * C

    x = x_ref[0]                                                      # (H, W*C)
    t = jnp.dot(uh_ref[...], x, preferred_element_type=jnp.float32)  # (2H, W*C)
    u = jnp.dot(t.astype(jnp.bfloat16), uwc_ref[...],
                preferred_element_type=jnp.float32)                   # (2H, 2W*C)

    upad_ref[...] = jnp.zeros_like(upad_ref)
    upad_ref[1:1 + H2, C:C + W2C] = u
    up = upad_ref[...]                                                # (2H+2, (2W+2)*C)

    acc = jnp.zeros((H2, W2C), jnp.float32)
    for kh in range(3):
        for kw in range(3):
            patch = up[kh:kh + H2, kw * C:kw * C + W2C].astype(jnp.bfloat16)
            acc += jnp.dot(patch, w_ref[kh * 3 + kw],
                           preferred_element_type=jnp.float32)

    acc = jnp.maximum(acc + b_ref[...], 0.0)
    acc = acc * scale_ref[...] + shift_ref[...]
    o_ref[0] = acc.astype(o_ref.dtype)


# ------------------------------ Host helpers -------------------------------- #

def _bilinear_matrix(in_size, out_size):
    """PyTorch F.interpolate(mode='bilinear', align_corners=False) weights."""
    M = np.zeros((out_size, in_size), np.float32)
    scale = in_size / out_size
    for o in range(out_size):
        src = (o + 0.5) * scale - 0.5
        src = max(src, 0.0)                 # PyTorch clamps negative src to 0
        i0 = min(int(np.floor(src)), in_size - 1)
        i1 = min(i0 + 1, in_size - 1)
        frac = src - i0
        M[o, i0] += 1.0 - frac
        M[o, i1] += frac
    return M


def _kron_eye(w_taps, n):
    """(T, Ci, Co) -> (T, n*Ci, n*Co): per-tap block-diagonal kron(eye(n), w)."""
    T, Ci, Co = w_taps.shape
    eye = jnp.eye(n, dtype=w_taps.dtype)
    m = jnp.einsum('wv,tio->twivo', eye, w_taps)
    return m.reshape(T, n * Ci, n * Co)


# --------------------------- Parameters & forward --------------------------- #

def init_params(key, in_ch, out_ch):
    ks = jax.random.split(key, 16)
    p = {}
    for i, _ in enumerate(RATES):                        # _ASPP branch convs
        p[f'aspp_w{i}'] = 0.05 * jax.random.normal(
            ks[i], (3, 3, in_ch, in_ch), jnp.float32)
        p[f'aspp_b{i}'] = 0.01 * jax.random.normal(
            ks[4 + i], (in_ch,), jnp.float32)
    # conv1x1 block
    p['c1_w'] = 0.05 * jax.random.normal(ks[8], (4 * in_ch, out_ch), jnp.float32)
    p['c1_b'] = 0.01 * jax.random.normal(ks[9], (out_ch,), jnp.float32)
    gamma1 = 1.0 + 0.1 * jax.random.normal(ks[10], (out_ch,), jnp.float32)
    beta1 = 0.1 * jax.random.normal(ks[11], (out_ch,), jnp.float32)
    mean1 = jnp.zeros((out_ch,), jnp.float32)
    var1 = jnp.ones((out_ch,), jnp.float32)
    p['bn1_scale'] = gamma1 / jnp.sqrt(var1 + BN_EPS)
    p['bn1_shift'] = beta1 - mean1 * p['bn1_scale']
    # conv3x3 block
    p['c3_w'] = 0.05 * jax.random.normal(ks[12], (3, 3, out_ch, out_ch), jnp.float32)
    p['c3_b'] = 0.01 * jax.random.normal(ks[13], (out_ch,), jnp.float32)
    gamma2 = 1.0 + 0.1 * jax.random.normal(ks[14], (out_ch,), jnp.float32)
    beta2 = 0.1 * jax.random.normal(ks[15], (out_ch,), jnp.float32)
    mean2 = jnp.zeros((out_ch,), jnp.float32)
    var2 = jnp.ones((out_ch,), jnp.float32)
    p['bn2_scale'] = gamma2 / jnp.sqrt(var2 + BN_EPS)
    p['bn2_shift'] = beta2 - mean2 * p['bn2_scale']
    return p


def aspp_block_forward(x_nchw, params):
    N, Cin, H, W = x_nchw.shape
    Cout = params['c1_b'].shape[0]
    pad = max(RATES)
    H2, W2 = 2 * H, 2 * W

    # ---- fold _ASPP + concat + conv1x1 into 36 pre-contracted dilated taps ----
    # Exact: the ASPP branches have no nonlinearity before the 1x1.
    w_taps = []
    b_eff = params['c1_b']
    for i in range(len(RATES)):
        wc = params['c1_w'][i * Cin:(i + 1) * Cin]                 # (Cin, Cout)
        w_eff = jnp.einsum('hwio,oc->hwic', params[f'aspp_w{i}'], wc)
        w_taps.append(w_eff.reshape(9, Cin, Cout))
        b_eff = b_eff + params[f'aspp_b{i}'] @ wc
    w_taps = jnp.concatenate(w_taps, axis=0)                        # (36, Cin, Cout)
    wa_kron = _kron_eye(w_taps, W).astype(jnp.bfloat16)             # (36, W*Cin, W*Cout)

    b1 = jnp.tile(b_eff, W).reshape(1, W * Cout)
    s1 = jnp.tile(params['bn1_scale'], W).reshape(1, W * Cout)
    t1 = jnp.tile(params['bn1_shift'], W).reshape(1, W * Cout)

    # NCHW -> channel-flattened NHWC (lane-dense), bf16 for the kernel DMA.
    x = jnp.transpose(x_nchw, (0, 2, 3, 1)).reshape(N, H, W * Cin)
    x = x.astype(jnp.bfloat16)

    kernel_a = functools.partial(_aspp_conv1x1_kernel, H=H, W=W, Cin=Cin,
                                 rates=RATES, pad=pad)
    y1 = pl.pallas_call(
        kernel_a,
        out_shape=jax.ShapeDtypeStruct((N, H, W * Cout), jnp.bfloat16),
        grid=(N,),
        in_specs=[
            pl.BlockSpec((1, H, W * Cin), lambda n: (n, 0, 0)),
            pl.BlockSpec((len(RATES) * 9, W * Cin, W * Cout), lambda n: (0, 0, 0)),
            pl.BlockSpec((1, W * Cout), lambda n: (0, 0)),
            pl.BlockSpec((1, W * Cout), lambda n: (0, 0)),
            pl.BlockSpec((1, W * Cout), lambda n: (0, 0)),
        ],
        out_specs=pl.BlockSpec((1, H, W * Cout), lambda n: (n, 0, 0)),
        scratch_shapes=[pltpu.VMEM((H + 2 * pad, (W + 2 * pad) * Cin), jnp.float32)],
        compiler_params=pltpu.CompilerParams(dimension_semantics=("parallel",)),
    )(x, wa_kron, b1, s1, t1)

    # ---- stage 2 operands: upsample matrices + kron-expanded conv3x3 taps ----
    uh = jnp.asarray(_bilinear_matrix(H, H2), jnp.bfloat16)         # (2H, H)
    ww = jnp.asarray(_bilinear_matrix(W, W2), jnp.float32)          # (2W, W)
    eye_c = jnp.eye(Cout, dtype=jnp.float32)
    uwc = jnp.einsum('vw,cd->wcvd', ww, eye_c).reshape(W * Cout, W2 * Cout)
    uwc = uwc.astype(jnp.bfloat16)                                  # (W*C, 2W*C)
    w3_kron = _kron_eye(params['c3_w'].reshape(9, Cout, Cout),
                        W2).astype(jnp.bfloat16)                    # (9, 2W*C, 2W*C)
    b2 = jnp.tile(params['c3_b'], W2).reshape(1, W2 * Cout)
    s2 = jnp.tile(params['bn2_scale'], W2).reshape(1, W2 * Cout)
    t2 = jnp.tile(params['bn2_shift'], W2).reshape(1, W2 * Cout)

    kernel_b = functools.partial(_up_conv3x3_kernel, H=H, W=W, C=Cout)
    y2 = pl.pallas_call(
        kernel_b,
        out_shape=jax.ShapeDtypeStruct((N, H2, W2 * Cout), jnp.float32),
        grid=(N,),
        in_specs=[
            pl.BlockSpec((1, H, W * Cout), lambda n: (n, 0, 0)),
            pl.BlockSpec((H2, H), lambda n: (0, 0)),
            pl.BlockSpec((W * Cout, W2 * Cout), lambda n: (0, 0)),
            pl.BlockSpec((9, W2 * Cout, W2 * Cout), lambda n: (0, 0, 0)),
            pl.BlockSpec((1, W2 * Cout), lambda n: (0, 0)),
            pl.BlockSpec((1, W2 * Cout), lambda n: (0, 0)),
            pl.BlockSpec((1, W2 * Cout), lambda n: (0, 0)),
        ],
        out_specs=pl.BlockSpec((1, H2, W2 * Cout), lambda n: (n, 0, 0)),
        scratch_shapes=[pltpu.VMEM((H2 + 2, (W2 + 2) * Cout), jnp.float32)],
        compiler_params=pltpu.CompilerParams(dimension_semantics=("parallel",)),
    )(y1, uh, uwc, w3_kron, b2, s2, t2)

    out = y2.reshape(N, H2, W2, Cout)                 # un-flatten channels
    return jnp.transpose(out, (0, 3, 1, 2))           # NHWC -> NCHW


# ----------------------------------- main ----------------------------------- #

if __name__ == "__main__":
    N, in_ch, out_ch, H, W = 2, 4, 8, 16, 16
    key = jax.random.PRNGKey(0)
    k_x, k_p = jax.random.split(key)
    x = jax.random.normal(k_x, (N, in_ch, H, W), jnp.float32)
    params = init_params(k_p, in_ch, out_ch)

    fwd = jax.jit(aspp_block_forward)
    out = jax.block_until_ready(fwd(x, params))

    assert out.shape == (N, out_ch, 2 * H, 2 * W), out.shape
    assert bool(jnp.all(jnp.isfinite(out)))
    print("KERNEL_OK")
</pallas_src>

<mosaic_0001>
module attributes {stable_mosaic.version = 11 : i64} {
  func.func @_aspp_conv1x1_kernel(%arg0: i32, %arg1: memref<1x16x64xbf16, #tpu.memory_space<vmem>>, %arg2: memref<36x64x128xbf16, #tpu.memory_space<vmem>>, %arg3: memref<1x128xf32, #tpu.memory_space<vmem>>, %arg4: memref<1x128xf32, #tpu.memory_space<vmem>>, %arg5: memref<1x128xf32, #tpu.memory_space<vmem>>, %arg6: memref<1x16x128xbf16, #tpu.memory_space<vmem>>, %arg7: memref<52x208xf32, #tpu.memory_space<vmem>>) attributes {dimension_semantics = [#tpu.dimension_semantics<parallel>], iteration_bounds = array<i64: 2>, scalar_prefetch = 0 : i64, scratch_operands = 1 : i64, tpu.core_type = #tpu.core_type<tc>, window_params = [{transform_indices = @transform_0, window_bounds = array<i64: 1, 16, 64>}, {pipeline_mode = #tpu.pipeline_mode<synchronous>, transform_indices = @transform_1, window_bounds = array<i64: 36, 64, 128>}, {pipeline_mode = #tpu.pipeline_mode<synchronous>, transform_indices = @transform_2, window_bounds = array<i64: 1, 128>}, {pipeline_mode = #tpu.pipeline_mode<synchronous>, transform_indices = @transform_3, window_bounds = array<i64: 1, 128>}, {pipeline_mode = #tpu.pipeline_mode<synchronous>, transform_indices = @transform_4, window_bounds = array<i64: 1, 128>}, {transform_indices = @transform_5, window_bounds = array<i64: 1, 16, 128>}]} {
    %cst = arith.constant 0.000000e+00 : f32
    %0 = vector.broadcast %cst : f32 to vector<52x208xf32>
    %c0 = arith.constant 0 : index
    %c0_0 = arith.constant 0 : index
    %1 = vector.load %arg7[%c0, %c0_0] : memref<52x208xf32, #tpu.memory_space<vmem>>, vector<52x208xf32>
    tpu.vector_store %arg7[%c0, %c0_0], %0 {strides = array<i32>} : memref<52x208xf32, #tpu.memory_space<vmem>>, vector<52x208xf32>,
    %c0_1 = arith.constant 0 : index
    %c0_2 = arith.constant 0 : index
    %c0_3 = arith.constant 0 : index
    %2 = vector.load %arg1[%c0_1, %c0_2, %c0_3] : memref<1x16x64xbf16, #tpu.memory_space<vmem>>, vector<1x16x64xbf16>
    %3 = vector.shape_cast %2 : vector<1x16x64xbf16> to vector<16x64xbf16>
    %4 = arith.extf %3 : vector<16x64xbf16> to vector<16x64xf32>
    %c18 = arith.constant 18 : index
    %c72 = arith.constant 72 : index
    %5 = vector.load %arg7[%c18, %c72] : memref<52x208xf32, #tpu.memory_space<vmem>>, vector<16x64xf32>
    tpu.vector_store %arg7[%c18, %c72], %4 {strides = array<i32>} : memref<52x208xf32, #tpu.memory_space<vmem>>, vector<16x64xf32>,
    %c0_4 = arith.constant 0 : index
    %c0_5 = arith.constant 0 : index
    %6 = vector.load %arg7[%c0_4, %c0_5] : memref<52x208xf32, #tpu.memory_space<vmem>>, vector<52x208xf32>
    %cst_6 = arith.constant 0.000000e+00 : f32
    %7 = vector.broadcast %cst_6 : f32 to vector<16x128xf32>
    %8 = vector.extract_strided_slice %6 {offsets = [17, 68], sizes = [16, 64], strides = [1, 1]} : vector<52x208xf32> to vector<16x64xf32>
    %9 = arith.truncf %8 : vector<16x64xf32> to vector<16x64xbf16>
    %c0_7 = arith.constant 0 : index
    %c0_8 = arith.constant 0 : index
    %c0_9 = arith.constant 0 : index
    %10 = vector.load %arg2[%c0_7, %c0_8, %c0_9] : memref<36x64x128xbf16, #tpu.memory_space<vmem>>, vector<1x64x128xbf16>
    %11 = vector.shape_cast %10 : vector<1x64x128xbf16> to vector<64x128xbf16>
    %cst_10 = arith.constant dense<0.000000e+00> : vector<16x128xf32>
    %12 = tpu.matmul %9, %11, %cst_10 {dimension_numbers = #tpu.dot_dimension_numbers<[1], [0], [0], [1], [0, 0, 1, 1], [], []>} : vector<16x64xbf16>, vector<64x128xbf16>, vector<16x128xf32> -> vector<16x128xf32>
    %13 = arith.addf %7, %12 : vector<16x128xf32>
    %14 = vector.extract_strided_slice %6 {offsets = [17, 72], sizes = [16, 64], strides = [1, 1]} : vector<52x208xf32> to vector<16x64xf32>
    %15 = arith.truncf %14 : vector<16x64xf32> to vector<16x64xbf16>
    %c1 = arith.constant 1 : index
    %c0_11 = arith.constant 0 : index
    %c0_12 = arith.constant 0 : index
    %16 = vector.load %arg2[%c1, %c0_11, %c0_12] : memref<36x64x128xbf16, #tpu.memory_space<vmem>>, vector<1x64x128xbf16>
    %17 = vector.shape_cast %16 : vector<1x64x128xbf16> to vector<64x128xbf16>
    %cst_13 = arith.constant dense<0.000000e+00> : vector<16x128xf32>
    %18 = tpu.matmul %15, %17, %cst_13 {dimension_numbers = #tpu.dot_dimension_numbers<[1], [0], [0], [1], [0, 0, 1, 1], [], []>} : vector<16x64xbf16>, vector<64x128xbf16>, vector<16x128xf32> -> vector<16x128xf32>
    %19 = arith.addf %13, %18 : vector<16x128xf32>
    %20 = vector.extract_strided_slice %6 {offsets = [17, 76], sizes = [16, 64], strides = [1, 1]} : vector<52x208xf32> to vector<16x64xf32>
    %21 = arith.truncf %20 : vector<16x64xf32> to vector<16x64xbf16>
    %c2 = arith.constant 2 : index
    %c0_14 = arith.constant 0 : index
    %c0_15 = arith.constant 0 : index
    %22 = vector.load %arg2[%c2, %c0_14, %c0_15] : memref<36x64x128xbf16, #tpu.memory_space<vmem>>, vector<1x64x128xbf16>
    %23 = vector.shape_cast %22 : vector<1x64x128xbf16> to vector<64x128xbf16>
    %cst_16 = arith.constant dense<0.000000e+00> : vector<16x128xf32>
    %24 = tpu.matmul %21, %23, %cst_16 {dimension_numbers = #tpu.dot_dimension_numbers<[1], [0], [0], [1], [0, 0, 1, 1], [], []>} : vector<16x64xbf16>, vector<64x128xbf16>, vector<16x128xf32> -> vector<16x128xf32>
    %25 = arith.addf %19, %24 : vector<16x128xf32>
    %26 = vector.extract_strided_slice %6 {offsets = [18, 68], sizes = [16, 64], strides = [1, 1]} : vector<52x208xf32> to vector<16x64xf32>
    %27 = arith.truncf %26 : vector<16x64xf32> to vector<16x64xbf16>
    %c3 = arith.constant 3 : index
    %c0_17 = arith.constant 0 : index
    %c0_18 = arith.constant 0 : index
    %28 = vector.load %arg2[%c3, %c0_17, %c0_18] : memref<36x64x128xbf16, #tpu.memory_space<vmem>>, vector<1x64x128xbf16>
    %29 = vector.shape_cast %28 : vector<1x64x128xbf16> to vector<64x128xbf16>
    %cst_19 = arith.constant dense<0.000000e+00> : vector<16x128xf32>
    %30 = tpu.matmul %27, %29, %cst_19 {dimension_numbers = #tpu.dot_dimension_numbers<[1], [0], [0], [1], [0, 0, 1, 1], [], []>} : vector<16x64xbf16>, vector<64x128xbf16>, vector<16x128xf32> -> vector<16x128xf32>
    %31 = arith.addf %25, %30 : vector<16x128xf32>
    %32 = vector.extract_strided_slice %6 {offsets = [18, 72], sizes = [16, 64], strides = [1, 1]} : vector<52x208xf32> to vector<16x64xf32>
    %33 = arith.truncf %32 : vector<16x64xf32> to vector<16x64xbf16>
    %c4 = arith.constant 4 : index
    %c0_20 = arith.constant 0 : index
    %c0_21 = arith.constant 0 : index
    %34 = vector.load %arg2[%c4, %c0_20, %c0_21] : memref<36x64x128xbf16, #tpu.memory_space<vmem>>, vector<1x64x128xbf16>
    %35 = vector.shape_cast %34 : vector<1x64x128xbf16> to vector<64x128xbf16>
    %cst_22 = arith.constant dense<0.000000e+00> : vector<16x128xf32>
    %36 = tpu.matmul %33, %35, %cst_22 {dimension_numbers = #tpu.dot_dimension_numbers<[1], [0], [0], [1], [0, 0, 1, 1], [], []>} : vector<16x64xbf16>, vector<64x128xbf16>, vector<16x128xf32> -> vector<16x128xf32>
    %37 = arith.addf %31, %36 : vector<16x128xf32>
    %38 = vector.extract_strided_slice %6 {offsets = [18, 76], sizes = [16, 64], strides = [1, 1]} : vector<52x208xf32> to vector<16x64xf32>
    %39 = arith.truncf %38 : vector<16x64xf32> to vector<16x64xbf16>
    %c5 = arith.constant 5 : index
    %c0_23 = arith.constant 0 : index
    %c0_24 = arith.constant 0 : index
    %40 = vector.load %arg2[%c5, %c0_23, %c0_24] : memref<36x64x128xbf16, #tpu.memory_space<vmem>>, vector<1x64x128xbf16>
    %41 = vector.shape_cast %40 : vector<1x64x128xbf16> to vector<64x128xbf16>
    %cst_25 = arith.constant dense<0.000000e+00> : vector<16x128xf32>
    %42 = tpu.matmul %39, %41, %cst_25 {dimension_numbers = #tpu.dot_dimension_numbers<[1], [0], [0], [1], [0, 0, 1, 1], [], []>} : vector<16x64xbf16>, vector<64x128xbf16>, vector<16x128xf32> -> vector<16x128xf32>
    %43 = arith.addf %37, %42 : vector<16x128xf32>
    %44 = vector.extract_strided_slice %6 {offsets = [19, 68], sizes = [16, 64], strides = [1, 1]} : vector<52x208xf32> to vector<16x64xf32>
    %45 = arith.truncf %44 : vector<16x64xf32> to vector<16x64xbf16>
    %c6 = arith.constant 6 : index
    %c0_26 = arith.constant 0 : index
    %c0_27 = arith.constant 0 : index
    %46 = vector.load %arg2[%c6, %c0_26, %c0_27] : memref<36x64x128xbf16, #tpu.memory_space<vmem>>, vector<1x64x128xbf16>
    %47 = vector.shape_cast %46 : vector<1x64x128xbf16> to vector<64x128xbf16>
    %cst_28 = arith.constant dense<0.000000e+00> : vector<16x128xf32>
    %48 = tpu.matmul %45, %47, %cst_28 {dimension_numbers = #tpu.dot_dimension_numbers<[1], [0], [0], [1], [0, 0, 1, 1], [], []>} : vector<16x64xbf16>, vector<64x128xbf16>, vector<16x128xf32> -> vector<16x128xf32>
    %49 = arith.addf %43, %48 : vector<16x128xf32>
    %50 = vector.extract_strided_slice %6 {offsets = [19, 72], sizes = [16, 64], strides = [1, 1]} : vector<52x208xf32> to vector<16x64xf32>
    %51 = arith.truncf %50 : vector<16x64xf32> to vector<16x64xbf16>
    %c7 = arith.constant 7 : index
    %c0_29 = arith.constant 0 : index
    %c0_30 = arith.constant 0 : index
    %52 = vector.load %arg2[%c7, %c0_29, %c0_30] : memref<36x64x128xbf16, #tpu.memory_space<vmem>>, vector<1x64x128xbf16>
    %53 = vector.shape_cast %52 : vector<1x64x128xbf16> to vector<64x128xbf16>
    %cst_31 = arith.constant dense<0.000000e+00> : vector<16x128xf32>
    %54 = tpu.matmul %51, %53, %cst_31 {dimension_numbers = #tpu.dot_dimension_numbers<[1], [0], [0], [1], [0, 0, 1, 1], [], []>} : vector<16x64xbf16>, vector<64x128xbf16>, vector<16x128xf32> -> vector<16x128xf32>
    %55 = arith.addf %49, %54 : vector<16x128xf32>
    %56 = vector.extract_strided_slice %6 {offsets = [19, 76], sizes = [16, 64], strides = [1, 1]} : vector<52x208xf32> to vector<16x64xf32>
    %57 = arith.truncf %56 : vector<16x64xf32> to vector<16x64xbf16>
    %c8 = arith.constant 8 : index
    %c0_32 = arith.constant 0 : index
    %c0_33 = arith.constant 0 : index
    %58 = vector.load %arg2[%c8, %c0_32, %c0_33] : memref<36x64x128xbf16, #tpu.memory_space<vmem>>, vector<1x64x128xbf16>
    %59 = vector.shape_cast %58 : vector<1x64x128xbf16> to vector<64x128xbf16>
    %cst_34 = arith.constant dense<0.000000e+00> : vector<16x128xf32>
    %60 = tpu.matmul %57, %59, %cst_34 {dimension_numbers = #tpu.dot_dimension_numbers<[1], [0], [0], [1], [0, 0, 1, 1], [], []>} : vector<16x64xbf16>, vector<64x128xbf16>, vector<16x128xf32> -> vector<16x128xf32>
    %61 = arith.addf %55, %60 : vector<16x128xf32>
    %62 = vector.extract_strided_slice %6 {offsets = [12, 48], sizes = [16, 64], strides = [1, 1]} : vector<52x208xf32> to vector<16x64xf32>
    %63 = arith.truncf %62 : vector<16x64xf32> to vector<16x64xbf16>
    %c9 = arith.constant 9 : index
    %c0_35 = arith.constant 0 : index
    %c0_36 = arith.constant 0 : index
    %64 = vector.load %arg2[%c9, %c0_35, %c0_36] : memref<36x64x128xbf16, #tpu.memory_space<vmem>>, vector<1x64x128xbf16>
    %65 = vector.shape_cast %64 : vector<1x64x128xbf16> to vector<64x128xbf16>
    %cst_37 = arith.constant dense<0.000000e+00> : vector<16x128xf32>
    %66 = tpu.matmul %63, %65, %cst_37 {dimension_numbers = #tpu.dot_dimension_numbers<[1], [0], [0], [1], [0, 0, 1, 1], [], []>} : vector<16x64xbf16>, vector<64x128xbf16>, vector<16x128xf32> -> vector<16x128xf32>
    %67 = arith.addf %61, %66 : vector<16x128xf32>
    %68 = vector.extract_strided_slice %6 {offsets = [12, 72], sizes = [16, 64], strides = [1, 1]} : vector<52x208xf32> to vector<16x64xf32>
    %69 = arith.truncf %68 : vector<16x64xf32> to vector<16x64xbf16>
    %c10 = arith.constant 10 : index
    %c0_38 = arith.constant 0 : index
    %c0_39 = arith.constant 0 : index
    %70 = vector.load %arg2[%c10, %c0_38, %c0_39] : memref<36x64x128xbf16, #tpu.memory_space<vmem>>, vector<1x64x128xbf16>
    %71 = vector.shape_cast %70 : vector<1x64x128xbf16> to vector<64x128xbf16>
    %cst_40 = arith.constant dense<0.000000e+00> : vector<16x128xf32>
    %72 = tpu.matmul %69, %71, %cst_40 {dimension_numbers = #tpu.dot_dimension_numbers<[1], [0], [0], [1], [0, 0, 1, 1], [], []>} : vector<16x64xbf16>, vector<64x128xbf16>, vector<16x128xf32> -> vector<16x128xf32>
    %73 = arith.addf %67, %72 : vector<16x128xf32>
    %74 = vector.extract_strided_slice %6 {offsets = [12, 96], sizes = [16, 64], strides = [1, 1]} : vector<52x208xf32> to vector<16x64xf32>
    %75 = arith.truncf %74 : vector<16x64xf32> to vector<16x64xbf16>
    %c11 = arith.constant 11 : index
    %c0_41 = arith.constant 0 : index
    %c0_42 = arith.constant 0 : index
    %76 = vector.load %arg2[%c11, %c0_41, %c0_42] : memref<36x64x128xbf16, #tpu.memory_space<vmem>>, vector<1x64x128xbf16>
    %77 = vector.shape_cast %76 : vector<1x64x128xbf16> to vector<64x128xbf16>
    %cst_43 = arith.constant dense<0.000000e+00> : vector<16x128xf32>
    %78 = tpu.matmul %75, %77, %cst_43 {dimension_numbers = #tpu.dot_dimension_numbers<[1], [0], [0], [1], [0, 0, 1, 1], [], []>} : vector<16x64xbf16>, vector<64x128xbf16>, vector<16x128xf32> -> vector<16x128xf32>
    %79 = arith.addf %73, %78 : vector<16x128xf32>
    %80 = vector.extract_strided_slice %6 {offsets = [18, 48], sizes = [16, 64], strides = [1, 1]} : vector<52x208xf32> to vector<16x64xf32>
    %81 = arith.truncf %80 : vector<16x64xf32> to vector<16x64xbf16>
    %c12 = arith.constant 12 : index
    %c0_44 = arith.constant 0 : index
    %c0_45 = arith.constant 0 : index
    %82 = vector.load %arg2[%c12, %c0_44, %c0_45] : memref<36x64x128xbf16, #tpu.memory_space<vmem>>, vector<1x64x128xbf16>
    %83 = vector.shape_cast %82 : vector<1x64x128xbf16> to vector<64x128xbf16>
    %cst_46 = arith.constant dense<0.000000e+00> : vector<16x128xf32>
    %84 = tpu.matmul %81, %83, %cst_46 {dimension_numbers = #tpu.dot_dimension_numbers<[1], [0], [0], [1], [0, 0, 1, 1], [], []>} : vector<16x64xbf16>, vector<64x128xbf16>, vector<16x128xf32> -> vector<16x128xf32>
    %85 = arith.addf %79, %84 : vector<16x128xf32>
    %86 = vector.extract_strided_slice %6 {offsets = [18, 72], sizes = [16, 64], strides = [1, 1]} : vector<52x208xf32> to vector<16x64xf32>
    %87 = arith.truncf %86 : vector<16x64xf32> to vector<16x64xbf16>
    %c13 = arith.constant 13 : index
    %c0_47 = arith.constant 0 : index
    %c0_48 = arith.constant 0 : index
    %88 = vector.load %arg2[%c13, %c0_47, %c0_48] : memref<36x64x128xbf16, #tpu.memory_space<vmem>>, vector<1x64x128xbf16>
    %89 = vector.shape_cast %88 : vector<1x64x128xbf16> to vector<64x128xbf16>
    %cst_49 = arith.constant dense<0.000000e+00> : vector<16x128xf32>
    %90 = tpu.matmul %87, %89, %cst_49 {dimension_numbers = #tpu.dot_dimension_numbers<[1], [0], [0], [1], [0, 0, 1, 1], [], []>} : vector<16x64xbf16>, vector<64x128xbf16>, vector<16x128xf32> -> vector<16x128xf32>
    %91 = arith.addf %85, %90 : vector<16x128xf32>
    %92 = vector.extract_strided_slice %6 {offsets = [18, 96], sizes = [16, 64], strides = [1, 1]} : vector<52x208xf32> to vector<16x64xf32>
    %93 = arith.truncf %92 : vector<16x64xf32> to vector<16x64xbf16>
    %c14 = arith.constant 14 : index
    %c0_50 = arith.constant 0 : index
    %c0_51 = arith.constant 0 : index
    %94 = vector.load %arg2[%c14, %c0_50, %c0_51] : memref<36x64x128xbf16, #tpu.memory_space<vmem>>, vector<1x64x128xbf16>
    %95 = vector.shape_cast %94 : vector<1x64x128xbf16> to vector<64x128xbf16>
    %cst_52 = arith.constant dense<0.000000e+00> : vector<16x128xf32>
    %96 = tpu.matmul %93, %95, %cst_52 {dimension_numbers = #tpu.dot_dimension_numbers<[1], [0], [0], [1], [0, 0, 1, 1], [], []>} : vector<16x64xbf16>, vector<64x128xbf16>, vector<16x128xf32> -> vector<16x128xf32>
    %97 = arith.addf %91, %96 : vector<16x128xf32>
    %98 = vector.extract_strided_slice %6 {offsets = [24, 48], sizes = [16, 64], strides = [1, 1]} : vector<52x208xf32> to vector<16x64xf32>
    %99 = arith.truncf %98 : vector<16x64xf32> to vector<16x64xbf16>
    %c15 = arith.constant 15 : index
    %c0_53 = arith.constant 0 : index
    %c0_54 = arith.constant 0 : index
    %100 = vector.load %arg2[%c15, %c0_53, %c0_54] : memref<36x64x128xbf16, #tpu.memory_space<vmem>>, vector<1x64x128xbf16>
    %101 = vector.shape_cast %100 : vector<1x64x128xbf16> to vector<64x128xbf16>
    %cst_55 = arith.constant dense<0.000000e+00> : vector<16x128xf32>
    %102 = tpu.matmul %99, %101, %cst_55 {dimension_numbers = #tpu.dot_dimension_numbers<[1], [0], [0], [1], [0, 0, 1, 1], [], []>} : vector<16x64xbf16>, vector<64x128xbf16>, vector<16x128xf32> -> vector<16x128xf32>
    %103 = arith.addf %97, %102 : vector<16x128xf32>
    %104 = vector.extract_strided_slice %6 {offsets = [24, 72], sizes = [16, 64], strides = [1, 1]} : vector<52x208xf32> to vector<16x64xf32>
    %105 = arith.truncf %104 : vector<16x64xf32> to vector<16x64xbf16>
    %c16 = arith.constant 16 : index
    %c0_56 = arith.constant 0 : index
    %c0_57 = arith.constant 0 : index
    %106 = vector.load %arg2[%c16, %c0_56, %c0_57] : memref<36x64x128xbf16, #tpu.memory_space<vmem>>, vector<1x64x128xbf16>
    %107 = vector.shape_cast %106 : vector<1x64x128xbf16> to vector<64x128xbf16>
    %cst_58 = arith.constant dense<0.000000e+00> : vector<16x128xf32>
    %108 = tpu.matmul %105, %107, %cst_58 {dimension_numbers = #tpu.dot_dimension_numbers<[1], [0], [0], [1], [0, 0, 1, 1], [], []>} : vector<16x64xbf16>, vector<64x128xbf16>, vector<16x128xf32> -> vector<16x128xf32>
    %109 = arith.addf %103, %108 : vector<16x128xf32>
    %110 = vector.extract_strided_slice %6 {offsets = [24, 96], sizes = [16, 64], strides = [1, 1]} : vector<52x208xf32> to vector<16x64xf32>
    %111 = arith.truncf %110 : vector<16x64xf32> to vector<16x64xbf16>
    %c17 = arith.constant 17 : index
    %c0_59 = arith.constant 0 : index
    %c0_60 = arith.constant 0 : index
    %112 = vector.load %arg2[%c17, %c0_59, %c0_60] : memref<36x64x128xbf16, #tpu.memory_space<vmem>>, vector<1x64x128xbf16>
    %113 = vector.shape_cast %112 : vector<1x64x128xbf16> to vector<64x128xbf16>
    %cst_61 = arith.constant dense<0.000000e+00> : vector<16x128xf32>
    %114 = tpu.matmul %111, %113, %cst_61 {dimension_numbers = #tpu.dot_dimension_numbers<[1], [0], [0], [1], [0, 0, 1, 1], [], []>} : vector<16x64xbf16>, vector<64x128xbf16>, vector<16x128xf32> -> vector<16x128xf32>
    %115 = arith.addf %109, %114 : vector<16x128xf32>
    %116 = vector.extract_strided_slice %6 {offsets = [6, 24], sizes = [16, 64], strides = [1, 1]} : vector<52x208xf32> to vector<16x64xf32>
    %117 = arith.truncf %116 : vector<16x64xf32> to vector<16x64xbf16>
    %c18_62 = arith.constant 18 : index
    %c0_63 = arith.constant 0 : index
    %c0_64 = arith.constant 0 : index
    %118 = vector.load %arg2[%c18_62, %c0_63, %c0_64] : memref<36x64x128xbf16, #tpu.memory_space<vmem>>, vector<1x64x128xbf16>
    %119 = vector.shape_cast %118 : vector<1x64x128xbf16> to vector<64x128xbf16>
    %cst_65 = arith.constant dense<0.000000e+00> : vector<16x128xf32>
    %120 = tpu.matmul %117, %119, %cst_65 {dimension_numbers = #tpu.dot_dimension_numbers<[1], [0], [0], [1], [0, 0, 1, 1], [], []>} : vector<16x64xbf16>, vector<64x128xbf16>, vector<16x128xf32> -> vector<16x128xf32>
    %121 = arith.addf %115, %120 : vector<16x128xf32>
    %122 = vector.extract_strided_slice %6 {offsets = [6, 72], sizes = [16, 64], strides = [1, 1]} : vector<52x208xf32> to vector<16x64xf32>
    %123 = arith.truncf %122 : vector<16x64xf32> to vector<16x64xbf16>
    %c19 = arith.constant 19 : index
    %c0_66 = arith.constant 0 : index
    %c0_67 = arith.constant 0 : index
    %124 = vector.load %arg2[%c19, %c0_66, %c0_67] : memref<36x64x128xbf16, #tpu.memory_space<vmem>>, vector<1x64x128xbf16>
    %125 = vector.shape_cast %124 : vector<1x64x128xbf16> to vector<64x128xbf16>
    %cst_68 = arith.constant dense<0.000000e+00> : vector<16x128xf32>
    %126 = tpu.matmul %123, %125, %cst_68 {dimension_numbers = #tpu.dot_dimension_numbers<[1], [0], [0], [1], [0, 0, 1, 1], [], []>} : vector<16x64xbf16>, vector<64x128xbf16>, vector<16x128xf32> -> vector<16x128xf32>
    %127 = arith.addf %121, %126 : vector<16x128xf32>
    %128 = vector.extract_strided_slice %6 {offsets = [6, 120], sizes = [16, 64], strides = [1, 1]} : vector<52x208xf32> to vector<16x64xf32>
    %129 = arith.truncf %128 : vector<16x64xf32> to vector<16x64xbf16>
    %c20 = arith.constant 20 : index
    %c0_69 = arith.constant 0 : index
    %c0_70 = arith.constant 0 : index
    %130 = vector.load %arg2[%c20, %c0_69, %c0_70] : memref<36x64x128xbf16, #tpu.memory_space<vmem>>, vector<1x64x128xbf16>
    %131 = vector.shape_cast %130 : vector<1x64x128xbf16> to vector<64x128xbf16>
    %cst_71 = arith.constant dense<0.000000e+00> : vector<16x128xf32>
    %132 = tpu.matmul %129, %131, %cst_71 {dimension_numbers = #tpu.dot_dimension_numbers<[1], [0], [0], [1], [0, 0, 1, 1], [], []>} : vector<16x64xbf16>, vector<64x128xbf16>, vector<16x128xf32> -> vector<16x128xf32>
    %133 = arith.addf %127, %132 : vector<16x128xf32>
    %134 = vector.extract_strided_slice %6 {offsets = [18, 24], sizes = [16, 64], strides = [1, 1]} : vector<52x208xf32> to vector<16x64xf32>
    %135 = arith.truncf %134 : vector<16x64xf32> to vector<16x64xbf16>
    %c21 = arith.constant 21 : index
    %c0_72 = arith.constant 0 : index
    %c0_73 = arith.constant 0 : index
    %136 = vector.load %arg2[%c21, %c0_72, %c0_73] : memref<36x64x128xbf16, #tpu.memory_space<vmem>>, vector<1x64x128xbf16>
    %137 = vector.shape_cast %136 : vector<1x64x128xbf16> to vector<64x128xbf16>
    %cst_74 = arith.constant dense<0.000000e+00> : vector<16x128xf32>
    %138 = tpu.matmul %135, %137, %cst_74 {dimension_numbers = #tpu.dot_dimension_numbers<[1], [0], [0], [1], [0, 0, 1, 1], [], []>} : vector<16x64xbf16>, vector<64x128xbf16>, vector<16x128xf32> -> vector<16x128xf32>
    %139 = arith.addf %133, %138 : vector<16x128xf32>
    %140 = vector.extract_strided_slice %6 {offsets = [18, 72], sizes = [16, 64], strides = [1, 1]} : vector<52x208xf32> to vector<16x64xf32>
    %141 = arith.truncf %140 : vector<16x64xf32> to vector<16x64xbf16>
    %c22 = arith.constant 22 : index
    %c0_75 = arith.constant 0 : index
    %c0_76 = arith.constant 0 : index
    %142 = vector.load %arg2[%c22, %c0_75, %c0_76] : memref<36x64x128xbf16, #tpu.memory_space<vmem>>, vector<1x64x128xbf16>
    %143 = vector.shape_cast %142 : vector<1x64x128xbf16> to vector<64x128xbf16>
    %cst_77 = arith.constant dense<0.000000e+00> : vector<16x128xf32>
    %144 = tpu.matmul %141, %143, %cst_77 {dimension_numbers = #tpu.dot_dimension_numbers<[1], [0], [0], [1], [0, 0, 1, 1], [], []>} : vector<16x64xbf16>, vector<64x128xbf16>, vector<16x128xf32> -> vector<16x128xf32>
    %145 = arith.addf %139, %144 : vector<16x128xf32>
    %146 = vector.extract_strided_slice %6 {offsets = [18, 120], sizes = [16, 64], strides = [1, 1]} : vector<52x208xf32> to vector<16x64xf32>
    %147 = arith.truncf %146 : vector<16x64xf32> to vector<16x64xbf16>
    %c23 = arith.constant 23 : index
    %c0_78 = arith.constant 0 : index
    %c0_79 = arith.constant 0 : index
    %148 = vector.load %arg2[%c23, %c0_78, %c0_79] : memref<36x64x128xbf16, #tpu.memory_space<vmem>>, vector<1x64x128xbf16>
    %149 = vector.shape_cast %148 : vector<1x64x128xbf16> to vector<64x128xbf16>
    %cst_80 = arith.constant dense<0.000000e+00> : vector<16x128xf32>
    %150 = tpu.matmul %147, %149, %cst_80 {dimension_numbers = #tpu.dot_dimension_numbers<[1], [0], [0], [1], [0, 0, 1, 1], [], []>} : vector<16x64xbf16>, vector<64x128xbf16>, vector<16x128xf32> -> vector<16x128xf32>
    %151 = arith.addf %145, %150 : vector<16x128xf32>
    %152 = vector.extract_strided_slice %6 {offsets = [30, 24], sizes = [16, 64], strides = [1, 1]} : vector<52x208xf32> to vector<16x64xf32>
    %153 = arith.truncf %152 : vector<16x64xf32> to vector<16x64xbf16>
    %c24 = arith.constant 24 : index
    %c0_81 = arith.constant 0 : index
    %c0_82 = arith.constant 0 : index
    %154 = vector.load %arg2[%c24, %c0_81, %c0_82] : memref<36x64x128xbf16, #tpu.memory_space<vmem>>, vector<1x64x128xbf16>
    %155 = vector.shape_cast %154 : vector<1x64x128xbf16> to vector<64x128xbf16>
    %cst_83 = arith.constant dense<0.000000e+00> : vector<16x128xf32>
    %156 = tpu.matmul %153, %155, %cst_83 {dimension_numbers = #tpu.dot_dimension_numbers<[1], [0], [0], [1], [0, 0, 1, 1], [], []>} : vector<16x64xbf16>, vector<64x128xbf16>, vector<16x128xf32> -> vector<16x128xf32>
    %157 = arith.addf %151, %156 : vector<16x128xf32>
    %158 = vector.extract_strided_slice %6 {offsets = [30, 72], sizes = [16, 64], strides = [1, 1]} : vector<52x208xf32> to vector<16x64xf32>
    %159 = arith.truncf %158 : vector<16x64xf32> to vector<16x64xbf16>
    %c25 = arith.constant 25 : index
    %c0_84 = arith.constant 0 : index
    %c0_85 = arith.constant 0 : index
    %160 = vector.load %arg2[%c25, %c0_84, %c0_85] : memref<36x64x128xbf16, #tpu.memory_space<vmem>>, vector<1x64x128xbf16>
    %161 = vector.shape_cast %160 : vector<1x64x128xbf16> to vector<64x128xbf16>
    %cst_86 = arith.constant dense<0.000000e+00> : vector<16x128xf32>
    %162 = tpu.matmul %159, %161, %cst_86 {dimension_numbers = #tpu.dot_dimension_numbers<[1], [0], [0], [1], [0, 0, 1, 1], [], []>} : vector<16x64xbf16>, vector<64x128xbf16>, vector<16x128xf32> -> vector<16x128xf32>
    %163 = arith.addf %157, %162 : vector<16x128xf32>
    %164 = vector.extract_strided_slice %6 {offsets = [30, 120], sizes = [16, 64], strides = [1, 1]} : vector<52x208xf32> to vector<16x64xf32>
    %165 = arith.truncf %164 : vector<16x64xf32> to vector<16x64xbf16>
    %c26 = arith.constant 26 : index
    %c0_87 = arith.constant 0 : index
    %c0_88 = arith.constant 0 : index
    %166 = vector.load %arg2[%c26, %c0_87, %c0_88] : memref<36x64x128xbf16, #tpu.memory_space<vmem>>, vector<1x64x128xbf16>
    %167 = vector.shape_cast %166 : vector<1x64x128xbf16> to vector<64x128xbf16>
    %cst_89 = arith.constant dense<0.000000e+00> : vector<16x128xf32>
    %168 = tpu.matmul %165, %167, %cst_89 {dimension_numbers = #tpu.dot_dimension_numbers<[1], [0], [0], [1], [0, 0, 1, 1], [], []>} : vector<16x64xbf16>, vector<64x128xbf16>, vector<16x128xf32> -> vector<16x128xf32>
    %169 = arith.addf %163, %168 : vector<16x128xf32>
    %170 = vector.extract_strided_slice %6 {offsets = [0, 0], sizes = [16, 64], strides = [1, 1]} : vector<52x208xf32> to vector<16x64xf32>
    %171 = arith.truncf %170 : vector<16x64xf32> to vector<16x64xbf16>
    %c27 = arith.constant 27 : index
    %c0_90 = arith.constant 0 : index
    %c0_91 = arith.constant 0 : index
    %172 = vector.load %arg2[%c27, %c0_90, %c0_91] : memref<36x64x128xbf16, #tpu.memory_space<vmem>>, vector<1x64x128xbf16>
    %173 = vector.shape_cast %172 : vector<1x64x128xbf16> to vector<64x128xbf16>
    %cst_92 = arith.constant dense<0.000000e+00> : vector<16x128xf32>
    %174 = tpu.matmul %171, %173, %cst_92 {dimension_numbers = #tpu.dot_dimension_numbers<[1], [0], [0], [1], [0, 0, 1, 1], [], []>} : vector<16x64xbf16>, vector<64x128xbf16>, vector<16x128xf32> -> vector<16x128xf32>
    %175 = arith.addf %169, %174 : vector<16x128xf32>
    %176 = vector.extract_strided_slice %6 {offsets = [0, 72], sizes = [16, 64], strides = [1, 1]} : vector<52x208xf32> to vector<16x64xf32>
    %177 = arith.truncf %176 : vector<16x64xf32> to vector<16x64xbf16>
    %c28 = arith.constant 28 : index
    %c0_93 = arith.constant 0 : index
    %c0_94 = arith.constant 0 : index
    %178 = vector.load %arg2[%c28, %c0_93, %c0_94] : memref<36x64x128xbf16, #tpu.memory_space<vmem>>, vector<1x64x128xbf16>
    %179 = vector.shape_cast %178 : vector<1x64x128xbf16> to vector<64x128xbf16>
    %cst_95 = arith.constant dense<0.000000e+00> : vector<16x128xf32>
    %180 = tpu.matmul %177, %179, %cst_95 {dimension_numbers = #tpu.dot_dimension_numbers<[1], [0], [0], [1], [0, 0, 1, 1], [], []>} : vector<16x64xbf16>, vector<64x128xbf16>, vector<16x128xf32> -> vector<16x128xf32>
    %181 = arith.addf %175, %180 : vector<16x128xf32>
    %182 = vector.extract_strided_slice %6 {offsets = [0, 144], sizes = [16, 64], strides = [1, 1]} : vector<52x208xf32> to vector<16x64xf32>
    %183 = arith.truncf %182 : vector<16x64xf32> to vector<16x64xbf16>
    %c29 = arith.constant 29 : index
    %c0_96 = arith.constant 0 : index
    %c0_97 = arith.constant 0 : index
    %184 = vector.load %arg2[%c29, %c0_96, %c0_97] : memref<36x64x128xbf16, #tpu.memory_space<vmem>>, vector<1x64x128xbf16>
    %185 = vector.shape_cast %184 : vector<1x64x128xbf16> to vector<64x128xbf16>
    %cst_98 = arith.constant dense<0.000000e+00> : vector<16x128xf32>
    %186 = tpu.matmul %183, %185, %cst_98 {dimension_numbers = #tpu.dot_dimension_numbers<[1], [0], [0], [1], [0, 0, 1, 1], [], []>} : vector<16x64xbf16>, vector<64x128xbf16>, vector<16x128xf32> -> vector<16x128xf32>
    %187 = arith.addf %181, %186 : vector<16x128xf32>
    %188 = vector.extract_strided_slice %6 {offsets = [18, 0], sizes = [16, 64], strides = [1, 1]} : vector<52x208xf32> to vector<16x64xf32>
    %189 = arith.truncf %188 : vector<16x64xf32> to vector<16x64xbf16>
    %c30 = arith.constant 30 : index
    %c0_99 = arith.constant 0 : index
    %c0_100 = arith.constant 0 : index
    %190 = vector.load %arg2[%c30, %c0_99, %c0_100] : memref<36x64x128xbf16, #tpu.memory_space<vmem>>, vector<1x64x128xbf16>
    %191 = vector.shape_cast %190 : vector<1x64x128xbf16> to vector<64x128xbf16>
    %cst_101 = arith.constant dense<0.000000e+00> : vector<16x128xf32>
    %192 = tpu.matmul %189, %191, %cst_101 {dimension_numbers = #tpu.dot_dimension_numbers<[1], [0], [0], [1], [0, 0, 1, 1], [], []>} : vector<16x64xbf16>, vector<64x128xbf16>, vector<16x128xf32> -> vector<16x128xf32>
    %193 = arith.addf %187, %192 : vector<16x128xf32>
    %194 = vector.extract_strided_slice %6 {offsets = [18, 72], sizes = [16, 64], strides = [1, 1]} : vector<52x208xf32> to vector<16x64xf32>
    %195 = arith.truncf %194 : vector<16x64xf32> to vector<16x64xbf16>
    %c31 = arith.constant 31 : index
    %c0_102 = arith.constant 0 : index
    %c0_103 = arith.constant 0 : index
    %196 = vector.load %arg2[%c31, %c0_102, %c0_103] : memref<36x64x128xbf16, #tpu.memory_space<vmem>>, vector<1x64x128xbf16>
    %197 = vector.shape_cast %196 : vector<1x64x128xbf16> to vector<64x128xbf16>
    %cst_104 = arith.constant dense<0.000000e+00> : vector<16x128xf32>
    %198 = tpu.matmul %195, %197, %cst_104 {dimension_numbers = #tpu.dot_dimension_numbers<[1], [0], [0], [1], [0, 0, 1, 1], [], []>} : vector<16x64xbf16>, vector<64x128xbf16>, vector<16x128xf32> -> vector<16x128xf32>
    %199 = arith.addf %193, %198 : vector<16x128xf32>
    %200 = vector.extract_strided_slice %6 {offsets = [18, 144], sizes = [16, 64], strides = [1, 1]} : vector<52x208xf32> to vector<16x64xf32>
    %201 = arith.truncf %200 : vector<16x64xf32> to vector<16x64xbf16>
    %c32 = arith.constant 32 : index
    %c0_105 = arith.constant 0 : index
    %c0_106 = arith.constant 0 : index
    %202 = vector.load %arg2[%c32, %c0_105, %c0_106] : memref<36x64x128xbf16, #tpu.memory_space<vmem>>, vector<1x64x128xbf16>
    %203 = vector.shape_cast %202 : vector<1x64x128xbf16> to vector<64x128xbf16>
    %cst_107 = arith.constant dense<0.000000e+00> : vector<16x128xf32>
    %204 = tpu.matmul %201, %203, %cst_107 {dimension_numbers = #tpu.dot_dimension_numbers<[1], [0], [0], [1], [0, 0, 1, 1], [], []>} : vector<16x64xbf16>, vector<64x128xbf16>, vector<16x128xf32> -> vector<16x128xf32>
    %205 = arith.addf %199, %204 : vector<16x128xf32>
    %206 = vector.extract_strided_slice %6 {offsets = [36, 0], sizes = [16, 64], strides = [1, 1]} : vector<52x208xf32> to vector<16x64xf32>
    %207 = arith.truncf %206 : vector<16x64xf32> to vector<16x64xbf16>
    %c33 = arith.constant 33 : index
    %c0_108 = arith.constant 0 : index
    %c0_109 = arith.constant 0 : index
    %208 = vector.load %arg2[%c33, %c0_108, %c0_109] : memref<36x64x128xbf16, #tpu.memory_space<vmem>>, vector<1x64x128xbf16>
    %209 = vector.shape_cast %208 : vector<1x64x128xbf16> to vector<64x128xbf16>
    %cst_110 = arith.constant dense<0.000000e+00> : vector<16x128xf32>
    %210 = tpu.matmul %207, %209, %cst_110 {dimension_numbers = #tpu.dot_dimension_numbers<[1], [0], [0], [1], [0, 0, 1, 1], [], []>} : vector<16x64xbf16>, vector<64x128xbf16>, vector<16x128xf32> -> vector<16x128xf32>
    %211 = arith.addf %205, %210 : vector<16x128xf32>
    %212 = vector.extract_strided_slice %6 {offsets = [36, 72], sizes = [16, 64], strides = [1, 1]} : vector<52x208xf32> to vector<16x64xf32>
    %213 = arith.truncf %212 : vector<16x64xf32> to vector<16x64xbf16>
    %c34 = arith.constant 34 : index
    %c0_111 = arith.constant 0 : index
    %c0_112 = arith.constant 0 : index
    %214 = vector.load %arg2[%c34, %c0_111, %c0_112] : memref<36x64x128xbf16, #tpu.memory_space<vmem>>, vector<1x64x128xbf16>
    %215 = vector.shape_cast %214 : vector<1x64x128xbf16> to vector<64x128xbf16>
    %cst_113 = arith.constant dense<0.000000e+00> : vector<16x128xf32>
    %216 = tpu.matmul %213, %215, %cst_113 {dimension_numbers = #tpu.dot_dimension_numbers<[1], [0], [0], [1], [0, 0, 1, 1], [], []>} : vector<16x64xbf16>, vector<64x128xbf16>, vector<16x128xf32> -> vector<16x128xf32>
    %217 = arith.addf %211, %216 : vector<16x128xf32>
    %218 = vector.extract_strided_slice %6 {offsets = [36, 144], sizes = [16, 64], strides = [1, 1]} : vector<52x208xf32> to vector<16x64xf32>
    %219 = arith.truncf %218 : vector<16x64xf32> to vector<16x64xbf16>
    %c35 = arith.constant 35 : index
    %c0_114 = arith.constant 0 : index
    %c0_115 = arith.constant 0 : index
    %220 = vector.load %arg2[%c35, %c0_114, %c0_115] : memref<36x64x128xbf16, #tpu.memory_space<vmem>>, vector<1x64x128xbf16>
    %221 = vector.shape_cast %220 : vector<1x64x128xbf16> to vector<64x128xbf16>
    %cst_116 = arith.constant dense<0.000000e+00> : vector<16x128xf32>
    %222 = tpu.matmul %219, %221, %cst_116 {dimension_numbers = #tpu.dot_dimension_numbers<[1], [0], [0], [1], [0, 0, 1, 1], [], []>} : vector<16x64xbf16>, vector<64x128xbf16>, vector<16x128xf32> -> vector<16x128xf32>
    %223 = arith.addf %217, %222 : vector<16x128xf32>
    %c0_117 = arith.constant 0 : index
    %c0_118 = arith.constant 0 : index
    %224 = vector.load %arg3[%c0_117, %c0_118] : memref<1x128xf32, #tpu.memory_space<vmem>>, vector<1x128xf32>
    %225 = vector.broadcast %224 : vector<1x128xf32> to vector<16x128xf32>
    %226 = arith.addf %223, %225 : vector<16x128xf32>
    %cst_119 = arith.constant 0.000000e+00 : f32
    %227 = vector.broadcast %cst_119 : f32 to vector<16x128xf32>
    %228 = arith.maximumf %226, %227 : vector<16x128xf32>
    %c0_120 = arith.constant 0 : index
    %c0_121 = arith.constant 0 : index
    %229 = vector.load %arg4[%c0_120, %c0_121] : memref<1x128xf32, #tpu.memory_space<vmem>>, vector<1x128xf32>
    %230 = vector.broadcast %229 : vector<1x128xf32> to vector<16x128xf32>
    %231 = arith.mulf %228, %230 : vector<16x128xf32>
    %c0_122 = arith.constant 0 : index
    %c0_123 = arith.constant 0 : index
    %232 = vector.load %arg5[%c0_122, %c0_123] : memref<1x128xf32, #tpu.memory_space<vmem>>, vector<1x128xf32>
    %233 = vector.broadcast %232 : vector<1x128xf32> to vector<16x128xf32>
    %234 = arith.addf %231, %233 : vector<16x128xf32>
    %235 = arith.truncf %234 : vector<16x128xf32> to vector<16x128xbf16>
    %c0_124 = arith.constant 0 : index
    %c0_125 = arith.constant 0 : index
    %c0_126 = arith.constant 0 : index
    %236 = vector.load %arg6[%c0_124, %c0_125, %c0_126] : memref<1x16x128xbf16, #tpu.memory_space<vmem>>, vector<1x16x128xbf16>
    %237 = vector.shape_cast %236 : vector<1x16x128xbf16> to vector<16x128xbf16>
    %238 = vector.shape_cast %235 : vector<16x128xbf16> to vector<1x16x128xbf16>
    tpu.vector_store %arg6[%c0_124, %c0_125, %c0_126], %238 {strides = array<i32>} : memref<1x16x128xbf16, #tpu.memory_space<vmem>>, vector<1x16x128xbf16>,
    return
  }
  func.func @transform_0(%arg0: i32) -> (i32, i32, i32) {
    %c0_i32 = arith.constant 0 : i32
    %c0_i32_0 = arith.constant 0 : i32
    %c0_i32_1 = arith.constant 0 : i32
    return %arg0, %c0_i32, %c0_i32_0 : i32, i32, i32
  }
  func.func @transform_1(%arg0: i32) -> (i32, i32, i32) {
    %c0_i32 = arith.constant 0 : i32
    %c0_i32_0 = arith.constant 0 : i32
    %c0_i32_1 = arith.constant 0 : i32
    %c0_i32_2 = arith.constant 0 : i32
    return %c0_i32, %c0_i32_0, %c0_i32_1 : i32, i32, i32
  }
  func.func @transform_2(%arg0: i32) -> (i32, i32) {
    %c0_i32 = arith.constant 0 : i32
    %c0_i32_0 = arith.constant 0 : i32
    %c0_i32_1 = arith.constant 0 : i32
    return %c0_i32, %c0_i32_0 : i32, i32
  }
  func.func @transform_3(%arg0: i32) -> (i32, i32) {
    %c0_i32 = arith.constant 0 : i32
    %c0_i32_0 = arith.constant 0 : i32
    %c0_i32_1 = arith.constant 0 : i32
    return %c0_i32, %c0_i32_0 : i32, i32
  }
  func.func @transform_4(%arg0: i32) -> (i32, i32) {
    %c0_i32 = arith.constant 0 : i32
    %c0_i32_0 = arith.constant 0 : i32
    %c0_i32_1 = arith.constant 0 : i32
    return %c0_i32, %c0_i32_0 : i32, i32
  }
  func.func @transform_5(%arg0: i32) -> (i32, i32, i32) {
    %c0_i32 = arith.constant 0 : i32
    %c0_i32_0 = arith.constant 0 : i32
    %c0_i32_1 = arith.constant 0 : i32
    return %arg0, %c0_i32, %c0_i32_0 : i32, i32, i32
  }
}

module attributes {stable_mosaic.version = 11 : i64} {
  func.func @_up_conv3x3_kernel(%arg0: i32, %arg1: memref<1x16x128xbf16, #tpu.memory_space<vmem>>, %arg2: memref<32x16xbf16, #tpu.memory_space<vmem>>, %arg3: memref<128x256xbf16, #tpu.memory_space<vmem>>, %arg4: memref<9x256x256xbf16, #tpu.memory_space<vmem>>, %arg5: memref<1x256xf32, #tpu.memory_space<vmem>>, %arg6: memref<1x256xf32, #tpu.memory_space<vmem>>, %arg7: memref<1x256xf32, #tpu.memory_space<vmem>>, %arg8: memref<1x32x256xf32, #tpu.memory_space<vmem>>, %arg9: memref<34x272xf32, #tpu.memory_space<vmem>>) attributes {dimension_semantics = [#tpu.dimension_semantics<parallel>], iteration_bounds = array<i64: 2>, scalar_prefetch = 0 : i64, scratch_operands = 1 : i64, tpu.core_type = #tpu.core_type<tc>, window_params = [{transform_indices = @transform_0, window_bounds = array<i64: 1, 16, 128>}, {pipeline_mode = #tpu.pipeline_mode<synchronous>, transform_indices = @transform_1, window_bounds = array<i64: 32, 16>}, {pipeline_mode = #tpu.pipeline_mode<synchronous>, transform_indices = @transform_2, window_bounds = array<i64: 128, 256>}, {pipeline_mode = #tpu.pipeline_mode<synchronous>, transform_indices = @transform_3, window_bounds = array<i64: 9, 256, 256>}, {pipeline_mode = #tpu.pipeline_mode<synchronous>, transform_indices = @transform_4, window_bounds = array<i64: 1, 256>}, {pipeline_mode = #tpu.pipeline_mode<synchronous>, transform_indices = @transform_5, window_bounds = array<i64: 1, 256>}, {pipeline_mode = #tpu.pipeline_mode<synchronous>, transform_indices = @transform_6, window_bounds = array<i64: 1, 256>}, {transform_indices = @transform_7, window_bounds = array<i64: 1, 32, 256>}]} {
    %c0 = arith.constant 0 : index
    %c0_0 = arith.constant 0 : index
    %c0_1 = arith.constant 0 : index
    %0 = vector.load %arg1[%c0, %c0_0, %c0_1] : memref<1x16x128xbf16, #tpu.memory_space<vmem>>, vector<1x16x128xbf16>
    %1 = vector.shape_cast %0 : vector<1x16x128xbf16> to vector<16x128xbf16>
    %c0_2 = arith.constant 0 : index
    %c0_3 = arith.constant 0 : index
    %2 = vector.load %arg2[%c0_2, %c0_3] : memref<32x16xbf16, #tpu.memory_space<vmem>>, vector<32x16xbf16>
    %cst = arith.constant dense<0.000000e+00> : vector<32x128xf32>
    %3 = tpu.matmul %2, %1, %cst {dimension_numbers = #tpu.dot_dimension_numbers<[1], [0], [0], [1], [0, 0, 1, 1], [], []>} : vector<32x16xbf16>, vector<16x128xbf16>, vector<32x128xf32> -> vector<32x128xf32>
    %4 = arith.truncf %3 : vector<32x128xf32> to vector<32x128xbf16>
    %c0_4 = arith.constant 0 : index
    %c0_5 = arith.constant 0 : index
    %5 = vector.load %arg3[%c0_4, %c0_5] : memref<128x256xbf16, #tpu.memory_space<vmem>>, vector<128x256xbf16>
    %cst_6 = arith.constant dense<0.000000e+00> : vector<32x256xf32>
    %6 = tpu.matmul %4, %5, %cst_6 {dimension_numbers = #tpu.dot_dimension_numbers<[1], [0], [0], [1], [0, 0, 1, 1], [], []>} : vector<32x128xbf16>, vector<128x256xbf16>, vector<32x256xf32> -> vector<32x256xf32>
    %cst_7 = arith.constant 0.000000e+00 : f32
    %7 = vector.broadcast %cst_7 : f32 to vector<34x272xf32>
    %c0_8 = arith.constant 0 : index
    %c0_9 = arith.constant 0 : index
    %8 = vector.load %arg9[%c0_8, %c0_9] : memref<34x272xf32, #tpu.memory_space<vmem>>, vector<34x272xf32>
    tpu.vector_store %arg9[%c0_8, %c0_9], %7 {strides = array<i32>} : memref<34x272xf32, #tpu.memory_space<vmem>>, vector<34x272xf32>,
    %c1 = arith.constant 1 : index
    %c8 = arith.constant 8 : index
    %9 = vector.load %arg9[%c1, %c8] : memref<34x272xf32, #tpu.memory_space<vmem>>, vector<32x256xf32>
    tpu.vector_store %arg9[%c1, %c8], %6 {strides = array<i32>} : memref<34x272xf32, #tpu.memory_space<vmem>>, vector<32x256xf32>,
    %c0_10 = arith.constant 0 : index
    %c0_11 = arith.constant 0 : index
    %10 = vector.load %arg9[%c0_10, %c0_11] : memref<34x272xf32, #tpu.memory_space<vmem>>, vector<34x272xf32>
    %cst_12 = arith.constant 0.000000e+00 : f32
    %11 = vector.broadcast %cst_12 : f32 to vector<32x256xf32>
    %12 = vector.extract_strided_slice %10 {offsets = [0, 0], sizes = [32, 256], strides = [1, 1]} : vector<34x272xf32> to vector<32x256xf32>
    %13 = arith.truncf %12 : vector<32x256xf32> to vector<32x256xbf16>
    %c0_13 = arith.constant 0 : index
    %c0_14 = arith.constant 0 : index
    %c0_15 = arith.constant 0 : index
    %14 = vector.load %arg4[%c0_13, %c0_14, %c0_15] : memref<9x256x256xbf16, #tpu.memory_space<vmem>>, vector<1x256x256xbf16>
    %15 = vector.shape_cast %14 : vector<1x256x256xbf16> to vector<256x256xbf16>
    %cst_16 = arith.constant dense<0.000000e+00> : vector<32x256xf32>
    %16 = tpu.matmul %13, %15, %cst_16 {dimension_numbers = #tpu.dot_dimension_numbers<[1], [0], [0], [1], [0, 0, 1, 1], [], []>} : vector<32x256xbf16>, vector<256x256xbf16>, vector<32x256xf32> -> vector<32x256xf32>
    %17 = arith.addf %11, %16 : vector<32x256xf32>
    %18 = vector.extract_strided_slice %10 {offsets = [0, 8], sizes = [32, 256], strides = [1, 1]} : vector<34x272xf32> to vector<32x256xf32>
    %19 = arith.truncf %18 : vector<32x256xf32> to vector<32x256xbf16>
    %c1_17 = arith.constant 1 : index
    %c0_18 = arith.constant 0 : index
    %c0_19 = arith.constant 0 : index
    %20 = vector.load %arg4[%c1_17, %c0_18, %c0_19] : memref<9x256x256xbf16, #tpu.memory_space<vmem>>, vector<1x256x256xbf16>
    %21 = vector.shape_cast %20 : vector<1x256x256xbf16> to vector<256x256xbf16>
    %cst_20 = arith.constant dense<0.000000e+00> : vector<32x256xf32>
    %22 = tpu.matmul %19, %21, %cst_20 {dimension_numbers = #tpu.dot_dimension_numbers<[1], [0], [0], [1], [0, 0, 1, 1], [], []>} : vector<32x256xbf16>, vector<256x256xbf16>, vector<32x256xf32> -> vector<32x256xf32>
    %23 = arith.addf %17, %22 : vector<32x256xf32>
    %24 = vector.extract_strided_slice %10 {offsets = [0, 16], sizes = [32, 256], strides = [1, 1]} : vector<34x272xf32> to vector<32x256xf32>
    %25 = arith.truncf %24 : vector<32x256xf32> to vector<32x256xbf16>
    %c2 = arith.constant 2 : index
    %c0_21 = arith.constant 0 : index
    %c0_22 = arith.constant 0 : index
    %26 = vector.load %arg4[%c2, %c0_21, %c0_22] : memref<9x256x256xbf16, #tpu.memory_space<vmem>>, vector<1x256x256xbf16>
    %27 = vector.shape_cast %26 : vector<1x256x256xbf16> to vector<256x256xbf16>
    %cst_23 = arith.constant dense<0.000000e+00> : vector<32x256xf32>
    %28 = tpu.matmul %25, %27, %cst_23 {dimension_numbers = #tpu.dot_dimension_numbers<[1], [0], [0], [1], [0, 0, 1, 1], [], []>} : vector<32x256xbf16>, vector<256x256xbf16>, vector<32x256xf32> -> vector<32x256xf32>
    %29 = arith.addf %23, %28 : vector<32x256xf32>
    %30 = vector.extract_strided_slice %10 {offsets = [1, 0], sizes = [32, 256], strides = [1, 1]} : vector<34x272xf32> to vector<32x256xf32>
    %31 = arith.truncf %30 : vector<32x256xf32> to vector<32x256xbf16>
    %c3 = arith.constant 3 : index
    %c0_24 = arith.constant 0 : index
    %c0_25 = arith.constant 0 : index
    %32 = vector.load %arg4[%c3, %c0_24, %c0_25] : memref<9x256x256xbf16, #tpu.memory_space<vmem>>, vector<1x256x256xbf16>
    %33 = vector.shape_cast %32 : vector<1x256x256xbf16> to vector<256x256xbf16>
    %cst_26 = arith.constant dense<0.000000e+00> : vector<32x256xf32>
    %34 = tpu.matmul %31, %33, %cst_26 {dimension_numbers = #tpu.dot_dimension_numbers<[1], [0], [0], [1], [0, 0, 1, 1], [], []>} : vector<32x256xbf16>, vector<256x256xbf16>, vector<32x256xf32> -> vector<32x256xf32>
    %35 = arith.addf %29, %34 : vector<32x256xf32>
    %36 = vector.extract_strided_slice %10 {offsets = [1, 8], sizes = [32, 256], strides = [1, 1]} : vector<34x272xf32> to vector<32x256xf32>
    %37 = arith.truncf %36 : vector<32x256xf32> to vector<32x256xbf16>
    %c4 = arith.constant 4 : index
    %c0_27 = arith.constant 0 : index
    %c0_28 = arith.constant 0 : index
    %38 = vector.load %arg4[%c4, %c0_27, %c0_28] : memref<9x256x256xbf16, #tpu.memory_space<vmem>>, vector<1x256x256xbf16>
    %39 = vector.shape_cast %38 : vector<1x256x256xbf16> to vector<256x256xbf16>
    %cst_29 = arith.constant dense<0.000000e+00> : vector<32x256xf32>
    %40 = tpu.matmul %37, %39, %cst_29 {dimension_numbers = #tpu.dot_dimension_numbers<[1], [0], [0], [1], [0, 0, 1, 1], [], []>} : vector<32x256xbf16>, vector<256x256xbf16>, vector<32x256xf32> -> vector<32x256xf32>
    %41 = arith.addf %35, %40 : vector<32x256xf32>
    %42 = vector.extract_strided_slice %10 {offsets = [1, 16], sizes = [32, 256], strides = [1, 1]} : vector<34x272xf32> to vector<32x256xf32>
    %43 = arith.truncf %42 : vector<32x256xf32> to vector<32x256xbf16>
    %c5 = arith.constant 5 : index
    %c0_30 = arith.constant 0 : index
    %c0_31 = arith.constant 0 : index
    %44 = vector.load %arg4[%c5, %c0_30, %c0_31] : memref<9x256x256xbf16, #tpu.memory_space<vmem>>, vector<1x256x256xbf16>
    %45 = vector.shape_cast %44 : vector<1x256x256xbf16> to vector<256x256xbf16>
    %cst_32 = arith.constant dense<0.000000e+00> : vector<32x256xf32>
    %46 = tpu.matmul %43, %45, %cst_32 {dimension_numbers = #tpu.dot_dimension_numbers<[1], [0], [0], [1], [0, 0, 1, 1], [], []>} : vector<32x256xbf16>, vector<256x256xbf16>, vector<32x256xf32> -> vector<32x256xf32>
    %47 = arith.addf %41, %46 : vector<32x256xf32>
    %48 = vector.extract_strided_slice %10 {offsets = [2, 0], sizes = [32, 256], strides = [1, 1]} : vector<34x272xf32> to vector<32x256xf32>
    %49 = arith.truncf %48 : vector<32x256xf32> to vector<32x256xbf16>
    %c6 = arith.constant 6 : index
    %c0_33 = arith.constant 0 : index
    %c0_34 = arith.constant 0 : index
    %50 = vector.load %arg4[%c6, %c0_33, %c0_34] : memref<9x256x256xbf16, #tpu.memory_space<vmem>>, vector<1x256x256xbf16>
    %51 = vector.shape_cast %50 : vector<1x256x256xbf16> to vector<256x256xbf16>
    %cst_35 = arith.constant dense<0.000000e+00> : vector<32x256xf32>
    %52 = tpu.matmul %49, %51, %cst_35 {dimension_numbers = #tpu.dot_dimension_numbers<[1], [0], [0], [1], [0, 0, 1, 1], [], []>} : vector<32x256xbf16>, vector<256x256xbf16>, vector<32x256xf32> -> vector<32x256xf32>
    %53 = arith.addf %47, %52 : vector<32x256xf32>
    %54 = vector.extract_strided_slice %10 {offsets = [2, 8], sizes = [32, 256], strides = [1, 1]} : vector<34x272xf32> to vector<32x256xf32>
    %55 = arith.truncf %54 : vector<32x256xf32> to vector<32x256xbf16>
    %c7 = arith.constant 7 : index
    %c0_36 = arith.constant 0 : index
    %c0_37 = arith.constant 0 : index
    %56 = vector.load %arg4[%c7, %c0_36, %c0_37] : memref<9x256x256xbf16, #tpu.memory_space<vmem>>, vector<1x256x256xbf16>
    %57 = vector.shape_cast %56 : vector<1x256x256xbf16> to vector<256x256xbf16>
    %cst_38 = arith.constant dense<0.000000e+00> : vector<32x256xf32>
    %58 = tpu.matmul %55, %57, %cst_38 {dimension_numbers = #tpu.dot_dimension_numbers<[1], [0], [0], [1], [0, 0, 1, 1], [], []>} : vector<32x256xbf16>, vector<256x256xbf16>, vector<32x256xf32> -> vector<32x256xf32>
    %59 = arith.addf %53, %58 : vector<32x256xf32>
    %60 = vector.extract_strided_slice %10 {offsets = [2, 16], sizes = [32, 256], strides = [1, 1]} : vector<34x272xf32> to vector<32x256xf32>
    %61 = arith.truncf %60 : vector<32x256xf32> to vector<32x256xbf16>
    %c8_39 = arith.constant 8 : index
    %c0_40 = arith.constant 0 : index
    %c0_41 = arith.constant 0 : index
    %62 = vector.load %arg4[%c8_39, %c0_40, %c0_41] : memref<9x256x256xbf16, #tpu.memory_space<vmem>>, vector<1x256x256xbf16>
    %63 = vector.shape_cast %62 : vector<1x256x256xbf16> to vector<256x256xbf16>
    %cst_42 = arith.constant dense<0.000000e+00> : vector<32x256xf32>
    %64 = tpu.matmul %61, %63, %cst_42 {dimension_numbers = #tpu.dot_dimension_numbers<[1], [0], [0], [1], [0, 0, 1, 1], [], []>} : vector<32x256xbf16>, vector<256x256xbf16>, vector<32x256xf32> -> vector<32x256xf32>
    %65 = arith.addf %59, %64 : vector<32x256xf32>
    %c0_43 = arith.constant 0 : index
    %c0_44 = arith.constant 0 : index
    %66 = vector.load %arg5[%c0_43, %c0_44] : memref<1x256xf32, #tpu.memory_space<vmem>>, vector<1x256xf32>
    %67 = vector.broadcast %66 : vector<1x256xf32> to vector<32x256xf32>
    %68 = arith.addf %65, %67 : vector<32x256xf32>
    %cst_45 = arith.constant 0.000000e+00 : f32
    %69 = vector.broadcast %cst_45 : f32 to vector<32x256xf32>
    %70 = arith.maximumf %68, %69 : vector<32x256xf32>
    %c0_46 = arith.constant 0 : index
    %c0_47 = arith.constant 0 : index
    %71 = vector.load %arg6[%c0_46, %c0_47] : memref<1x256xf32, #tpu.memory_space<vmem>>, vector<1x256xf32>
    %72 = vector.broadcast %71 : vector<1x256xf32> to vector<32x256xf32>
    %73 = arith.mulf %70, %72 : vector<32x256xf32>
    %c0_48 = arith.constant 0 : index
    %c0_49 = arith.constant 0 : index
    %74 = vector.load %arg7[%c0_48, %c0_49] : memref<1x256xf32, #tpu.memory_space<vmem>>, vector<1x256xf32>
    %75 = vector.broadcast %74 : vector<1x256xf32> to vector<32x256xf32>
    %76 = arith.addf %73, %75 : vector<32x256xf32>
    %c0_50 = arith.constant 0 : index
    %c0_51 = arith.constant 0 : index
    %c0_52 = arith.constant 0 : index
    %77 = vector.load %arg8[%c0_50, %c0_51, %c0_52] : memref<1x32x256xf32, #tpu.memory_space<vmem>>, vector<1x32x256xf32>
    %78 = vector.shape_cast %77 : vector<1x32x256xf32> to vector<32x256xf32>
    %79 = vector.shape_cast %76 : vector<32x256xf32> to vector<1x32x256xf32>
    tpu.vector_store %arg8[%c0_50, %c0_51, %c0_52], %79 {strides = array<i32>} : memref<1x32x256xf32, #tpu.memory_space<vmem>>, vector<1x32x256xf32>,
    return
  }
  func.func @transform_0(%arg0: i32) -> (i32, i32, i32) {
    %c0_i32 = arith.constant 0 : i32
    %c0_i32_0 = arith.constant 0 : i32
    %c0_i32_1 = arith.constant 0 : i32
    return %arg0, %c0_i32, %c0_i32_0 : i32, i32, i32
  }
  func.func @transform_1(%arg0: i32) -> (i32, i32) {
    %c0_i32 = arith.constant 0 : i32
    %c0_i32_0 = arith.constant 0 : i32
    %c0_i32_1 = arith.constant 0 : i32
    return %c0_i32, %c0_i32_0 : i32, i32
  }
  func.func @transform_2(%arg0: i32) -> (i32, i32) {
    %c0_i32 = arith.constant 0 : i32
    %c0_i32_0 = arith.constant 0 : i32
    %c0_i32_1 = arith.constant 0 : i32
    return %c0_i32, %c0_i32_0 : i32, i32
  }
  func.func @transform_3(%arg0: i32) -> (i32, i32, i32) {
    %c0_i32 = arith.constant 0 : i32
    %c0_i32_0 = arith.constant 0 : i32
    %c0_i32_1 = arith.constant 0 : i32
    %c0_i32_2 = arith.constant 0 : i32
    return %c0_i32, %c0_i32_0, %c0_i32_1 : i32, i32, i32
  }
  func.func @transform_4(%arg0: i32) -> (i32, i32) {
    %c0_i32 = arith.constant 0 : i32
    %c0_i32_0 = arith.constant 0 : i32
    %c0_i32_1 = arith.constant 0 : i32
    return %c0_i32, %c0_i32_0 : i32, i32
  }
  func.func @transform_5(%arg0: i32) -> (i32, i32) {
    %c0_i32 = arith.constant 0 : i32
    %c0_i32_0 = arith.constant 0 : i32
    %c0_i32_1 = arith.constant 0 : i32
    return %c0_i32, %c0_i32_0 : i32, i32
  }
  func.func @transform_6(%arg0: i32) -> (i32, i32) {
    %c0_i32 = arith.constant 0 : i32
    %c0_i32_0 = arith.constant 0 : i32
    %c0_i32_1 = arith.constant 0 : i32
    return %c0_i32, %c0_i32_0 : i32, i32
  }
  func.func @transform_7(%arg0: i32) -> (i32, i32, i32) {
    %c0_i32 = arith.constant 0 : i32
    %c0_i32_0 = arith.constant 0 : i32
    %c0_i32_1 = arith.constant 0 : i32
    return %arg0, %c0_i32, %c0_i32_0 : i32, i32, i32
  }
}

</mosaic_0001>

<bundles_post_ra>
// kernel: tile.33
= control target key start
LH: loop header
LB: loop body
LE: loop exit
PB: predicated region body
PF: predicated region fallthrough
CT: control target
= control target key end

     0   :  { %s28_s0 = inlined_call_operand.vmem [shape: f32[8], index: 0, kind: input, shape index: {}]   ;;  %s29_s1 = inlined_call_operand.vmem [shape: f32[16,8], index: 1, kind: output, shape index: {}]  }
   0x1   :  { %v4_v0 = vld [vmem:[%s28_s0] ss:$0 sm:$0xff] }
   0x2   :  { %5 = vst [vmem:[%s29_s1] sm:$0xff] %v4_v0  ;;  %8 = vst [vmem:[%s29_s1 + $0x8] sm:$0xff] %v4_v0 }

// kernel: tile.34
= control target key start
LH: loop header
LB: loop body
LE: loop exit
PB: predicated region body
PF: predicated region fallthrough
CT: control target
= control target key end

     0   :  { %s131_s10 = smov 120   ;;  %s132_s11 = smov 104   ;;  %vm3_vm0 = vcmask 64512   ;;  %vm9_vm1 = vcmask 1048512   ;;  %vm15_vm2 = vcmask 982912   ;;  %vm21_vm3 = vcmask 917312   ;;  %s207_s0 = inlined_call_operand.vmem [shape: f32[16,8], index: 0, kind: input, shape index: {}]   ;;  %s208_s1 = inlined_call_operand.vmem [shape: f32[1,128], index: 1, kind: output, shape index: {}]  }
   0x1   :  { %v101_v0 = vld [vmem:[%s207_s0 + $0xf] sm:$0x1]   ;;  %v103_v1 = vld [vmem:[%s207_s0 + $0xd] sm:$0x1]   ;;  %v102_v2 = vld [vmem:[%s207_s0 + $0xe] sm:$0x1]  }
   0x2   :  { %7 = vrot.lane.b32.xlu0 %v101_v0, %s131_s10  ;;  %19 = vrot.lane.b32.xlu1 %v103_v1, %s132_s11  ;;  %v104_v3 = vld [vmem:[%s207_s0 + $0xc] sm:$0x1]   ;;  %s133_s16 = smov 112   ;;  %s134_s17 = smov 96   ;;  %v105_v4 = vld [vmem:[%s207_s0 + $0xb] sm:$0x1]  }
   0x3   :  { %v106_v5 = vld [vmem:[%s207_s0 + $0xa] sm:$0x1]   ;;  %v2_v6 = vld [vmem:[%s207_s0] sm:$0x1]   ;;  %s135_s24 = smov 88   ;;  %s136_s25 = smov 80  }
   0x4   :  { %4 = vst.msk [vmem:[#allocation0] sm:$0x1] %vm3_vm0, %v2_v6   ;;  %v107_v7 = vld [vmem:[%s207_s0 + $0x9] sm:$0x1]   ;;  %v108_v8 = vld [vmem:[%s207_s0 + $0x8] sm:$0x1]  }
   0x5   :  { %s137_s30 = smov 72   ;;  %s138_s2 = smov 64   ;;  %v109_v9 = vld [vmem:[%s207_s0 + $0x7] sm:$0x1]   ;;  %v110_v10 = vld [vmem:[%s207_s0 + $0x6] sm:$0x1]  }
   0x6   :  { %13 = vrot.lane.b32.xlu0 %v102_v2, %s133_s16  ;;  %25 = vrot.lane.b32.xlu1 %v104_v3, %s134_s17  ;;  %s139_s7 = smov 56   ;;  %s140_s8 = smov 48   ;;  %v111_v11 = vld [vmem:[%s207_s0 + $0x5] sm:$0x1]   ;;  %v112_v12 = vld [vmem:[%s207_s0 + $0x4] sm:$0x1]  }
   0x7   :  { %s141_s13 = smov 40   ;;  %s142_s14 = smov 32   ;;  %v113_v13 = vld [vmem:[%s207_s0 + $0x3] sm:$0x1]   ;;  %v114_v14 = vld [vmem:[%s207_s0 + $0x2] sm:$0x1]  }
   0x8   :  { %s143_s19 = smov 24   ;;  %s144_s20 = smov 16   ;;  %v115_v15 = vld [vmem:[%s207_s0 + $0x1] sm:$0x1]   ;;  %vm27_vm4 = vcmask 851712   ;;  %vm33_vm5 = vcmask 786112  }
   0x9   :  { %s145_s0 = smov 8   ;;  %vm39_vm6 = vcmask 720512   ;;  %vm45_vm7 = vcmask 654912   ;;  %vm51_vm8 = vcmask 589312   ;;  %vm57_vm9 = vcmask 523712  }
   0xa   :  { %31 = vrot.lane.b32.xlu0 %v105_v4, %s135_s24  ;;  %37 = vrot.lane.b32.xlu1 %v106_v5, %s136_s25  ;;  %vm63_vm10 = vcmask 458112   ;;  %vm69_vm11 = vcmask 392512   ;;  %vm75_vm12 = vcmask 326912   ;;  %vm81_vm13 = vcmask 261312  }
   0xb   :  { %vm87_vm14 = vcmask 195712   ;;  %vm93_vm15 = vcmask 130112  }
   0xe   :  { %43 = vrot.lane.b32.xlu0 %v107_v7, %s137_s30  ;;  %49 = vrot.lane.b32.xlu1 %v108_v8, %s138_s2 }
  0x12   :  { %55 = vrot.lane.b32.xlu0 %v109_v9, %s139_s7  ;;  %61 = vrot.lane.b32.xlu1 %v110_v10, %s140_s8 }
  0x16   :  { %67 = vrot.lane.b32.xlu0 %v111_v11, %s141_s13  ;;  %73 = vrot.lane.b32.xlu1 %v112_v12, %s142_s14 }
  0x1a   :  { %79 = vrot.lane.b32.xlu0 %v113_v13, %s143_s19  ;;  %85 = vrot.lane.b32.xlu1 %v114_v14, %s144_s20 }
  0x1e   :  { %91 = vrot.lane.b32.xlu0 %v115_v15, %s145_s0 }
  0x74   :  { %v8_v16 = vpop.permute.xlu0 %7   ;;  %v20_v17 = vpop.permute.xlu1 %19  }
  0x75   :  { %10 = vst.msk [vmem:[#allocation0] sm:$0x1] %vm9_vm1, %v8_v16  }
  0x78   :  { %v14_v18 = vpop.permute.xlu0 %13   ;;  %v26_v19 = vpop.permute.xlu1 %25  }
  0x79   :  { %16 = vst.msk [vmem:[#allocation0] sm:$0x1] %vm15_vm2, %v14_v18  }
  0x7a   :  { %22 = vst.msk [vmem:[#allocation0] sm:$0x1] %vm21_vm3, %v20_v17  }
  0x7b   :  { %28 = vst.msk [vmem:[#allocation0] sm:$0x1] %vm27_vm4, %v26_v19  }
  0x7c   :  { %v32_v20 = vpop.permute.xlu0 %31   ;;  %v38_v21 = vpop.permute.xlu1 %37  }
  0x7d   :  { %34 = vst.msk [vmem:[#allocation0] sm:$0x1] %vm33_vm5, %v32_v20  }
  0x7e   :  { %40 = vst.msk [vmem:[#allocation0] sm:$0x1] %vm39_vm6, %v38_v21  }
  0x80   :  { %v44_v22 = vpop.permute.xlu0 %43   ;;  %v50_v23 = vpop.permute.xlu1 %49  }
  0x81   :  { %46 = vst.msk [vmem:[#allocation0] sm:$0x1] %vm45_vm7, %v44_v22  }
  0x82   :  { %52 = vst.msk [vmem:[#allocation0] sm:$0x1] %vm51_vm8, %v50_v23  }
  0x84   :  { %v56_v24 = vpop.permute.xlu0 %55   ;;  %v62_v25 = vpop.permute.xlu1 %61  }
  0x85   :  { %58 = vst.msk [vmem:[#allocation0] sm:$0x1] %vm57_vm9, %v56_v24  }
  0x86   :  { %64 = vst.msk [vmem:[#allocation0] sm:$0x1] %vm63_vm10, %v62_v25  }
  0x88   :  { %v68_v26 = vpop.permute.xlu0 %67   ;;  %v74_v27 = vpop.permute.xlu1 %73  }
  0x89   :  { %70 = vst.msk [vmem:[#allocation0] sm:$0x1] %vm69_vm11, %v68_v26  }
  0x8a   :  { %76 = vst.msk [vmem:[#allocation0] sm:$0x1] %vm75_vm12, %v74_v27  }
  0x8c   :  { %v80_v28 = vpop.permute.xlu0 %79   ;;  %v86_v29 = vpop.permute.xlu1 %85  }
  0x8d   :  { %82 = vst.msk [vmem:[#allocation0] sm:$0x1] %vm81_vm13, %v80_v28  }
  0x8e   :  { %88 = vst.msk [vmem:[#allocation0] sm:$0x1] %vm87_vm14, %v86_v29  }
  0x90   :  { %v92_v30 = vpop.permute.xlu0 %91  }
  0x91   :  { %94 = vst.msk [vmem:[#allocation0] sm:$0x1] %vm93_vm15, %v92_v30  }
  0x98   :  { %v98_v31 = vld [vmem:[#allocation0] sm:$0x1] }
  0x99   :  { %100 = vst [vmem:[%s208_s1] sm:$0x1] %v98_v31 }

// kernel: aspp_block_forward.2
= control target key start
LH: loop header
LB: loop body
LE: loop exit
PB: predicated region body
PF: predicated region fallthrough
CT: control target
= control target key end

     0   :  { %s4778_s18 = smov 0   ;;  %s5648_s0 = inlined_call_operand.vmem [shape: bf16[2,16,64], index: 0, kind: input, shape index: {}]   ;;  %s5649_s1 = inlined_call_operand.vmem [shape: bf16[36,64,128], index: 1, kind: input, shape index: {}]   ;;  %s5650_s2 = inlined_call_operand.vmem [shape: f32[1,128], index: 2, kind: input, shape index: {}]   ;;  %s5651_s3 = inlined_call_operand.vmem [shape: f32[1,128], index: 3, kind: input, shape index: {}]   ;;  %s5652_s4 = inlined_call_operand.vmem [shape: f32[1,128], index: 4, kind: input, shape index: {}]   ;;  %s5653_s5 = inlined_call_operand.vmem [shape: bf16[2,16,128], index: 5, kind: output, shape index: {}]  }
   0x1 LB: > { %s3457_s19 = sadd.s32 4294967295, %s4734_s18   ;;  %p3461_p0 = scmp.ge.s32.totalorder %s4734_s18, 1  ;;  %s4734_s18 = sphi %s4778_s18, %s15_s18  }
   0x2   : > { %p187_p1 = scmp.lt.s32.totalorder %s4734_s18, 3 }
   0x4   : > { %p188_p2 = pnand %p3461_p0, %p187_p1 }
   0x5   : > { %p4786_p3 = scmp.lt.s32.totalorder (!%p188_p2), %s3457_s19, 1  ;;  %vm227_vm0 = vcmask (!%p188_p2), 654336   ;;  %v4736_v0 = vmov (!%p188_p2), 0.0   ;;  %vm248_vm1 = vcmask (!%p188_p2), 1041408   ;;  %s4737_s25 = smov (!%p188_p2), 72   ;;  %vm240_vm2 = vcmask (!%p188_p2), 650240  }
   0x6   : > { %191 = sbr.rel (%p188_p2) target bundleno = 783 (0x30f), region = 40  ;;  %228 = vst.msk [vmem:[#allocation2 + $0x8] sm:$0xff] (!%p188_p2), %vm227_vm0, %v4736_v0  ;;  %230 = vst.msk [vmem:[#allocation2 + $0x18] sm:$0xff] (!%p188_p2), %vm227_vm0, %v4736_v0  ;;  %4126 = vmatprep.subr.bf16.mxu0 (!%p188_p2), %v4736_v0  ;;  %4138 = vmatprep.subr.bf16.mxu1 (!%p188_p2), %v4736_v0  ;;  %v4582_v8 = vld [vmem:[%s5649_s1 + $0x20] sm:$0xff] (!%p188_p2)   ;;  %v4583_v10 = vld [vmem:[%s5649_s1 + $0x28] sm:$0xff] (!%p188_p2)   ;;  %vm261_vm3 = vcmask (!%p188_p2), 1048130  }
   0x7   : > { %231 = vst [vmem:[#allocation2 + $0x20] sm:$0xff] (!%p188_p2), %v4736_v0  ;;  %232 = vst.msk [vmem:[#allocation2 + $0x28] sm:$0xff] (!%p188_p2), %vm227_vm0, %v4736_v0  ;;  %v4584_v9 = vld [vmem:[%s5649_s1] sm:$0xff] (!%p188_p2)   ;;  %4127 = vmatpush3.bf16.msra.mxu0 (!%p188_p2), %v4582_v8  ;;  %v4586_v11 = vld [vmem:[%s5649_s1 + $0x8] sm:$0xff] (!%p188_p2)   ;;  %vm263_vm4 = vcmask (!%p188_p2), 64514   ;;  %vm265_vm5 = vcmask (!%p188_p2), 1048128  }
   0x8   : > { %233 = vst [vmem:[#allocation2 + $0x30] sm:$0xff] (!%p188_p2), %v4736_v0  ;;  %234 = vst.msk [vmem:[#allocation2 + $0x38] sm:$0xff] (!%p188_p2), %vm227_vm0, %v4736_v0  ;;  %4139 = vmatpush3.bf16.msra.mxu1 (!%p188_p2), %v4584_v9  ;;  %4128 = vmatprep.subr.bf16.mxu0 (!%p188_p2), %v4736_v0  ;;  %v4585_v12 = vld [vmem:[%s5649_s1 + $0x30] sm:$0xff] (!%p188_p2)   ;;  %vm267_vm6 = vcmask (!%p188_p2), 64512   ;;  %vm269_vm7 = vcmask (!%p188_p2), 1041984   ;;  %vm271_vm8 = vcmask (!%p188_p2), 58368  }
   0x9   : > { %238 = vst.msk [vmem:[#allocation2 + $0x58] sm:$0xff] (!%p188_p2), %vm227_vm0, %v4736_v0  ;;  %226 = vst [vmem:[#allocation2] sm:$0xff] (!%p188_p2), %v4736_v0  ;;  %4140 = vmatprep.subr.bf16.mxu1 (!%p188_p2), %v4736_v0  ;;  %v4587_v17 = vld [vmem:[%s5649_s1 + $0x38] sm:$0xff] (!%p188_p2)   ;;  %v4588_v18 = vld [vmem:[%s5649_s1 + $0x10] sm:$0xff] (!%p188_p2)   ;;  %vm308_vm9 = vsmask.f32 (!%p188_p2), 7424 }
   0xa   : > { %235 = vst [vmem:[#allocation2 + $0x40] sm:$0xff] (!%p188_p2), %v4736_v0  ;;  %236 = vst.msk [vmem:[#allocation2 + $0x48] sm:$0xff] (!%p188_p2), %vm227_vm0, %v4736_v0  ;;  %v4589_v27 = vld [vmem:[%s5649_s1 + $0x18] sm:$0xff] (!%p188_p2)   ;;  %s4738_s17 = smov (!%p188_p2), 60   ;;  %s4739_s20 = smov (!%p188_p2), 56   ;;  %vm580_vm10 = vcmask (!%p188_p2), 1046528  }
   0xb   : > { %239 = vst [vmem:[#allocation2 + $0x60] sm:$0xf] (!%p188_p2), %v4736_v0  ;;  %241 = vst.msk [vmem:[#allocation2 + $0x68] sm:$0xf] (!%p188_p2), %vm240_vm2, %v4736_v0  ;;  %4129 = vmatpush3.bf16.msra.mxu0 (!%p188_p2), %v4583_v10  ;;  %s4740_s22 = smov (!%p188_p2), 52   ;;  %vm4741_vm11 = vmmov (!%p188_p2), 0  }
   0xc   : > { %4141 = vmatpush3.bf16.msra.mxu1 (!%p188_p2), %v4586_v11  ;;  %4130 = vmatprep.subr.bf16.mxu0 (!%p188_p2), %v4736_v0  ;;  %vm1114_vm12 = vcmask (!%p188_p2), 1045504   ;;  %vm839_vm13 = vsmask.f32 (!%p188_p2), 6400  ;;  %s4742_s23 = smov (!%p188_p2), 80   ;;  %vm1873_vm14 = vcmask (!%p188_p2), 1044480   ;;  %s4746_s26 = smov (!%p188_p2), 104  }
   0xd   : > { %s5656_s19 = smov (!%p4786_p3, %s3457_s19), 1  ;;  %4142 = vmatprep.subr.bf16.mxu1 %v4736_v0  ;;  %4134 = vmatprep.mubr.msk.bf16.mxu0 %vm4741_vm11, %v4736_v0  ;;  %v276_v10 = vld [vmem:[#allocation2 + $0x18] sm:$0xff]  ;;  %s4747_s27 = smov 112   ;;  %vm337_vm15 = vcmask 457728   ;;  %vm363_vm0 = vcmask 523264   ;;  %vm495_vm2 = vcmask 424960  }
   0xe   : > { %s3933_s21 = sshll.u32 %s5656_s19, 3  ;;  %4146 = vmatprep.mubr.msk.bf16.mxu1 %vm4741_vm11, %v4736_v0 }
   0xf   : > { %s219_s24 = scalar_lea.vmem %s5648_s0, %s3933_s21  ;;  %4131 = vmatpush3.bf16.msra.mxu0 %v4585_v12 }
  0x10   : > { %v3938_v1 = vld [vmem:[%s219_s24] sm:$0xff]   ;;  %4132 = vmatprep.subr.bf16.mxu0 %v4736_v0  ;;  %4143 = vmatpush3.bf16.msra.mxu1 %v4588_v18  ;;  %v4874_v45 = vld [vmem:[#allocation2 + $0x58] sm:$0xff]  ;;  %s4743_s24 = smov 32  }
  0x11   : > { %v3939_v2 = vunpack.c.l.bf16 %v3938_v1  ;;  %v3940_v3 = vunpack.c.h.bf16 %v3938_v1  ;;  %4144 = vmatprep.subr.bf16.mxu1 %v4736_v0 }
  0x12   : > { %v286_v40 = vld [vmem:[#allocation2 + $0x68] sm:$0xf] }
  0x13   : > { %v249_v4 = vrot.slane %v3939_v2, 6  ;;  %v250_v5 = vrot.slane %v3940_v3, 6  ;;  %4133 = vmatpush3.bf16.msra.mxu0 %v4587_v17  ;;  %v3192_v44 = vpack.c.bf16 %v286_v40, %v286_v40  ;;  %v285_v40 = vld [vmem:[#allocation2 + $0x60] sm:$0xf] }
  0x14   : > { %4150 = vmatprep.subr.bf16.mxu0 %v4736_v0  ;;  %4145 = vmatpush3.bf16.msra.mxu1 %v4589_v27 }
  0x15   : > { %v251_v6 = vsel %vm248_vm1, %v249_v4, %v250_v5  ;;  %4162 = vmatprep.subr.bf16.mxu1 %v4736_v0  ;;  %v3205_v50 = vrot.slane %v3192_v44, 2  ;;  %vm412_vm1 = vcmask 490496  }
  0x16   : > { %v4577_v7 = vpack.i.bf16 %v251_v6, %v249_v4 }
  0x18   : > { %4578 = vrot.lane.b32.xlu0 %v4577_v7, %s4737_s25 }
  0x1c   : > { %256 = vrot.lane.b32.xlu0 %v250_v5, %s4737_s25  ;;  %s4745_s25 = smov 8  }
  0x8a   : > { %v4579_v13 = vpop.permute.xlu0 %4578 }
  0x8b   : > { %v4581_v14 = vunpack.i.h.bf16 %v4579_v13  ;;  %v4580_v15 = vunpack.i.l.bf16 %v4579_v13 }
  0x8d   : > { %266 = vst.msk [vmem:[#allocation2 + $0x30] sm:$0xff] %vm265_vm5, %v4581_v14 }
  0x8e   : > { %268 = vst.msk [vmem:[#allocation2 + $0x38] sm:$0xff] %vm267_vm6, %v4581_v14  ;;  %v257_v16 = vpop.permute.xlu0 %256 }
  0x8f   : > { %262 = vst.msk [vmem:[#allocation2 + $0x20] sm:$0xfc] %vm261_vm3, %v4580_v15  ;;  %vm1294_vm3 = vcmask 261120  }
  0x90   : > { %264 = vst.msk [vmem:[#allocation2 + $0x28] sm:$0xfc] %vm263_vm4, %v4580_v15 }
  0x91   : > { %270 = vst.msk [vmem:[#allocation2 + $0x40] sm:$0x3] %vm269_vm7, %v257_v16 }
  0x92   : > { %272 = vst.msk [vmem:[#allocation2 + $0x48] sm:$0x3] %vm271_vm8, %v257_v16 }
  0x94   : > { %v4845_v20 = vld [vmem:[#allocation2 + $0x30] sm:$0xff] }
  0x95   : > { %v4851_v23 = vld [vmem:[#allocation2 + $0x38] sm:$0xff]  ;;  %v1102_v9 = vpack.c.bf16 %v4845_v20, %v4845_v20 }
  0x96   : > { %v4843_v19 = vld [vmem:[#allocation2 + $0x20] sm:$0xff]  ;;  %v1191_v16 = vpack.c.bf16 %v4851_v23, %v4851_v23 }
  0x97   : > { %v4847_v21 = vld [vmem:[#allocation2 + $0x28] sm:$0xff]  ;;  %v287_v22 = vpack.c.bf16 %v4845_v20, %v4843_v19  ;;  %v1101_v8 = vpack.c.bf16 %v4843_v19, %v4736_v0  ;;  %v1116_v15 = vrot.slane %v1102_v9, 2  ;;  %v4603_v9 = vld [vmem:[%s5649_s1 + $0x98] sm:$0xff]  }
  0x98   : > { %v4853_v24 = vld [vmem:[#allocation2 + $0x40] sm:$0xff]  ;;  %v4859_v26 = vpack.c.bf16 %v4851_v23, %v4847_v21  ;;  %v1190_v12 = vpack.c.bf16 %v4847_v21, %v276_v10 }
  0x99   : > { %v4855_v25 = vld [vmem:[#allocation2 + $0x48] sm:$0xff]  ;;  %v289_v28 = vpack.c.bf16 %v4853_v24, %v4853_v24  ;;  %v312_v29 = vshll.u32 %v287_v22, 16  ;;  %v310_v32 = vshrl.u32 %v287_v22, 16  ;;  %v581_v48 = vrot.slane %v287_v22, 1 }
  0x9a   : > { %v290_v30 = vpack.c.bf16 %v4855_v25, %v4855_v25  ;;  %v324_v31 = vshll.u32 %v4859_v26, 16  ;;  %v322_v39 = vshrl.u32 %v4859_v26, 16  ;;  %v3191_v49 = vpack.c.bf16 %v4874_v45, %v4855_v25 }
  0x9b   : > { %v314_v33 = vrot.slane %v312_v29, 1  ;;  %v317_v34 = vshll.u32 %v289_v28, 16  ;;  %v582_v46 = vrot.slane %v289_v28, 1  ;;  %v843_v52 = vshrl.u32 %v289_v28, 16 }
  0x9c   : > { %v326_v35 = vrot.slane %v324_v31, 1  ;;  %v329_v36 = vshll.u32 %v290_v30, 16  ;;  %v3204_v53 = vrot.slane %v3191_v49, 2  ;;  %v585_v55 = vrot.slane %v290_v30, 1  ;;  %v4591_v49 = vld [vmem:[%s5649_s1 + $0x48] sm:$0xff]  }
  0x9d   : > { %v315_v37 = vor.u32 %v314_v33, %v310_v32  ;;  %v319_v38 = vrot.slane %v317_v34, 1  ;;  %v4882_v51 = vsel %vm580_vm10, %v581_v48, %v582_v46  ;;  %v845_v56 = vrot.slane %v843_v52, 1  ;;  %v274_v33 = vld [vmem:[#allocation2 + $0x8] sm:$0xff]  ;;  %v4980_v52 = vld [vmem:[#allocation2] sm:$0xff] }
  0x9e   : > { %v327_v42 = vor.u32 %v326_v35, %v322_v39  ;;  %v331_v43 = vrot.slane %v329_v36, 1  ;;  %v4892_v54 = vsel %vm1114_vm12, %v3204_v53, %v3205_v50  ;;  %v846_v57 = vrot.slane %v317_v34, 2  ;;  %v4592_v50 = vld [vmem:[%s5649_s1 + $0x60] sm:$0xff]  }
  0x9f   : > { %v320_v41 = vsel %vm308_vm9, %v315_v37, %v319_v38  ;;  %v584_v58 = vrot.slane %v4859_v26, 1  ;;  %v840_v59 = vrot.slane %v310_v32, 1  ;;  %v841_v60 = vrot.slane %v312_v29, 2 }
  0xa0   : > { %408 = vrot.lane.b32.xlu0 %v320_v41, %s4738_s17  ;;  %333 = vrot.lane.b32.xlu1 %v320_v41, %s4739_s20  ;;  %v332_v47 = vsel %vm308_vm9, %v327_v42, %v331_v43  ;;  %v847_v62 = vor.u32 %v846_v57, %v845_v56  ;;  %v852_v63 = vshrl.u32 %v290_v30, 16  ;;  %v855_v4 = vrot.slane %v329_v36, 2  ;;  %v4593_v56 = vld [vmem:[%s5649_s1 + $0x50] sm:$0xff]   ;;  %v4594_v57 = vld [vmem:[%s5649_s1 + $0x68] sm:$0xff]  }
  0xa1   : > { %v4899_v61 = vsel %vm580_vm10, %v584_v58, %v585_v55  ;;  %v842_v1 = vor.u32 %v841_v60, %v840_v59  ;;  %v849_v5 = vrot.slane %v322_v39, 1  ;;  %v850_v6 = vrot.slane %v324_v31, 2  ;;  %v4595_v58 = vld [vmem:[%s5649_s1 + $0x58] sm:$0xff]   ;;  %v4596_v59 = vld [vmem:[%s5649_s1 + $0x70] sm:$0xff]  }
  0xa2   : > { %v854_v3 = vrot.slane %v852_v63, 1  ;;  %v1115_v14 = vrot.slane %v1101_v8, 2  ;;  %v1203_v18 = vrot.slane %v1190_v12, 2  ;;  %v1204_v22 = vrot.slane %v1191_v16, 2  ;;  %v4598_v63 = vld [vmem:[%s5649_s1 + $0x80] sm:$0xff]   ;;  %v4602_v8 = vld [vmem:[%s5649_s1 + $0xa8] sm:$0xff]  }
  0xa3   : > { %v848_v2 = vsel %vm839_vm13, %v842_v1, %v847_v62  ;;  %v851_v11 = vor.u32 %v850_v6, %v849_v5  ;;  %v1607_v27 = vpack.c.bf16 %v4853_v24, %v4845_v20  ;;  %v1690_v28 = vpack.c.bf16 %v4855_v25, %v4851_v23  ;;  %v4597_v62 = vld [vmem:[%s5649_s1 + $0x78] sm:$0xff]  }
  0xa4   : > { %491 = vrot.lane.b32.xlu0 %v320_v41, %s4740_s22  ;;  %335 = vrot.lane.b32.xlu1 %v332_v47, %s4739_s20  ;;  %v856_v7 = vor.u32 %v855_v4, %v854_v3  ;;  %v1117_v17 = vsel %vm1114_vm12, %v1115_v14, %v1116_v15  ;;  %v1205_v26 = vsel %vm1114_vm12, %v1203_v18, %v1204_v22  ;;  %v4744_v30 = vmov 0.0|0.0   ;;  %v4599_v3 = vld [vmem:[%s5649_s1 + $0x88] sm:$0xff]   ;;  %v4600_v4 = vld [vmem:[%s5649_s1 + $0xa0] sm:$0xff]  }
  0xa5   : > { %v1861_v29 = vpack.c.bf16 %v4843_v19, %v4843_v19  ;;  %v1874_v31 = vrot.slane %v4744_v30, 3  ;;  %v1949_v20 = vpack.c.bf16 %v276_v10, %v274_v33  ;;  %v1950_v23 = vpack.c.bf16 %v4847_v21, %v4847_v21  ;;  %v4604_v10 = vld [vmem:[%s5649_s1 + $0xb0] sm:$0xff]   ;;  %v4606_v14 = vld [vmem:[%s5649_s1 + $0xc0] sm:$0xff]  }
  0xa6   : > { %v857_v13 = vsel %vm839_vm13, %v851_v11, %v856_v7  ;;  %v2377_v36 = vrot.slane %v1607_v27, 3  ;;  %v2452_v37 = vpack.c.bf16 %v4874_v45, %v4874_v45  ;;  %v2463_v38 = vrot.slane %v1690_v28, 3  ;;  %v4601_v7 = vld [vmem:[%s5649_s1 + $0x90] sm:$0xff]   ;;  %v4608_v18 = vld [vmem:[%s5649_s1 + $0xe0] sm:$0xff]  }
  0xa7   : > { %v1875_v32 = vrot.slane %v1861_v29, 3  ;;  %v1962_v19 = vrot.slane %v1949_v20, 3  ;;  %v1963_v25 = vrot.slane %v1950_v23, 3  ;;  %v3105_v42 = vpack.c.bf16 %v4736_v0, %v4853_v24  ;;  %v4590_v24 = vld [vmem:[%s5649_s1 + $0x40] sm:$0xff]   ;;  %v4611_v29 = vld [vmem:[%s5649_s1 + $0xd8] sm:$0xff]  }
  0xa8   : > { %587 = vrot.lane.b32.xlu0 %v4882_v51, %s4738_s17  ;;  %410 = vrot.lane.b32.xlu1 %v332_v47, %s4738_s17  ;;  %v2379_v21 = vsel %vm1873_vm14, %v2377_v36, %v1874_v31  ;;  %v2464_v39 = vrot.slane %v2452_v37, 3  ;;  %v3106_v43 = vpack.c.bf16 %v285_v40, %v285_v40  ;;  %v4617_v37 = vld [vmem:[%s5649_s1 + $0x110] sm:$0xff]  }
  0xa9   : > { %v1876_v34 = vsel %vm1873_vm14, %v1874_v31, %v1875_v32  ;;  %v1964_v35 = vsel %vm1873_vm14, %v1962_v19, %v1963_v25  ;;  %v3118_v44 = vrot.slane %v3105_v42, 2  ;;  %v4612_v31 = vld [vmem:[%s5649_s1 + $0xf0] sm:$0xff]   ;;  %v4615_v25 = vld [vmem:[%s5649_s1 + $0x108] sm:$0xff]  }
  0xaa   : > { %v2465_v41 = vsel %vm1873_vm14, %v2463_v38, %v2464_v39  ;;  %v3119_v45 = vrot.slane %v3106_v43, 2  ;;  %v4618_v38 = vld [vmem:[%s5649_s1 + $0x128] sm:$0xff]   ;;  %v4619_v39 = vld [vmem:[%s5649_s1 + $0x118] sm:$0xff]   ;;  %v4620_v40 = vld [vmem:[%s5649_s1 + $0x130] sm:$0xff]  }
  0xab   : > { %v4621_v43 = vld [vmem:[%s5649_s1 + $0x138] sm:$0xff]  }
  0xac   : > { %671 = vrot.lane.b32.xlu0 %v4882_v51, %s4739_s20  ;;  %493 = vrot.lane.b32.xlu1 %v332_v47, %s4740_s22  ;;  %v4960_v46 = vsel %vm1114_vm12, %v3118_v44, %v3119_v45  ;;  %v4622_v44 = vld [vmem:[%s5649_s1 + $0x140] sm:$0xff]  }
  0xb0   : > { %755 = vrot.lane.b32.xlu0 %v4882_v51, %s4740_s22  ;;  %589 = vrot.lane.b32.xlu1 %v4899_v61, %s4738_s17 }
  0xb4   : > { %858 = vrot.lane.b32.xlu0 %v848_v2, %s4738_s17  ;;  %673 = vrot.lane.b32.xlu1 %v4899_v61, %s4739_s20 }
  0xb8   : > { %942 = vrot.lane.b32.xlu0 %v848_v2, %s4739_s20  ;;  %757 = vrot.lane.b32.xlu1 %v4899_v61, %s4740_s22 }
  0xbc   : > { %1026 = vrot.lane.b32.xlu0 %v848_v2, %s4740_s22  ;;  %860 = vrot.lane.b32.xlu1 %v857_v13, %s4738_s17 }
  0xc0   : > { %1118 = vrot.lane.b32.xlu0 %v1117_v17, %s4742_s23  ;;  %944 = vrot.lane.b32.xlu1 %v857_v13, %s4739_s20 }
  0xc4   : > { %1208 = vrot.lane.b32.xlu0 %v1205_v26, %s4739_s20  ;;  %1028 = vrot.lane.b32.xlu1 %v857_v13, %s4740_s22  ;;  %v4605_v13 = vld [vmem:[%s5649_s1 + $0xb8] sm:$0xff]   ;;  %s224_s22 = scalar_lea.vmem %s5653_s5, %s3933_s21 }
  0xc8   : > { %1292 = vrot.lane.b32.xlu0 %v1205_v26, %s4743_s24  ;;  %1206 = vrot.lane.b32.xlu1 %v1117_v17, %s4739_s20 }
  0xcc   : > { %1532 = vrot.lane.b32.xlu0 %v4882_v51, %s4743_s24  ;;  %1290 = vrot.lane.b32.xlu1 %v1117_v17, %s4743_s24  ;;  %v4607_v17 = vld [vmem:[%s5649_s1 + $0xc8] sm:$0xff]  }
  0xd0   : > { %1618 = vrot.lane.b32.xlu0 %v1607_v27, %s4742_s23  ;;  %1375 = vrot.lane.b32.xlu1 %v4882_v51, %s4742_s23 }
  0xd4   : > { %1703 = vrot.lane.b32.xlu0 %v1690_v28, %s4739_s20  ;;  %1534 = vrot.lane.b32.xlu1 %v4899_v61, %s4743_s24 }
  0xd8   : > { %1787 = vrot.lane.b32.xlu0 %v1690_v28, %s4743_s24  ;;  %1701 = vrot.lane.b32.xlu1 %v1607_v27, %s4739_s20  ;;  %v4610_v28 = vld [vmem:[%s5649_s1 + $0xe8] sm:$0xff]  }
  0xdc   : > { %1965 = vrot.lane.b32.xlu0 %v1876_v34, %s4739_s20  ;;  %1785 = vrot.lane.b32.xlu1 %v1607_v27, %s4743_s24  ;;  %v4609_v27 = vld [vmem:[%s5649_s1 + $0xd0] sm:$0xff]  }
  0xe0   : > { %2049 = vrot.lane.b32.xlu0 %v1876_v34, %s4745_s25  ;;  %1877 = vrot.lane.b32.xlu1 %v1876_v34, %s4746_s26  ;;  %v4614_v34 = vld [vmem:[%s5649_s1 + $0x100] sm:$0xff]  }
  0xe4   : > { %2134 = vrot.lane.b32.xlu0 %v4882_v51, %s4746_s26  ;;  %1967 = vrot.lane.b32.xlu1 %v1964_v35, %s4739_s20 }
  0xe8   : > { %2293 = vrot.lane.b32.xlu0 %v4899_v61, %s4745_s25  ;;  %2051 = vrot.lane.b32.xlu1 %v1964_v35, %s4745_s25  ;;  %v4616_v35 = vld [vmem:[%s5649_s1 + $0x120] sm:$0xff]  }
  0xec   : > { %2466 = vrot.lane.b32.xlu0 %v2379_v21, %s4739_s20  ;;  %2291 = vrot.lane.b32.xlu1 %v4882_v51, %s4745_s25 }
  0xf0   : > { %2550 = vrot.lane.b32.xlu0 %v2379_v21, %s4745_s25  ;;  %2380 = vrot.lane.b32.xlu1 %v2379_v21, %s4746_s26 }
  0xf4   : > { %2713 = vrot.lane.b32.xlu0 %v4744_v30, %s4739_s20  ;;  %2468 = vrot.lane.b32.xlu1 %v2465_v41, %s4739_s20 }
  0xf8   : > { %2797 = vrot.lane.b32.xlu0 %v1949_v20, %s4747_s27  ;;  %2552 = vrot.lane.b32.xlu1 %v2465_v41, %s4745_s25 }
  0xfc   : > { %3207 = vrot.lane.b32.xlu0 %v4960_v46, %s4739_s20  ;;  %2715 = vrot.lane.b32.xlu1 %v1949_v20, %s4739_s20  ;;  %v4613_v20 = vld [vmem:[%s5649_s1 + $0xf8] sm:$0xff]  }
 0x100   : > { %3291 = vrot.lane.b32.xlu0 %v4892_v54, %s4747_s27  ;;  %3033 = vrot.lane.b32.xlu1 %v4899_v61, %s4747_s27 }
 0x104   : > { %3209 = vrot.lane.b32.xlu1 %v4892_v54, %s4739_s20 }
 0x112   : > { %v334_v0 = vpop.permute.xlu1 %333  ;;  %v409_v53 = vpop.permute.xlu0 %408 }
 0x116   : > { %v336_v47 = vpop.permute.xlu1 %335  ;;  %v492_v61 = vpop.permute.xlu0 %491 }
 0x117   : > { %v338_v48 = vsel %vm337_vm15, %v334_v0, %v336_v47  ;;  %v4623_v0 = vld [vmem:[%s5649_s1 + $0x148] sm:$0xff]  }
 0x118   : > { %4135 = vmatmul.mubr.msk.bf16.vlgmr.msra.gmra.mrb[0].mxu0 %vm363_vm0, %v338_v48  ;;  %v4625_v48 = vld [vmem:[%s5649_s1 + $0x150] sm:$0xff]  }
 0x119   : > { %4151 = vmatpush3.bf16.msra.mxu0 %v4590_v24  ;;  %4158 = vmatprep.mubr.msk.bf16.mxu0 %vm4741_vm11, %v4980_v52  ;;  %v4624_v24 = vld [vmem:[%s5649_s1 + $0x160] sm:$0xff]  }
 0x11a   : > { %v411_v54 = vpop.permute.xlu1 %410  ;;  %4152 = vmatprep.subr.bf16.mxu0 %v4980_v52  ;;  %v588_v5 = vpop.permute.xlu0 %587 }
 0x11b   : > { %v413_v55 = vsel %vm412_vm1, %v409_v53, %v411_v54  ;;  %v4628_v53 = vld [vmem:[%s5649_s1 + $0x170] sm:$0xff]  }
 0x11c   : > { %4147 = vmatmul.mubr.msk.bf16.vlgmr.msra.gmra.mrb[0].mxu1 %vm363_vm0, %v413_v55 }
 0x11d   : > { %4153 = vmatpush3.bf16.msra.mxu0 %v4591_v49  ;;  %4163 = vmatpush3.bf16.msra.mxu1 %v4592_v50  ;;  %v4626_v49 = vld [vmem:[%s5649_s1 + $0x168] sm:$0xff]   ;;  %v4627_v50 = vld [vmem:[%s5649_s1 + $0x158] sm:$0xff]  }
 0x11e   : > { %4154 = vmatprep.subr.bf16.mxu0 %v4980_v52  ;;  %4164 = vmatprep.subr.bf16.mxu1 %v4980_v52  ;;  %v494_v60 = vpop.permute.xlu1 %493  ;;  %v672_v12 = vpop.permute.xlu0 %671 }
 0x11f   : > { %4170 = vmatprep.mubr.msk.bf16.mxu1 %vm4741_vm11, %v4980_v52  ;;  %v496_v1 = vsel %vm495_vm2, %v492_v61, %v494_v60  ;;  %v4631_v60 = vld [vmem:[%s5649_s1 + $0x188] sm:$0xff]   ;;  %v4632_v61 = vld [vmem:[%s5649_s1 + $0x1a0] sm:$0xff]  }
 0x121   : > { %4155 = vmatpush3.bf16.msra.mxu0 %v4593_v56  ;;  %4165 = vmatpush3.bf16.msra.mxu1 %v4594_v57  ;;  %v4629_v56 = vld [vmem:[%s5649_s1 + $0x178] sm:$0xff]   ;;  %v4630_v57 = vld [vmem:[%s5649_s1 + $0x180] sm:$0xff]  }
 0x122   : > { %4156 = vmatprep.subr.bf16.mxu0 %v4980_v52  ;;  %4166 = vmatprep.subr.bf16.mxu1 %v4980_v52  ;;  %v590_v2 = vpop.permute.xlu1 %589  ;;  %v756_v22 = vpop.permute.xlu0 %755 }
 0x123   : > { %v591_v6 = vsel %vm412_vm1, %v588_v5, %v590_v2  ;;  %v4634_v2 = vld [vmem:[%s5649_s1 + $0x1a8] sm:$0xff]   ;;  %v4637_v5 = vld [vmem:[%s5649_s1 + $0x1b8] sm:$0xff]  }
 0x125   : > { %4157 = vmatpush3.bf16.msra.mxu0 %v4595_v58  ;;  %4167 = vmatpush3.bf16.msra.mxu1 %v4596_v59 }
 0x126   : > { %4168 = vmatprep.subr.bf16.mxu1 %v4980_v52  ;;  %4174 = vmatprep.subr.bf16.mxu0 %v4980_v52  ;;  %v674_v11 = vpop.permute.xlu1 %673  ;;  %v859_v33 = vpop.permute.xlu0 %858 }
 0x127   : > { %v5054_v15 = vsel %vm337_vm15, %v672_v12, %v674_v11  ;;  %v4642_v11 = vld [vmem:[%s5649_s1 + $0x1e8] sm:$0xff]   ;;  %v4643_v12 = vld [vmem:[%s5649_s1 + $0x1d8] sm:$0xff]  }
 0x128   : > { %4159 = vmatmul.mubr.msk.bf16.vlgmr.msra.gmra.mrb[4].mxu0 %vm363_vm0, %v496_v1  ;;  %v4633_v1 = vld [vmem:[%s5649_s1 + $0x190] sm:$0xff]  }
 0x129   : > { %4169 = vmatpush3.bf16.msra.mxu1 %v4597_v62  ;;  %4175 = vmatpush3.bf16.msra.mxu0 %v4598_v63 }
 0x12a   : > { %4176 = vmatprep.subr.bf16.mxu0 %v4980_v52  ;;  %4186 = vmatprep.subr.bf16.mxu1 %v4980_v52  ;;  %v758_v16 = vpop.permute.xlu1 %757  ;;  %v943_v36 = vpop.permute.xlu0 %942 }
 0x12b   : > { %4182 = vmatprep.mubr.msk.bf16.mxu0 %vm4741_vm11, %v4980_v52  ;;  %v759_v26 = vsel %vm495_vm2, %v756_v22, %v758_v16 }
 0x12c   : > { %4171 = vmatmul.mubr.msk.bf16.vlgmr.msra.gmra.mrb[4].mxu1 %vm363_vm0, %v591_v6  ;;  %v4638_v6 = vld [vmem:[%s5649_s1 + $0x1c0] sm:$0xff]  }
 0x12d   : > { %4177 = vmatpush3.bf16.msra.mxu0 %v4599_v3  ;;  %4187 = vmatpush3.bf16.msra.mxu1 %v4600_v4  ;;  %v4635_v3 = vld [vmem:[%s5649_s1 + $0x198] sm:$0xff]   ;;  %v4636_v4 = vld [vmem:[%s5649_s1 + $0x1b0] sm:$0xff]  }
 0x12e   : > { %4178 = vmatprep.subr.bf16.mxu0 %v4980_v52  ;;  %4188 = vmatprep.subr.bf16.mxu1 %v4980_v52  ;;  %v861_v32 = vpop.permute.xlu1 %860  ;;  %v1027_v42 = vpop.permute.xlu0 %1026 }
 0x12f   : > { %4194 = vmatprep.mubr.msk.bf16.mxu1 %vm4741_vm11, %v4980_v52  ;;  %v862_v23 = vsel %vm412_vm1, %v859_v33, %v861_v32  ;;  %v4651_v32 = vld [vmem:[%s5649_s1 + $0x218] sm:$0xff]   ;;  %v4652_v33 = vld [vmem:[%s5649_s1 + $0x230] sm:$0xff]  }
 0x131   : > { %4179 = vmatpush3.bf16.msra.mxu0 %v4601_v7  ;;  %4189 = vmatpush3.bf16.msra.mxu1 %v4602_v8  ;;  %v4639_v8 = vld [vmem:[%s5649_s1 + $0x1c8] sm:$0xff]  }
 0x132   : > { %4180 = vmatprep.subr.bf16.mxu0 %v4980_v52  ;;  %4190 = vmatprep.subr.bf16.mxu1 %v4980_v52  ;;  %v945_v19 = vpop.permute.xlu1 %944  ;;  %v1119_v47 = vpop.permute.xlu0 %1118 }
 0x133   : > { %v946_v21 = vsel %vm337_vm15, %v943_v36, %v945_v19  ;;  %v4654_v19 = vld [vmem:[%s5649_s1 + $0x240] sm:$0xff]   ;;  %v4655_v36 = vld [vmem:[%s5649_s1 + $0x248] sm:$0xff]  }
 0x135   : > { %4181 = vmatpush3.bf16.msra.mxu0 %v4603_v9  ;;  %4191 = vmatpush3.bf16.msra.mxu1 %v4604_v10  ;;  %v4640_v9 = vld [vmem:[%s5649_s1 + $0x1e0] sm:$0xff]   ;;  %v4641_v10 = vld [vmem:[%s5649_s1 + $0x1d0] sm:$0xff]  }
 0x136   : > { %4192 = vmatprep.subr.bf16.mxu1 %v4980_v52  ;;  %4198 = vmatprep.subr.bf16.mxu0 %v4980_v52  ;;  %v1029_v41 = vpop.permute.xlu1 %1028  ;;  %v1209_v55 = vpop.permute.xlu0 %1208 }
 0x137   : > { %v1030_v45 = vsel %vm495_vm2, %v1027_v42, %v1029_v41  ;;  %v4659_v41 = vld [vmem:[%s5649_s1 + $0x258] sm:$0xff]   ;;  %v4660_v42 = vld [vmem:[%s5649_s1 + $0x270] sm:$0xff]  }
 0x138   : > { %4183 = vmatmul.mubr.msk.bf16.vlgmr.msra.gmra.mrb[8].mxu0 %vm363_vm0, %v5054_v15 }
 0x139   : > { %4193 = vmatpush3.bf16.msra.mxu1 %v4605_v13  ;;  %4199 = vmatpush3.bf16.msra.mxu0 %v4606_v14  ;;  %v4644_v13 = vld [vmem:[%s5649_s1 + $0x1f0] sm:$0xff]  }
 0x13a   : > { %4200 = vmatprep.subr.bf16.mxu0 %v4980_v52  ;;  %4210 = vmatprep.subr.bf16.mxu1 %v4980_v52  ;;  %v1207_v54 = vpop.permute.xlu1 %1206  ;;  %v1293_v62 = vpop.permute.xlu0 %1292 }
 0x13b   : > { %4206 = vmatprep.mubr.msk.bf16.mxu0 %vm4741_vm11, %v4980_v52  ;;  %v1210_v58 = vsel %vm337_vm15, %v1207_v54, %v1209_v55  ;;  %v4667_v54 = vld [vmem:[%s5649_s1 + $0x298] sm:$0xff]   ;;  %v4668_v55 = vld [vmem:[%s5649_s1 + $0x2b0] sm:$0xff]  }
 0x13c   : > { %4195 = vmatmul.mubr.msk.bf16.vlgmr.msra.gmra.mrb[8].mxu1 %vm363_vm0, %v759_v26  ;;  %v4647_v26 = vld [vmem:[%s5649_s1 + $0x208] sm:$0xff]  }
 0x13d   : > { %4201 = vmatpush3.bf16.msra.mxu0 %v4607_v17  ;;  %4211 = vmatpush3.bf16.msra.mxu1 %v4608_v18  ;;  %v4645_v17 = vld [vmem:[%s5649_s1 + $0x1f8] sm:$0xff]   ;;  %v4646_v18 = vld [vmem:[%s5649_s1 + $0x200] sm:$0xff]  }
 0x13e   : > { %4202 = vmatprep.subr.bf16.mxu0 %v4980_v52  ;;  %4212 = vmatprep.subr.bf16.mxu1 %v4980_v52  ;;  %v1291_v59 = vpop.permute.xlu1 %1290  ;;  %v1533_v16 = vpop.permute.xlu0 %1532 }
 0x13f   : > { %4218 = vmatprep.mubr.msk.bf16.mxu1 %vm4741_vm11, %v4980_v52  ;;  %v1295_v63 = vsel %vm1294_vm3, %v1291_v59, %v1293_v62  ;;  %v4670_v59 = vld [vmem:[%s5649_s1 + $0x2c0] sm:$0xff]  }
 0x140   : > { %v4672_v62 = vld [vmem:[%s5649_s1 + $0x2e0] sm:$0xff]  }
 0x141   : > { %4203 = vmatpush3.bf16.msra.mxu0 %v4609_v27  ;;  %4213 = vmatpush3.bf16.msra.mxu1 %v4610_v28  ;;  %v4648_v27 = vld [vmem:[%s5649_s1 + $0x220] sm:$0xff]  }
 0x142   : > { %4204 = vmatprep.subr.bf16.mxu0 %v4980_v52  ;;  %4214 = vmatprep.subr.bf16.mxu1 %v4980_v52  ;;  %v1376_v7 = vpop.permute.xlu1 %1375  ;;  %v1619_v28 = vpop.permute.xlu0 %1618 }
 0x145   : > { %4205 = vmatpush3.bf16.msra.mxu0 %v4611_v29  ;;  %4215 = vmatpush3.bf16.msra.mxu1 %v4612_v31  ;;  %v4649_v29 = vld [vmem:[%s5649_s1 + $0x210] sm:$0xff]   ;;  %v4650_v31 = vld [vmem:[%s5649_s1 + $0x228] sm:$0xff]  }
 0x146   : > { %4216 = vmatprep.subr.bf16.mxu1 %v4980_v52  ;;  %4222 = vmatprep.subr.bf16.mxu0 %v4980_v52  ;;  %v1535_v14 = vpop.permute.xlu1 %1534 }
 0x147   : > { %v1536_v22 = vsel %vm1294_vm3, %v1533_v16, %v1535_v14  ;;  %v4683_v14 = vld [vmem:[%s5649_s1 + $0x318] sm:$0xff]   ;;  %v4684_v16 = vld [vmem:[%s5649_s1 + $0x330] sm:$0xff]  }
 0x148   : > { %4207 = vmatmul.mubr.msk.bf16.vlgmr.msra.gmra.mrb[12].mxu0 %vm363_vm0, %v862_v23  ;;  %v4653_v23 = vld [vmem:[%s5649_s1 + $0x238] sm:$0xff]  }
 0x149   : > { %4217 = vmatpush3.bf16.msra.mxu1 %v4613_v20  ;;  %4223 = vmatpush3.bf16.msra.mxu0 %v4614_v34  ;;  %v1704_v34 = vpop.permute.xlu0 %1703 }
 0x14a   : > { %4224 = vmatprep.subr.bf16.mxu0 %v4980_v52  ;;  %4234 = vmatprep.subr.bf16.mxu1 %v4980_v52  ;;  %v1702_v20 = vpop.permute.xlu1 %1701 }
 0x14b   : > { %4230 = vmatprep.mubr.msk.bf16.mxu0 %vm4741_vm11, %v4980_v52 }
 0x14c   : > { %4219 = vmatmul.mubr.msk.bf16.vlgmr.msra.gmra.mrb[12].mxu1 %vm363_vm0, %v946_v21  ;;  %v4656_v21 = vld [vmem:[%s5649_s1 + $0x260] sm:$0xff]  }
 0x14d   : > { %4225 = vmatpush3.bf16.msra.mxu0 %v4615_v25  ;;  %4235 = vmatpush3.bf16.msra.mxu1 %v4616_v35  ;;  %v1705_v25 = vsel %vm337_vm15, %v1702_v20, %v1704_v34  ;;  %v4691_v20 = vld [vmem:[%s5649_s1 + $0x358] sm:$0xff]   ;;  %v4692_v34 = vld [vmem:[%s5649_s1 + $0x370] sm:$0xff]  }
 0x14e   : > { %4226 = vmatprep.subr.bf16.mxu0 %v4980_v52  ;;  %4236 = vmatprep.subr.bf16.mxu1 %v4980_v52  ;;  %v1786_v35 = vpop.permute.xlu1 %1785 }
 0x14f   : > { %4242 = vmatprep.mubr.msk.bf16.mxu1 %vm4741_vm11, %v4980_v52 }
 0x151   : > { %4227 = vmatpush3.bf16.msra.mxu0 %v4617_v37  ;;  %4237 = vmatpush3.bf16.msra.mxu1 %v4618_v38  ;;  %v1788_v37 = vpop.permute.xlu0 %1787 }
 0x152   : > { %4228 = vmatprep.subr.bf16.mxu0 %v4980_v52  ;;  %4238 = vmatprep.subr.bf16.mxu1 %v4980_v52  ;;  %v1789_v38 = vsel %vm1294_vm3, %v1786_v35, %v1788_v37  ;;  %v4696_v37 = vld [vmem:[%s5649_s1 + $0x3a0] sm:$0xff]  }
 0x155   : > { %4229 = vmatpush3.bf16.msra.mxu0 %v4619_v39  ;;  %4239 = vmatpush3.bf16.msra.mxu1 %v4620_v40  ;;  %v4657_v39 = vld [vmem:[%s5649_s1 + $0x250] sm:$0xff]   ;;  %v4658_v40 = vld [vmem:[%s5649_s1 + $0x268] sm:$0xff]  }
 0x156   : > { %4240 = vmatprep.subr.bf16.mxu1 %v4980_v52  ;;  %4246 = vmatprep.subr.bf16.mxu0 %v4980_v52 }
 0x158   : > { %4231 = vmatmul.mubr.msk.bf16.vlgmr.msra.gmra.mrb[16].mxu0 %vm363_vm0, %v1030_v45  ;;  %v4662_v45 = vld [vmem:[%s5649_s1 + $0x280] sm:$0xff]  }
 0x159   : > { %4241 = vmatpush3.bf16.msra.mxu1 %v4621_v43  ;;  %4247 = vmatpush3.bf16.msra.mxu0 %v4622_v44  ;;  %v1878_v43 = vpop.permute.xlu1 %1877  ;;  %v4661_v44 = vld [vmem:[%s5649_s1 + $0x278] sm:$0xff]  }
 0x15a   : > { %4248 = vmatprep.subr.bf16.mxu0 %v4980_v52  ;;  %4258 = vmatprep.subr.bf16.mxu1 %v4980_v52 }
 0x15b   : > { %4254 = vmatprep.mubr.msk.bf16.mxu0 %vm4741_vm11, %v4980_v52 }
 0x15c   : > { %4243 = vmatmul.mubr.msk.bf16.vlgmr.msra.gmra.mrb[16].mxu1 %vm363_vm0, %v1119_v47  ;;  %v4664_v47 = vld [vmem:[%s5649_s1 + $0x2a0] sm:$0xff]  }
 0x15d   : > { %4249 = vmatpush3.bf16.msra.mxu0 %v4623_v0  ;;  %4259 = vmatpush3.bf16.msra.mxu1 %v4624_v24  ;;  %v1968_v0 = vpop.permute.xlu1 %1967  ;;  %v4663_v24 = vld [vmem:[%s5649_s1 + $0x288] sm:$0xff]  }
 0x15e   : > { %4250 = vmatprep.subr.bf16.mxu0 %v4980_v52  ;;  %4260 = vmatprep.subr.bf16.mxu1 %v4980_v52 }
 0x15f   : > { %4266 = vmatprep.mubr.msk.bf16.mxu1 %vm4741_vm11, %v4980_v52 }
 0x161   : > { %4251 = vmatpush3.bf16.msra.mxu0 %v4625_v48  ;;  %4261 = vmatpush3.bf16.msra.mxu1 %v4626_v49  ;;  %v1966_v48 = vpop.permute.xlu0 %1965 }
 0x162   : > { %4252 = vmatprep.subr.bf16.mxu0 %v4980_v52  ;;  %4262 = vmatprep.subr.bf16.mxu1 %v4980_v52  ;;  %v1969_v49 = vsel %vm337_vm15, %v1966_v48, %v1968_v0 }
 0x165   : > { %4253 = vmatpush3.bf16.msra.mxu0 %v4627_v50  ;;  %4263 = vmatpush3.bf16.msra.mxu1 %v4628_v53  ;;  %v4665_v50 = vld [vmem:[%s5649_s1 + $0x290] sm:$0xff]   ;;  %v4666_v53 = vld [vmem:[%s5649_s1 + $0x2a8] sm:$0xff]  }
 0x166   : > { %4264 = vmatprep.subr.bf16.mxu1 %v4980_v52  ;;  %4270 = vmatprep.subr.bf16.mxu0 %v4980_v52 }
 0x168   : > { %4255 = vmatmul.mubr.msk.bf16.vlgmr.msra.gmra.mrb[20].mxu0 %vm363_vm0, %v1210_v58  ;;  %v4669_v58 = vld [vmem:[%s5649_s1 + $0x2b8] sm:$0xff]  }
 0x169   : > { %4265 = vmatpush3.bf16.msra.mxu1 %v4629_v56  ;;  %4271 = vmatpush3.bf16.msra.mxu0 %v4630_v57  ;;  %v2052_v56 = vpop.permute.xlu1 %2051  ;;  %v2050_v57 = vpop.permute.xlu0 %2049 }
 0x16a   : > { %4272 = vmatprep.subr.bf16.mxu0 %v4980_v52  ;;  %4282 = vmatprep.subr.bf16.mxu1 %v4980_v52 }
 0x16b   : > { %4278 = vmatprep.mubr.msk.bf16.mxu0 %vm4741_vm11, %v4980_v52 }
 0x16c   : > { %4267 = vmatmul.mubr.msk.bf16.vlgmr.msra.gmra.mrb[20].mxu1 %vm363_vm0, %v1295_v63 }
 0x16d   : > { %4273 = vmatpush3.bf16.msra.mxu0 %v4631_v60  ;;  %4283 = vmatpush3.bf16.msra.mxu1 %v4632_v61  ;;  %v2054_v60 = vsel %vm267_vm6, %v2050_v57, %v2052_v56  ;;  %v4671_v61 = vld [vmem:[%s5649_s1 + $0x2c8] sm:$0xff]   ;;  %v2135_v63 = vpop.permute.xlu0 %2134  ;;  %v4702_v56 = vld [vmem:[%s5649_s1 + $0x3c0] sm:$0xff]  }
 0x16e   : > { %4274 = vmatprep.subr.bf16.mxu0 %v4980_v52  ;;  %4284 = vmatprep.subr.bf16.mxu1 %v4980_v52  ;;  %v4703_v57 = vld [vmem:[%s5649_s1 + $0x3c8] sm:$0xff]  }
 0x16f   : > { %4290 = vmatprep.mubr.msk.bf16.mxu1 %vm4741_vm11, %v4980_v52 }
 0x171   : > { %4275 = vmatpush3.bf16.msra.mxu0 %v4633_v1  ;;  %4285 = vmatpush3.bf16.msra.mxu1 %v4634_v2  ;;  %v4673_v1 = vld [vmem:[%s5649_s1 + $0x2d0] sm:$0xff]   ;;  %v4674_v2 = vld [vmem:[%s5649_s1 + $0x2e8] sm:$0xff]  }
 0x172   : > { %4276 = vmatprep.subr.bf16.mxu0 %v4980_v52  ;;  %4286 = vmatprep.subr.bf16.mxu1 %v4980_v52 }
 0x175   : > { %4277 = vmatpush3.bf16.msra.mxu0 %v4635_v3  ;;  %4287 = vmatpush3.bf16.msra.mxu1 %v4636_v4  ;;  %v4675_v3 = vld [vmem:[%s5649_s1 + $0x2d8] sm:$0xff]   ;;  %v4676_v4 = vld [vmem:[%s5649_s1 + $0x2f0] sm:$0xff]  }
 0x176   : > { %4288 = vmatprep.subr.bf16.mxu1 %v4980_v52  ;;  %4294 = vmatprep.subr.bf16.mxu0 %v4980_v52 }
 0x178   : > { %4279 = vmatmul.mubr.msk.bf16.vlgmr.msra.gmra.mrb[24].mxu0 %vm363_vm0, %v1376_v7  ;;  %v2292_v7 = vpop.permute.xlu1 %2291 }
 0x179   : > { %4289 = vmatpush3.bf16.msra.mxu1 %v4637_v5  ;;  %4295 = vmatpush3.bf16.msra.mxu0 %v4638_v6  ;;  %v4677_v5 = vld [vmem:[%s5649_s1 + $0x2f8] sm:$0xff]   ;;  %v4678_v6 = vld [vmem:[%s5649_s1 + $0x300] sm:$0xff]  }
 0x17a   : > { %4296 = vmatprep.subr.bf16.mxu0 %v4980_v52  ;;  %4306 = vmatprep.subr.bf16.mxu1 %v4980_v52 }
 0x17b   : > { %4302 = vmatprep.mubr.msk.bf16.mxu0 %vm4741_vm11, %v4980_v52 }
 0x17c   : > { %4291 = vmatmul.mubr.msk.bf16.vlgmr.msra.gmra.mrb[24].mxu1 %vm363_vm0, %v5054_v15 }
 0x17d   : > { %4297 = vmatpush3.bf16.msra.mxu0 %v4639_v8  ;;  %4307 = vmatpush3.bf16.msra.mxu1 %v4640_v9  ;;  %v4679_v8 = vld [vmem:[%s5649_s1 + $0x308] sm:$0xff]   ;;  %v4680_v9 = vld [vmem:[%s5649_s1 + $0x320] sm:$0xff]  }
 0x17e   : > { %4298 = vmatprep.subr.bf16.mxu0 %v4980_v52  ;;  %4308 = vmatprep.subr.bf16.mxu1 %v4980_v52 }
 0x17f   : > { %4314 = vmatprep.mubr.msk.bf16.mxu1 %vm4741_vm11, %v4980_v52 }
 0x181   : > { %4299 = vmatpush3.bf16.msra.mxu0 %v4641_v10  ;;  %4309 = vmatpush3.bf16.msra.mxu1 %v4642_v11  ;;  %v2294_v10 = vpop.permute.xlu0 %2293 }
 0x182   : > { %4300 = vmatprep.subr.bf16.mxu0 %v4980_v52  ;;  %4310 = vmatprep.subr.bf16.mxu1 %v4980_v52  ;;  %v2295_v11 = vsel %vm267_vm6, %v2292_v7, %v2294_v10  ;;  %v4708_v10 = vld [vmem:[%s5649_s1 + $0x3f0] sm:$0xff]  }
 0x185   : > { %4301 = vmatpush3.bf16.msra.mxu0 %v4643_v12  ;;  %4311 = vmatpush3.bf16.msra.mxu1 %v4644_v13  ;;  %v4681_v12 = vld [vmem:[%s5649_s1 + $0x310] sm:$0xff]   ;;  %v4682_v13 = vld [vmem:[%s5649_s1 + $0x328] sm:$0xff]  }
 0x186   : > { %4312 = vmatprep.subr.bf16.mxu1 %v4980_v52  ;;  %4318 = vmatprep.subr.bf16.mxu0 %v4980_v52 }
 0x188   : > { %4303 = vmatmul.mubr.msk.bf16.vlgmr.msra.gmra.mrb[28].mxu0 %vm363_vm0, %v1536_v22  ;;  %v4686_v22 = vld [vmem:[%s5649_s1 + $0x340] sm:$0xff]  }
 0x189   : > { %4313 = vmatpush3.bf16.msra.mxu1 %v4645_v17  ;;  %4319 = vmatpush3.bf16.msra.mxu0 %v4646_v18  ;;  %v2381_v17 = vpop.permute.xlu1 %2380  ;;  %v4685_v18 = vld [vmem:[%s5649_s1 + $0x338] sm:$0xff]  }
 0x18a   : > { %4320 = vmatprep.subr.bf16.mxu0 %v4980_v52  ;;  %4330 = vmatprep.subr.bf16.mxu1 %v4980_v52 }
 0x18b   : > { %4326 = vmatprep.mubr.msk.bf16.mxu0 %vm4741_vm11, %v4980_v52 }
 0x18c   : > { %4315 = vmatmul.mubr.msk.bf16.vlgmr.msra.gmra.mrb[28].mxu1 %vm363_vm0, %v1619_v28  ;;  %v4688_v28 = vld [vmem:[%s5649_s1 + $0x360] sm:$0xff]  }
 0x18d   : > { %4321 = vmatpush3.bf16.msra.mxu0 %v4647_v26  ;;  %4331 = vmatpush3.bf16.msra.mxu1 %v4648_v27  ;;  %v2469_v26 = vpop.permute.xlu1 %2468  ;;  %v4687_v27 = vld [vmem:[%s5649_s1 + $0x348] sm:$0xff]  }
 0x18e   : > { %4322 = vmatprep.subr.bf16.mxu0 %v4980_v52  ;;  %4332 = vmatprep.subr.bf16.mxu1 %v4980_v52 }
 0x18f   : > { %4338 = vmatprep.mubr.msk.bf16.mxu1 %vm4741_vm11, %v4980_v52 }
 0x191   : > { %4323 = vmatpush3.bf16.msra.mxu0 %v4649_v29  ;;  %4333 = vmatpush3.bf16.msra.mxu1 %v4650_v31  ;;  %v2467_v29 = vpop.permute.xlu0 %2466 }
 0x192   : > { %4324 = vmatprep.subr.bf16.mxu0 %v4980_v52  ;;  %4334 = vmatprep.subr.bf16.mxu1 %v4980_v52  ;;  %v2470_v31 = vsel %vm337_vm15, %v2467_v29, %v2469_v26 }
 0x195   : > { %4325 = vmatpush3.bf16.msra.mxu0 %v4651_v32  ;;  %4335 = vmatpush3.bf16.msra.mxu1 %v4652_v33  ;;  %v4689_v32 = vld [vmem:[%s5649_s1 + $0x350] sm:$0xff]   ;;  %v4690_v33 = vld [vmem:[%s5649_s1 + $0x368] sm:$0xff]   ;;  %v2551_v35 = vpop.permute.xlu0 %2550 }
 0x196   : > { %4336 = vmatprep.subr.bf16.mxu1 %v4980_v52  ;;  %4342 = vmatprep.subr.bf16.mxu0 %v4980_v52 }
 0x198   : > { %4327 = vmatmul.mubr.msk.bf16.vlgmr.msra.gmra.mrb[32].mxu0 %vm363_vm0, %v1705_v25  ;;  %v4694_v25 = vld [vmem:[%s5649_s1 + $0x380] sm:$0xff]  }
 0x199   : > { %4337 = vmatpush3.bf16.msra.mxu1 %v4653_v23  ;;  %4343 = vmatpush3.bf16.msra.mxu0 %v4654_v19  ;;  %v2553_v23 = vpop.permute.xlu1 %2552  ;;  %v4693_v19 = vld [vmem:[%s5649_s1 + $0x378] sm:$0xff]  }
 0x19a   : > { %4344 = vmatprep.subr.bf16.mxu0 %v4980_v52  ;;  %4354 = vmatprep.subr.bf16.mxu1 %v4980_v52 }
 0x19b   : > { %4350 = vmatprep.mubr.msk.bf16.mxu0 %vm4741_vm11, %v4980_v52 }
 0x19c   : > { %4339 = vmatmul.mubr.msk.bf16.vlgmr.msra.gmra.mrb[32].mxu1 %vm363_vm0, %v1789_v38 }
 0x19d   : > { %4345 = vmatpush3.bf16.msra.mxu0 %v4655_v36  ;;  %4355 = vmatpush3.bf16.msra.mxu1 %v4656_v21  ;;  %v2554_v36 = vsel %vm267_vm6, %v2551_v35, %v2553_v23  ;;  %v4695_v21 = vld [vmem:[%s5649_s1 + $0x388] sm:$0xff]   ;;  %v4716_v23 = vld [vmem:[%s5649_s1 + $0x430] sm:$0xff]   ;;  %v4717_v35 = vld [vmem:[%s5649_s1 + $0x438] sm:$0xff]  }
 0x19e   : > { %4346 = vmatprep.subr.bf16.mxu0 %v4980_v52  ;;  %4356 = vmatprep.subr.bf16.mxu1 %v4980_v52 }
 0x19f   : > { %4362 = vmatprep.mubr.msk.bf16.mxu1 %vm4741_vm11, %v4980_v52 }
 0x1a1   : > { %4347 = vmatpush3.bf16.msra.mxu0 %v4657_v39  ;;  %4357 = vmatpush3.bf16.msra.mxu1 %v4658_v40 }
 0x1a2   : > { %4348 = vmatprep.subr.bf16.mxu0 %v4980_v52  ;;  %4358 = vmatprep.subr.bf16.mxu1 %v4980_v52 }
 0x1a5   : > { %4349 = vmatpush3.bf16.msra.mxu0 %v4659_v41  ;;  %4359 = vmatpush3.bf16.msra.mxu1 %v4660_v42  ;;  %v4697_v41 = vld [vmem:[%s5649_s1 + $0x390] sm:$0xff]   ;;  %v4698_v42 = vld [vmem:[%s5649_s1 + $0x3a8] sm:$0xff]  }
 0x1a6   : > { %4360 = vmatprep.subr.bf16.mxu1 %v4980_v52  ;;  %4366 = vmatprep.subr.bf16.mxu0 %v4980_v52 }
 0x1a8   : > { %4351 = vmatmul.mubr.msk.bf16.vlgmr.msra.gmra.mrb[36].mxu0 %vm363_vm0, %v1878_v43 }
 0x1a9   : > { %4361 = vmatpush3.bf16.msra.mxu1 %v4661_v44  ;;  %4367 = vmatpush3.bf16.msra.mxu0 %v4662_v45 }
 0x1aa   : > { %4368 = vmatprep.subr.bf16.mxu0 %v4980_v52  ;;  %4378 = vmatprep.subr.bf16.mxu1 %v4980_v52 }
 0x1ab   : > { %4374 = vmatprep.mubr.msk.bf16.mxu0 %vm4741_vm11, %v4980_v52 }
 0x1ac   : > { %4363 = vmatmul.mubr.msk.bf16.vlgmr.msra.gmra.mrb[36].mxu1 %vm363_vm0, %v1969_v49 }
 0x1ad   : > { %4369 = vmatpush3.bf16.msra.mxu0 %v4663_v24  ;;  %4379 = vmatpush3.bf16.msra.mxu1 %v4664_v47  ;;  %v4699_v24 = vld [vmem:[%s5649_s1 + $0x398] sm:$0xff]   ;;  %v4700_v47 = vld [vmem:[%s5649_s1 + $0x3b0] sm:$0xff]  }
 0x1ae   : > { %4370 = vmatprep.subr.bf16.mxu0 %v4980_v52  ;;  %4380 = vmatprep.subr.bf16.mxu1 %v4980_v52 }
 0x1af   : > { %4386 = vmatprep.mubr.msk.bf16.mxu1 %vm4741_vm11, %v4980_v52 }
 0x1b1   : > { %4371 = vmatpush3.bf16.msra.mxu0 %v4665_v50  ;;  %4381 = vmatpush3.bf16.msra.mxu1 %v4666_v53  ;;  %v2714_v50 = vpop.permute.xlu0 %2713  ;;  %v2716_v53 = vpop.permute.xlu1 %2715 }
 0x1b2   : > { %4372 = vmatprep.subr.bf16.mxu0 %v4980_v52  ;;  %4382 = vmatprep.subr.bf16.mxu1 %v4980_v52 }
 0x1b5   : > { %4373 = vmatpush3.bf16.msra.mxu0 %v4667_v54  ;;  %4383 = vmatpush3.bf16.msra.mxu1 %v4668_v55  ;;  %v2717_v54 = vsel %vm337_vm15, %v2714_v50, %v2716_v53  ;;  %v4701_v55 = vld [vmem:[%s5649_s1 + $0x3b8] sm:$0xff]  }
 0x1b6   : > { %4384 = vmatprep.subr.bf16.mxu1 %v4980_v52  ;;  %4390 = vmatprep.subr.bf16.mxu0 %v4980_v52 }
 0x1b8   : > { %4375 = vmatmul.mubr.msk.bf16.vlgmr.msra.gmra.mrb[40].mxu0 %vm363_vm0, %v2054_v60 }
 0x1b9   : > { %4385 = vmatpush3.bf16.msra.mxu1 %v4669_v58  ;;  %4391 = vmatpush3.bf16.msra.mxu0 %v4670_v59  ;;  %v4704_v58 = vld [vmem:[%s5649_s1 + $0x3e0] sm:$0xff]   ;;  %v2798_v59 = vpop.permute.xlu0 %2797 }
 0x1ba   : > { %4392 = vmatprep.subr.bf16.mxu0 %v4980_v52  ;;  %4402 = vmatprep.subr.bf16.mxu1 %v4980_v52 }
 0x1bb   : > { %4398 = vmatprep.mubr.msk.bf16.mxu0 %vm4741_vm11, %v4980_v52 }
 0x1bc   : > { %4387 = vmatmul.mubr.msk.bf16.vlgmr.msra.gmra.mrb[40].mxu1 %vm363_vm0, %v2135_v63 }
 0x1bd   : > { %4393 = vmatpush3.bf16.msra.mxu0 %v4671_v61  ;;  %4403 = vmatpush3.bf16.msra.mxu1 %v4672_v62 }
 0x1be   : > { %4394 = vmatprep.subr.bf16.mxu0 %v4980_v52  ;;  %4404 = vmatprep.subr.bf16.mxu1 %v4980_v52 }
 0x1bf   : > { %4410 = vmatprep.mubr.msk.bf16.mxu1 %vm4741_vm11, %v4980_v52 }
 0x1c1   : > { %4395 = vmatpush3.bf16.msra.mxu0 %v4673_v1  ;;  %4405 = vmatpush3.bf16.msra.mxu1 %v4674_v2  ;;  %v4705_v1 = vld [vmem:[%s5649_s1 + $0x3d0] sm:$0xff]   ;;  %v4706_v2 = vld [vmem:[%s5649_s1 + $0x3e8] sm:$0xff]  }
 0x1c2   : > { %4396 = vmatprep.subr.bf16.mxu0 %v4980_v52  ;;  %4406 = vmatprep.subr.bf16.mxu1 %v4980_v52 }
 0x1c5   : > { %4397 = vmatpush3.bf16.msra.mxu0 %v4675_v3  ;;  %4407 = vmatpush3.bf16.msra.mxu1 %v4676_v4 }
 0x1c6   : > { %4408 = vmatprep.subr.bf16.mxu1 %v4980_v52  ;;  %4414 = vmatprep.subr.bf16.mxu0 %v4980_v52 }
 0x1c8   : > { %4399 = vmatmul.mubr.msk.bf16.vlgmr.msra.gmra.mrb[44].mxu0 %vm363_vm0, %v5054_v15 }
 0x1c9   : > { %4409 = vmatpush3.bf16.msra.mxu1 %v4677_v5  ;;  %4415 = vmatpush3.bf16.msra.mxu0 %v4678_v6 }
 0x1ca   : > { %4416 = vmatprep.subr.bf16.mxu0 %v4980_v52  ;;  %4426 = vmatprep.subr.bf16.mxu1 %v4980_v52 }
 0x1cb   : > { %4422 = vmatprep.mubr.msk.bf16.mxu0 %vm4741_vm11, %v4980_v52 }
 0x1cc   : > { %4411 = vmatmul.mubr.msk.bf16.vlgmr.msra.gmra.mrb[44].mxu1 %vm363_vm0, %v2295_v11 }
 0x1cd   : > { %4417 = vmatpush3.bf16.msra.mxu0 %v4679_v8  ;;  %4427 = vmatpush3.bf16.msra.mxu1 %v4680_v9  ;;  %v4707_v9 = vld [vmem:[%s5649_s1 + $0x3d8] sm:$0xff]  }
 0x1ce   : > { %4418 = vmatprep.subr.bf16.mxu0 %v4980_v52  ;;  %4428 = vmatprep.subr.bf16.mxu1 %v4980_v52 }
 0x1cf   : > { %4434 = vmatprep.mubr.msk.bf16.mxu1 %vm4741_vm11, %v4980_v52 }
 0x1d1   : > { %4419 = vmatpush3.bf16.msra.mxu0 %v4681_v12  ;;  %4429 = vmatpush3.bf16.msra.mxu1 %v4682_v13  ;;  %v4709_v13 = vld [vmem:[%s5649_s1 + $0x3f8] sm:$0xff]  }
 0x1d2   : > { %4420 = vmatprep.subr.bf16.mxu0 %v4980_v52  ;;  %4430 = vmatprep.subr.bf16.mxu1 %v4980_v52 }
 0x1d5   : > { %4421 = vmatpush3.bf16.msra.mxu0 %v4683_v14  ;;  %4431 = vmatpush3.bf16.msra.mxu1 %v4684_v16  ;;  %v4710_v14 = vld [vmem:[%s5649_s1 + $0x400] sm:$0xff]   ;;  %v4711_v16 = vld [vmem:[%s5649_s1 + $0x408] sm:$0xff]  }
 0x1d6   : > { %4432 = vmatprep.subr.bf16.mxu1 %v4980_v52  ;;  %4438 = vmatprep.subr.bf16.mxu0 %v4980_v52 }
 0x1d8   : > { %4423 = vmatmul.mubr.msk.bf16.vlgmr.msra.gmra.mrb[48].mxu0 %vm363_vm0, %v2381_v17  ;;  %v4712_v17 = vld [vmem:[%s5649_s1 + $0x420] sm:$0xff]  }
 0x1d9   : > { %4433 = vmatpush3.bf16.msra.mxu1 %v4685_v18  ;;  %4439 = vmatpush3.bf16.msra.mxu0 %v4686_v22 }
 0x1da   : > { %4440 = vmatprep.subr.bf16.mxu0 %v4980_v52  ;;  %4450 = vmatprep.subr.bf16.mxu1 %v4980_v52 }
 0x1db   : > { %4446 = vmatprep.mubr.msk.bf16.mxu0 %vm4741_vm11, %v4980_v52 }
 0x1dc   : > { %4435 = vmatmul.mubr.msk.bf16.vlgmr.msra.gmra.mrb[48].mxu1 %vm363_vm0, %v2470_v31 }
 0x1dd   : > { %4441 = vmatpush3.bf16.msra.mxu0 %v4687_v27  ;;  %4451 = vmatpush3.bf16.msra.mxu1 %v4688_v28  ;;  %v4713_v27 = vld [vmem:[%s5649_s1 + $0x410] sm:$0xff]   ;;  %v4714_v28 = vld [vmem:[%s5649_s1 + $0x428] sm:$0xff]  }
 0x1de   : > { %4442 = vmatprep.subr.bf16.mxu0 %v4980_v52  ;;  %4452 = vmatprep.subr.bf16.mxu1 %v4980_v52 }
 0x1df   : > { %4458 = vmatprep.mubr.msk.bf16.mxu1 %vm4741_vm11, %v4980_v52 }
 0x1e1   : > { %4443 = vmatpush3.bf16.msra.mxu0 %v4689_v32  ;;  %4453 = vmatpush3.bf16.msra.mxu1 %v4690_v33  ;;  %v4727_v32 = vld [vmem:[#allocation2] sm:$0xff] }
 0x1e2   : > { %4444 = vmatprep.subr.bf16.mxu0 %v4980_v52  ;;  %4454 = vmatprep.subr.bf16.mxu1 %v4980_v52 }
 0x1e5   : > { %4445 = vmatpush3.bf16.msra.mxu0 %v4691_v20  ;;  %4455 = vmatpush3.bf16.msra.mxu1 %v4692_v34  ;;  %v4715_v34 = vld [vmem:[%s5649_s1 + $0x418] sm:$0xff]  }
 0x1e6   : > { %4456 = vmatprep.subr.bf16.mxu1 %v4980_v52  ;;  %4462 = vmatprep.subr.bf16.mxu0 %v4980_v52 }
 0x1e8   : > { %4447 = vmatmul.mubr.msk.bf16.vlgmr.msra.gmra.mrb[52].mxu0 %vm363_vm0, %v2554_v36  ;;  %v4718_v36 = vld [vmem:[%s5649_s1 + $0x440] sm:$0xff]  }
 0x1e9   : > { %4457 = vmatpush3.bf16.msra.mxu1 %v4693_v19  ;;  %4463 = vmatpush3.bf16.msra.mxu0 %v4694_v25 }
 0x1ea   : > { %4464 = vmatprep.subr.bf16.mxu0 %v4980_v52  ;;  %4474 = vmatprep.subr.bf16.mxu1 %v4980_v52 }
 0x1eb   : > { %v401_v38 = vpop.f32.mrb[0].mxu0  ;;  %4470 = vmatprep.mubr.msk.bf16.mxu0 %vm4741_vm11, %v4980_v52 }
 0x1ec   : > { %4459 = vmatmul.mubr.msk.bf16.vlgmr.msra.gmra.mrb[52].mxu1 %vm363_vm0, %v4744_v30  ;;  %v4136_v39 = vpop.f32.mrb[1].mxu0 }
 0x1ed   : > { %4465 = vmatpush3.bf16.msra.mxu0 %v4695_v21  ;;  %4475 = vmatpush3.bf16.msra.mxu1 %v4696_v37  ;;  %v404_v40 = vpop.f32.mrb[2].mxu0  ;;  %v3034_v21 = vpop.permute.xlu1 %3033  ;;  %v4719_v37 = vld [vmem:[%s5649_s1 + $0x448] sm:$0xff]  }
 0x1ee   : > { %v4137_v43 = vpop.f32.mrb[3].mxu0  ;;  %4466 = vmatprep.subr.bf16.mxu0 %v4980_v52  ;;  %4476 = vmatprep.subr.bf16.mxu1 %v4980_v52 }
 0x1ef   : > { %v475_v44 = vpop.f32.mrb[0].mxu1  ;;  %4482 = vmatprep.mubr.msk.bf16.mxu1 %vm4741_vm11, %v4980_v52  ;;  %v4721_v43 = vld [vmem:[%s5649_s1 + $0x450] sm:$0xff]  }
 0x1f0   : > { %v476_v30 = vadd.f32 %v475_v44, %v401_v38  ;;  %v4148_v45 = vpop.f32.mrb[1].mxu1  ;;  %v4720_v38 = vld [vmem:[%s5649_s1 + $0x460] sm:$0xff]   ;;  %v4722_v44 = vld [vmem:[%s5649_s1 + $0x468] sm:$0xff]  }
 0x1f1   : > { %4467 = vmatpush3.bf16.msra.mxu0 %v4697_v41  ;;  %4477 = vmatpush3.bf16.msra.mxu1 %v4698_v42  ;;  %v478_v0 = vpop.f32.mrb[2].mxu1 }
 0x1f2   : > { %v479_v48 = vadd.f32 %v478_v0, %v404_v40  ;;  %v4149_v49 = vpop.f32.mrb[3].mxu1  ;;  %4468 = vmatprep.subr.bf16.mxu0 %v4980_v52  ;;  %4478 = vmatprep.subr.bf16.mxu1 %v4980_v52 }
 0x1f3   : > { %v4724_v49 = vld [vmem:[%s5649_s1 + $0x470] sm:$0xff]  }
 0x1f5   : > { %4469 = vmatpush3.bf16.msra.mxu0 %v4699_v24  ;;  %4479 = vmatpush3.bf16.msra.mxu1 %v4700_v47 }
 0x1f6   : > { %4480 = vmatprep.subr.bf16.mxu1 %v4980_v52  ;;  %4486 = vmatprep.subr.bf16.mxu0 %v4980_v52 }
 0x1f8   : > { %4471 = vmatmul.mubr.msk.bf16.vlgmr.msra.gmra.mrb[56].mxu0 %vm363_vm0, %v2717_v54  ;;  %v3210_v54 = vpop.permute.xlu1 %3209 }
 0x1f9   : > { %4481 = vmatpush3.bf16.msra.mxu1 %v4701_v55  ;;  %4487 = vmatpush3.bf16.msra.mxu0 %v4702_v56  ;;  %v3208_v55 = vpop.permute.xlu0 %3207  ;;  %v4725_v56 = vld [vmem:[%s5649_s1 + $0x478] sm:$0xff]  }
 0x1fa   : > { %4488 = vmatprep.subr.bf16.mxu0 %v4980_v52  ;;  %4498 = vmatprep.subr.bf16.mxu1 %v4980_v52 }
 0x1fb   : > { %v558_v60 = vpop.f32.mrb[4].mxu0  ;;  %4494 = vmatprep.mubr.msk.bf16.mxu0 %vm4741_vm11, %v4980_v52 }
 0x1fc   : > { %v565_v61 = vadd.f32 %v558_v60, %v476_v30  ;;  %v4160_v62 = vpop.f32.mrb[5].mxu0  ;;  %4483 = vmatmul.mubr.msk.bf16.vlgmr.msra.gmra.mrb[56].mxu1 %vm363_vm0, %v2798_v59 }
 0x1fd   : > { %v561_v63 = vpop.f32.mrb[6].mxu0  ;;  %4489 = vmatpush3.bf16.msra.mxu0 %v4703_v57  ;;  %4499 = vmatpush3.bf16.msra.mxu1 %v4704_v58  ;;  %v3211_v57 = vsel %vm337_vm15, %v3208_v55, %v3210_v54  ;;  %v3292_v58 = vpop.permute.xlu0 %3291 }
 0x1fe   : > { %v566_v3 = vadd.f32 %v561_v63, %v479_v48  ;;  %v4161_v4 = vpop.f32.mrb[7].mxu0  ;;  %4490 = vmatprep.subr.bf16.mxu0 %v4980_v52  ;;  %4500 = vmatprep.subr.bf16.mxu1 %v4980_v52  ;;  %v4723_v48 = vld [vmem:[%s5649_s1 + $0x458] sm:$0xff]  }
 0x1ff   : > { %v653_v5 = vpop.f32.mrb[4].mxu1  ;;  %4506 = vmatprep.mubr.msk.bf16.mxu1 %vm4741_vm11, %v4980_v52 }
 0x200   : > { %v660_v6 = vadd.f32 %v653_v5, %v565_v61  ;;  %v4172_v7 = vpop.f32.mrb[5].mxu1 }
 0x201   : > { %v656_v8 = vpop.f32.mrb[6].mxu1  ;;  %4491 = vmatpush3.bf16.msra.mxu0 %v4705_v1  ;;  %4501 = vmatpush3.bf16.msra.mxu1 %v4706_v2 }
 0x202   : > { %v661_v11 = vadd.f32 %v656_v8, %v566_v3  ;;  %v4173_v12 = vpop.f32.mrb[7].mxu1  ;;  %4492 = vmatprep.subr.bf16.mxu0 %v4980_v52  ;;  %4502 = vmatprep.subr.bf16.mxu1 %v4980_v52 }
 0x205   : > { %4493 = vmatpush3.bf16.msra.mxu0 %v4707_v9  ;;  %4503 = vmatpush3.bf16.msra.mxu1 %v4708_v10 }
 0x206   : > { %4504 = vmatprep.subr.bf16.mxu1 %v4980_v52  ;;  %4510 = vmatprep.subr.bf16.mxu0 %v4980_v52 }
 0x208   : > { %4495 = vmatmul.mubr.msk.bf16.vlgmr.msra.gmra.mrb[60].mxu0 %vm363_vm0, %v4882_v51 }
 0x209   : > { %4505 = vmatpush3.bf16.msra.mxu1 %v4709_v13  ;;  %4511 = vmatpush3.bf16.msra.mxu0 %v4710_v14 }
 0x20a   : > { %4512 = vmatprep.subr.bf16.mxu0 %v4980_v52  ;;  %4522 = vmatprep.subr.bf16.mxu1 %v4980_v52 }
 0x20b   : > { %v737_v18 = vpop.f32.mrb[8].mxu0  ;;  %4518 = vmatprep.mubr.msk.bf16.mxu0 %vm4741_vm11, %v4980_v52 }
 0x20c   : > { %v744_v22 = vadd.f32 %v737_v18, %v660_v6  ;;  %v4184_v51 = vpop.f32.mrb[9].mxu0  ;;  %4507 = vmatmul.mubr.msk.bf16.vlgmr.msra.gmra.mrb[60].mxu1 %vm363_vm0, %v5054_v15 }
 0x20d   : > { %v740_v26 = vpop.f32.mrb[10].mxu0  ;;  %4513 = vmatpush3.bf16.msra.mxu0 %v4711_v16  ;;  %4523 = vmatpush3.bf16.msra.mxu1 %v4712_v17 }
 0x20e   : > { %v745_v29 = vadd.f32 %v740_v26, %v661_v11  ;;  %v4185_v31 = vpop.f32.mrb[11].mxu0  ;;  %4514 = vmatprep.subr.bf16.mxu0 %v4727_v32  ;;  %4524 = vmatprep.subr.bf16.mxu1 %v4727_v32 }
 0x20f   : > { %v821_v52 = vpop.f32.mrb[8].mxu1  ;;  %4530 = vmatprep.mubr.msk.bf16.mxu1 %vm4741_vm11, %v4727_v32 }
 0x210   : > { %v828_v15 = vadd.f32 %v821_v52, %v744_v22  ;;  %v4196_v33 = vpop.f32.mrb[9].mxu1 }
 0x211   : > { %v824_v20 = vpop.f32.mrb[10].mxu1  ;;  %4515 = vmatpush3.bf16.msra.mxu0 %v4713_v27  ;;  %4525 = vmatpush3.bf16.msra.mxu1 %v4714_v28 }
 0x212   : > { %v829_v19 = vadd.f32 %v824_v20, %v745_v29  ;;  %v4197_v25 = vpop.f32.mrb[11].mxu1  ;;  %4516 = vmatprep.subr.bf16.mxu0 %v4727_v32  ;;  %4526 = vmatprep.subr.bf16.mxu1 %v4727_v32 }
 0x215   : > { %4517 = vmatpush3.bf16.msra.mxu0 %v4715_v34  ;;  %4527 = vmatpush3.bf16.msra.mxu1 %v4716_v23 }
 0x216   : > { %4528 = vmatprep.subr.bf16.mxu1 %v4727_v32  ;;  %4534 = vmatprep.subr.bf16.mxu0 %v4727_v32 }
 0x218   : > { %4519 = vmatmul.mubr.msk.bf16.vlgmr.msra.gmra.mrb[64].mxu0 %vm363_vm0, %v3034_v21 }
 0x219   : > { %4529 = vmatpush3.bf16.msra.mxu1 %v4717_v35  ;;  %4535 = vmatpush3.bf16.msra.mxu0 %v4718_v36 }
 0x21a   : > { %4536 = vmatprep.subr.bf16.mxu0 %v4727_v32  ;;  %4546 = vmatprep.subr.bf16.mxu1 %v4727_v32 }
 0x21b   : > { %v924_v39 = vpop.f32.mrb[12].mxu0  ;;  %4542 = vmatprep.mubr.msk.bf16.mxu0 %vm4741_vm11, %v4727_v32 }
 0x21c   : > { %v931_v40 = vadd.f32 %v924_v39, %v828_v15  ;;  %v4208_v41 = vpop.f32.mrb[13].mxu0  ;;  %4531 = vmatmul.mubr.msk.bf16.vlgmr.msra.gmra.mrb[64].mxu1 %vm363_vm0, %v4960_v46 }
 0x21d   : > { %v927_v42 = vpop.f32.mrb[14].mxu0  ;;  %4537 = vmatpush3.bf16.msra.mxu0 %v4719_v37  ;;  %4547 = vmatpush3.bf16.msra.mxu1 %v4720_v38 }
 0x21e   : > { %v932_v30 = vadd.f32 %v927_v42, %v829_v19  ;;  %v4209_v45 = vpop.f32.mrb[15].mxu0  ;;  %4538 = vmatprep.subr.bf16.mxu0 %v4727_v32  ;;  %4548 = vmatprep.subr.bf16.mxu1 %v4727_v32 }
 0x21f   : > { %v1008_v0 = vpop.f32.mrb[12].mxu1  ;;  %4554 = vmatprep.mubr.msk.bf16.mxu1 %vm4741_vm11, %v4727_v32 }
 0x220   : > { %v1015_v24 = vadd.f32 %v1008_v0, %v931_v40  ;;  %v4220_v46 = vpop.f32.mrb[13].mxu1 }
 0x221   : > { %v1011_v47 = vpop.f32.mrb[14].mxu1  ;;  %4539 = vmatpush3.bf16.msra.mxu0 %v4721_v43  ;;  %4549 = vmatpush3.bf16.msra.mxu1 %v4722_v44 }
 0x222   : > { %v1016_v50 = vadd.f32 %v1011_v47, %v932_v30  ;;  %v4221_v53 = vpop.f32.mrb[15].mxu1  ;;  %4540 = vmatprep.subr.bf16.mxu0 %v4727_v32  ;;  %4550 = vmatprep.subr.bf16.mxu1 %v4727_v32 }
 0x225   : > { %4541 = vmatpush3.bf16.msra.mxu0 %v4723_v48  ;;  %4551 = vmatpush3.bf16.msra.mxu1 %v4724_v49 }
 0x226   : > { %4552 = vmatprep.subr.bf16.mxu1 %v4727_v32 }
 0x228   : > { %4543 = vmatmul.mubr.msk.bf16.vlgmr.msra.gmra.mrb[68].mxu0 %vm363_vm0, %v3211_v57 }
 0x229   : > { %4553 = vmatpush3.bf16.msra.mxu1 %v4725_v56 }
 0x22b   : > { %v1092_v59 = vpop.f32.mrb[16].mxu0 }
 0x22c   : > { %v1099_v60 = vadd.f32 %v1092_v59, %v1015_v24  ;;  %v4232_v61 = vpop.f32.mrb[17].mxu0  ;;  %4555 = vmatmul.mubr.msk.bf16.vlgmr.msra.gmra.mrb[68].mxu1 %vm363_vm0, %v3292_v58 }
 0x22d   : > { %v1095_v62 = vpop.f32.mrb[18].mxu0 }
 0x22e   : > { %v1100_v63 = vadd.f32 %v1095_v62, %v1016_v50  ;;  %v4233_v1 = vpop.f32.mrb[19].mxu0 }
 0x22f   : > { %v1181_v2 = vpop.f32.mrb[16].mxu1 }
 0x230   : > { %v1188_v3 = vadd.f32 %v1181_v2, %v1099_v60  ;;  %v4244_v4 = vpop.f32.mrb[17].mxu1 }
 0x231   : > { %v1184_v5 = vpop.f32.mrb[18].mxu1 }
 0x232   : > { %v1189_v6 = vadd.f32 %v1184_v5, %v1100_v63  ;;  %v4245_v7 = vpop.f32.mrb[19].mxu1 }
 0x23b   : > { %v1272_v8 = vpop.f32.mrb[20].mxu0 }
 0x23c   : > { %v1279_v9 = vadd.f32 %v1272_v8, %v1188_v3  ;;  %v4256_v10 = vpop.f32.mrb[21].mxu0 }
 0x23d   : > { %v1275_v11 = vpop.f32.mrb[22].mxu0 }
 0x23e   : > { %v1280_v12 = vadd.f32 %v1275_v11, %v1189_v6  ;;  %v4257_v13 = vpop.f32.mrb[23].mxu0 }
 0x23f   : > { %v1357_v14 = vpop.f32.mrb[20].mxu1 }
 0x240   : > { %v1364_v16 = vadd.f32 %v1357_v14, %v1279_v9  ;;  %v4268_v17 = vpop.f32.mrb[21].mxu1 }
 0x241   : > { %v1360_v18 = vpop.f32.mrb[22].mxu1 }
 0x242   : > { %v1365_v22 = vadd.f32 %v1360_v18, %v1280_v12  ;;  %v4269_v51 = vpop.f32.mrb[23].mxu1 }
 0x24b   : > { %v1438_v26 = vpop.f32.mrb[24].mxu0 }
 0x24c   : > { %v1445_v27 = vadd.f32 %v1438_v26, %v1364_v16  ;;  %v4280_v28 = vpop.f32.mrb[25].mxu0 }
 0x24d   : > { %v1441_v29 = vpop.f32.mrb[26].mxu0 }
 0x24e   : > { %v1446_v31 = vadd.f32 %v1441_v29, %v1365_v22  ;;  %v4281_v32 = vpop.f32.mrb[27].mxu0 }
 0x24f   : > { %v1514_v52 = vpop.f32.mrb[24].mxu1 }
 0x250   : > { %v1521_v15 = vadd.f32 %v1514_v52, %v1445_v27  ;;  %v4292_v33 = vpop.f32.mrb[25].mxu1 }
 0x251   : > { %v1517_v20 = vpop.f32.mrb[26].mxu1 }
 0x252   : > { %v1522_v34 = vadd.f32 %v1517_v20, %v1446_v31  ;;  %v4293_v23 = vpop.f32.mrb[27].mxu1 }
 0x25b   : > { %v1598_v19 = vpop.f32.mrb[28].mxu0 }
 0x25c   : > { %v1605_v25 = vadd.f32 %v1598_v19, %v1521_v15  ;;  %v4304_v35 = vpop.f32.mrb[29].mxu0 }
 0x25d   : > { %v1601_v36 = vpop.f32.mrb[30].mxu0 }
 0x25e   : > { %v1606_v21 = vadd.f32 %v1601_v36, %v1522_v34  ;;  %v4305_v37 = vpop.f32.mrb[31].mxu0 }
 0x25f   : > { %v1681_v38 = vpop.f32.mrb[28].mxu1 }
 0x260   : > { %v1688_v39 = vadd.f32 %v1681_v38, %v1605_v25  ;;  %v4316_v40 = vpop.f32.mrb[29].mxu1 }
 0x261   : > { %v1684_v41 = vpop.f32.mrb[30].mxu1 }
 0x262   : > { %v1689_v42 = vadd.f32 %v1684_v41, %v1606_v21  ;;  %v4317_v43 = vpop.f32.mrb[31].mxu1 }
 0x26b   : > { %v1767_v44 = vpop.f32.mrb[32].mxu0 }
 0x26c   : > { %v1774_v30 = vadd.f32 %v1767_v44, %v1688_v39  ;;  %v4328_v45 = vpop.f32.mrb[33].mxu0 }
 0x26d   : > { %v1770_v0 = vpop.f32.mrb[34].mxu0 }
 0x26e   : > { %v1775_v24 = vadd.f32 %v1770_v0, %v1689_v42  ;;  %v4329_v46 = vpop.f32.mrb[35].mxu0 }
 0x26f   : > { %v1851_v47 = vpop.f32.mrb[32].mxu1 }
 0x270   : > { %v1858_v48 = vadd.f32 %v1851_v47, %v1774_v30  ;;  %v4340_v49 = vpop.f32.mrb[33].mxu1 }
 0x271   : > { %v1854_v50 = vpop.f32.mrb[34].mxu1 }
 0x272   : > { %v1859_v53 = vadd.f32 %v1854_v50, %v1775_v24  ;;  %v4341_v54 = vpop.f32.mrb[35].mxu1 }
 0x27b   : > { %v1940_v55 = vpop.f32.mrb[36].mxu0 }
 0x27c   : > { %v1947_v56 = vadd.f32 %v1940_v55, %v1858_v48  ;;  %v4352_v57 = vpop.f32.mrb[37].mxu0 }
 0x27d   : > { %v1943_v58 = vpop.f32.mrb[38].mxu0 }
 0x27e   : > { %v1948_v59 = vadd.f32 %v1943_v58, %v1859_v53  ;;  %v4353_v60 = vpop.f32.mrb[39].mxu0 }
 0x27f   : > { %v2031_v61 = vpop.f32.mrb[36].mxu1 }
 0x280   : > { %v2038_v62 = vadd.f32 %v2031_v61, %v1947_v56  ;;  %v4364_v63 = vpop.f32.mrb[37].mxu1 }
 0x281   : > { %v2034_v1 = vpop.f32.mrb[38].mxu1 }
 0x282   : > { %v2039_v2 = vadd.f32 %v2034_v1, %v1948_v59  ;;  %v4365_v3 = vpop.f32.mrb[39].mxu1 }
 0x28b   : > { %v2116_v4 = vpop.f32.mrb[40].mxu0 }
 0x28c   : > { %v2123_v5 = vadd.f32 %v2116_v4, %v2038_v62  ;;  %v4376_v6 = vpop.f32.mrb[41].mxu0 }
 0x28d   : > { %v2119_v7 = vpop.f32.mrb[42].mxu0 }
 0x28e   : > { %v2124_v8 = vadd.f32 %v2119_v7, %v2039_v2  ;;  %v4377_v9 = vpop.f32.mrb[43].mxu0 }
 0x28f   : > { %v2197_v10 = vpop.f32.mrb[40].mxu1 }
 0x290   : > { %v2204_v11 = vadd.f32 %v2197_v10, %v2123_v5  ;;  %v4388_v12 = vpop.f32.mrb[41].mxu1 }
 0x291   : > { %v2200_v13 = vpop.f32.mrb[42].mxu1 }
 0x292   : > { %v2205_v14 = vadd.f32 %v2200_v13, %v2124_v8  ;;  %v4389_v16 = vpop.f32.mrb[43].mxu1 }
 0x29b   : > { %v2273_v17 = vpop.f32.mrb[44].mxu0 }
 0x29c   : > { %v2280_v18 = vadd.f32 %v2273_v17, %v2204_v11  ;;  %v4400_v22 = vpop.f32.mrb[45].mxu0 }
 0x29d   : > { %v2276_v51 = vpop.f32.mrb[46].mxu0 }
 0x29e   : > { %v2281_v26 = vadd.f32 %v2276_v51, %v2205_v14  ;;  %v4401_v27 = vpop.f32.mrb[47].mxu0 }
 0x29f   : > { %v2357_v28 = vpop.f32.mrb[44].mxu1 }
 0x2a0   : > { %v2364_v29 = vadd.f32 %v2357_v28, %v2280_v18  ;;  %v4412_v31 = vpop.f32.mrb[45].mxu1 }
 0x2a1   : > { %v2360_v32 = vpop.f32.mrb[46].mxu1 }
 0x2a2   : > { %v2365_v52 = vadd.f32 %v2360_v32, %v2281_v26  ;;  %v4413_v15 = vpop.f32.mrb[47].mxu1 }
 0x2ab   : > { %v2443_v33 = vpop.f32.mrb[48].mxu0 }
 0x2ac   : > { %v2450_v20 = vadd.f32 %v2443_v33, %v2364_v29  ;;  %v4424_v34 = vpop.f32.mrb[49].mxu0 }
 0x2ad   : > { %v2446_v23 = vpop.f32.mrb[50].mxu0 }
 0x2ae   : > { %v2451_v19 = vadd.f32 %v2446_v23, %v2365_v52  ;;  %v4425_v25 = vpop.f32.mrb[51].mxu0  ;;  %v3926_v23 = vld [vmem:[%s5650_s2] ss:$0 sm:$0xff] }
 0x2af   : > { %v2532_v35 = vpop.f32.mrb[48].mxu1 }
 0x2b0   : > { %v2539_v36 = vadd.f32 %v2532_v35, %v2450_v20  ;;  %v4436_v21 = vpop.f32.mrb[49].mxu1 }
 0x2b1   : > { %v2535_v37 = vpop.f32.mrb[50].mxu1 }
 0x2b2   : > { %v2540_v38 = vadd.f32 %v2535_v37, %v2451_v19  ;;  %v4437_v39 = vpop.f32.mrb[51].mxu1 }
 0x2bb   : > { %v2616_v40 = vpop.f32.mrb[52].mxu0 }
 0x2bc   : > { %v2623_v41 = vadd.f32 %v2616_v40, %v2539_v36  ;;  %v4448_v42 = vpop.f32.mrb[53].mxu0 }
 0x2bd   : > { %v2619_v43 = vpop.f32.mrb[54].mxu0 }
 0x2be   : > { %v2624_v44 = vadd.f32 %v2619_v43, %v2540_v38  ;;  %v4449_v30 = vpop.f32.mrb[55].mxu0  ;;  %v3927_v38 = vld [vmem:[%s5651_s3] ss:$0 sm:$0xff] }
 0x2bf   : > { %v2695_v45 = vpop.f32.mrb[52].mxu1  ;;  %v3928_v43 = vld [vmem:[%s5652_s4] ss:$0 sm:$0xff] }
 0x2c0   : > { %v2702_v0 = vadd.f32 %v2695_v45, %v2623_v41  ;;  %v4460_v24 = vpop.f32.mrb[53].mxu1 }
 0x2c1   : > { %v2698_v46 = vpop.f32.mrb[54].mxu1 }
 0x2c2   : > { %v2703_v47 = vadd.f32 %v2698_v46, %v2624_v44  ;;  %v4461_v48 = vpop.f32.mrb[55].mxu1 }
 0x2cb   : > { %v2779_v49 = vpop.f32.mrb[56].mxu0 }
 0x2cc   : > { %v2786_v50 = vadd.f32 %v2779_v49, %v2702_v0  ;;  %v4472_v53 = vpop.f32.mrb[57].mxu0 }
 0x2cd   : > { %v2782_v54 = vpop.f32.mrb[58].mxu0 }
 0x2ce   : > { %v2787_v55 = vadd.f32 %v2782_v54, %v2703_v47  ;;  %v4473_v56 = vpop.f32.mrb[59].mxu0 }
 0x2cf   : > { %v2860_v57 = vpop.f32.mrb[56].mxu1 }
 0x2d0   : > { %v2867_v58 = vadd.f32 %v2860_v57, %v2786_v50  ;;  %v4484_v59 = vpop.f32.mrb[57].mxu1 }
 0x2d1   : > { %v2863_v60 = vpop.f32.mrb[58].mxu1 }
 0x2d2   : > { %v2868_v61 = vadd.f32 %v2863_v60, %v2787_v55  ;;  %v4485_v62 = vpop.f32.mrb[59].mxu1 }
 0x2db   : > { %v2939_v63 = vpop.f32.mrb[60].mxu0 }
 0x2dc   : > { %v2946_v1 = vadd.f32 %v2939_v63, %v2867_v58  ;;  %v4496_v2 = vpop.f32.mrb[61].mxu0 }
 0x2dd   : > { %v2942_v3 = vpop.f32.mrb[62].mxu0 }
 0x2de   : > { %v2947_v4 = vadd.f32 %v2942_v3, %v2868_v61  ;;  %v4497_v5 = vpop.f32.mrb[63].mxu0 }
 0x2df   : > { %v3015_v6 = vpop.f32.mrb[60].mxu1 }
 0x2e0   : > { %v3022_v7 = vadd.f32 %v3015_v6, %v2946_v1  ;;  %v4508_v8 = vpop.f32.mrb[61].mxu1 }
 0x2e1   : > { %v3018_v9 = vpop.f32.mrb[62].mxu1 }
 0x2e2   : > { %v3023_v10 = vadd.f32 %v3018_v9, %v2947_v4  ;;  %v4509_v11 = vpop.f32.mrb[63].mxu1 }
 0x2eb   : > { %v3096_v12 = vpop.f32.mrb[64].mxu0 }
 0x2ec   : > { %v3103_v13 = vadd.f32 %v3096_v12, %v3022_v7  ;;  %v4520_v14 = vpop.f32.mrb[65].mxu0 }
 0x2ed   : > { %v3099_v16 = vpop.f32.mrb[66].mxu0 }
 0x2ee   : > { %v3104_v17 = vadd.f32 %v3099_v16, %v3023_v10  ;;  %v4521_v18 = vpop.f32.mrb[67].mxu0 }
 0x2ef   : > { %v3182_v22 = vpop.f32.mrb[64].mxu1 }
 0x2f0   : > { %v3189_v51 = vadd.f32 %v3182_v22, %v3103_v13  ;;  %v4532_v26 = vpop.f32.mrb[65].mxu1 }
 0x2f1   : > { %v3185_v27 = vpop.f32.mrb[66].mxu1 }
 0x2f2   : > { %v3190_v28 = vadd.f32 %v3185_v27, %v3104_v17  ;;  %v4533_v29 = vpop.f32.mrb[67].mxu1 }
 0x2fb   : > { %v3273_v31 = vpop.f32.mrb[68].mxu0 }
 0x2fc   : > { %v3280_v32 = vadd.f32 %v3273_v31, %v3189_v51  ;;  %v4544_v52 = vpop.f32.mrb[69].mxu0 }
 0x2fd   : > { %v3276_v15 = vpop.f32.mrb[70].mxu0 }
 0x2fe   : > { %v3281_v33 = vadd.f32 %v3276_v15, %v3190_v28  ;;  %v4545_v20 = vpop.f32.mrb[71].mxu0 }
 0x2ff   : > { %v3354_v34 = vpop.f32.mrb[68].mxu1 }
 0x300   : > { %v3361_v19 = vadd.f32 %v3354_v34, %v3280_v32  ;;  %v4556_v25 = vpop.f32.mrb[69].mxu1 }
 0x301   : > { %v3357_v35 = vpop.f32.mrb[70].mxu1 }
 0x302   : > { %v3370_v36 = vadd.f32 %v3926_v23, %v3361_v19  ;;  %v3362_v21 = vadd.f32 %v3357_v35, %v3281_v33  ;;  %v4557_v37 = vpop.f32.mrb[71].mxu1 }
 0x304   : > { %v3372_v39 = vmax.f32 %v3370_v36, 0.0  ;;  %v3371_v40 = vadd.f32 %v3926_v23, %v3362_v21 }
 0x306   : > { %v3381_v41 = vmul.f32 %v3927_v38, %v3372_v39  ;;  %v3373_v42 = vmax.f32 %v3371_v40, 0.0 }
 0x308   : > { %v3382_v44 = vmul.f32 %v3927_v38, %v3373_v42  ;;  %v3390_v30 = vadd.f32 %v3928_v43, %v3381_v41 }
 0x30a   : > { %v3391_v45 = vadd.f32 %v3928_v43, %v3382_v44 }
 0x30c   : > { %v3944_v0 = vpack.c.bf16 %v3391_v45, %v3390_v30 }
 0x30e   : > { %3945 = vst [vmem:[%s224_s22] sm:$0xff] %v3944_v0  }
 0x30f PF: > { %s15_s18 = sadd.s32 1, %s4734_s18  }
 0x310   : > { %p12_p4 = scmp.ge.s32.totalorder %s15_s18, 4  }
 0x312   :  { %14 = sbr.rel (!%p12_p4) target bundleno = 1 (0x1), region = 105 }

// kernel: tile.48
= control target key start
LH: loop header
LB: loop body
LE: loop exit
PB: predicated region body
PF: predicated region fallthrough
CT: control target
= control target key end

     0   :  { %s40_s0 = inlined_call_operand.vmem [shape: f32[8], index: 0, kind: input, shape index: {}]   ;;  %s41_s1 = inlined_call_operand.vmem [shape: f32[32,8], index: 1, kind: output, shape index: {}]  }
   0x1   :  { %v4_v0 = vld [vmem:[%s40_s0] ss:$0 sm:$0xff] }
   0x2   :  { %5 = vst [vmem:[%s41_s1] sm:$0xff] %v4_v0  ;;  %12 = vst [vmem:[%s41_s1 + $0x8] sm:$0xff] %v4_v0 }
   0x3   :  { %13 = vst [vmem:[%s41_s1 + $0x10] sm:$0xff] %v4_v0  ;;  %14 = vst [vmem:[%s41_s1 + $0x18] sm:$0xff] %v4_v0 }

// kernel: tile.49
= control target key start
LH: loop header
LB: loop body
LE: loop exit
PB: predicated region body
PF: predicated region fallthrough
CT: control target
= control target key end

     0   :  { %s7_s6 = smov 3  ;;  %s21_s9 = smov 3  ;;  %vm4_vm0 = vcmask 64512   ;;  %vm11_vm1 = vcmask 1048512   ;;  %vm18_vm2 = vcmask 982912   ;;  %vm25_vm3 = vcmask 917312   ;;  %s232_s0 = inlined_call_operand.vmem [shape: f32[32,8], index: 0, kind: input, shape index: {}]   ;;  %s233_s1 = inlined_call_operand.vmem [shape: f32[1,256], index: 1, kind: output, shape index: {}]  }
   0x1   :  { %v122_v0 = vld [vmem:[%s232_s0 + $0xf] ss:$16 sm:%s7_s6]   ;;  %s153_s10 = smov 120   ;;  %v124_v1 = vld [vmem:[%s232_s0 + $0xd] ss:$16 sm:%s21_s9]   ;;  %s14_s13 = smov 3 }
   0x2   :  { %9 = vrot.lane.b32.xlu0 %v122_v0, %s153_s10  ;;  %s154_s14 = smov 104   ;;  %v123_v2 = vld [vmem:[%s232_s0 + $0xe] ss:$16 sm:%s14_s13]   ;;  %s28_s17 = smov 3  ;;  %vm32_vm4 = vcmask 851712   ;;  %vm39_vm5 = vcmask 786112  }
   0x3   :  { %23 = vrot.lane.b32.xlu1 %v124_v1, %s154_s14  ;;  %v125_v3 = vld [vmem:[%s232_s0 + $0xc] ss:$16 sm:%s28_s17]   ;;  %s35_s20 = smov 3  ;;  %s42_s21 = smov 3  ;;  %vm46_vm6 = vcmask 720512   ;;  %vm53_vm7 = vcmask 654912  }
   0x4   :  { %s155_s22 = smov 112   ;;  %s156_s23 = smov 96   ;;  %v126_v4 = vld [vmem:[%s232_s0 + $0xb] ss:$16 sm:%s35_s20]   ;;  %v127_v5 = vld [vmem:[%s232_s0 + $0xa] ss:$16 sm:%s42_s21]  }
   0x5   :  { %s49_s28 = smov 3  ;;  %s56_s29 = smov 3  ;;  %vm60_vm8 = vcmask 589312   ;;  %vm67_vm9 = vcmask 523712   ;;  %vm74_vm10 = vcmask 458112   ;;  %vm81_vm11 = vcmask 392512  }
   0x6   :  { %16 = vrot.lane.b32.xlu0 %v123_v2, %s155_s22  ;;  %s157_s30 = smov 88   ;;  %s158_s2 = smov 80   ;;  %v128_v6 = vld [vmem:[%s232_s0 + $0x9] ss:$16 sm:%s49_s28]   ;;  %vm88_vm12 = vcmask 326912   ;;  %vm95_vm13 = vcmask 261312  }
   0x7   :  { %30 = vrot.lane.b32.xlu1 %v125_v3, %s156_s23  ;;  %v129_v7 = vld [vmem:[%s232_s0 + $0x8] ss:$16 sm:%s56_s29]   ;;  %s63_s7 = smov 3  ;;  %s70_s8 = smov 3  ;;  %vm102_vm14 = vcmask 195712   ;;  %vm109_vm15 = vcmask 130112  }
   0x8   :  { %s159_s9 = smov 72   ;;  %s160_s10 = smov 64   ;;  %v130_v8 = vld [vmem:[%s232_s0 + $0x7] ss:$16 sm:%s63_s7]   ;;  %v131_v9 = vld [vmem:[%s232_s0 + $0x6] ss:$16 sm:%s70_s8]  }
   0x9   :  { %s2_s13 = smov 3  ;;  %s77_s16 = smov 3 }
   0xa   :  { %37 = vrot.lane.b32.xlu0 %v126_v4, %s157_s30  ;;  %v3_v10 = vld [vmem:[%s232_s0] ss:$16 sm:%s2_s13]   ;;  %s84_s19 = smov 3  ;;  %s161_s20 = smov 56  }
   0xb   :  { %44 = vrot.lane.b32.xlu1 %v127_v5, %s158_s2  ;;  %5 = vst.msk [vmem:[#allocation0] ss:$8 sm:$0x3] %vm4_vm0, %v3_v10   ;;  %s162_s21 = smov 48   ;;  %v132_v11 = vld [vmem:[%s232_s0 + $0x5] ss:$16 sm:%s77_s16]  }
   0xc   :  { %v133_v12 = vld [vmem:[%s232_s0 + $0x4] ss:$16 sm:%s84_s19]   ;;  %s91_s26 = smov 3  ;;  %s98_s27 = smov 3 }
   0xd   :  { %s163_s28 = smov 40   ;;  %s164_s29 = smov 32   ;;  %v134_v13 = vld [vmem:[%s232_s0 + $0x3] ss:$16 sm:%s91_s26]   ;;  %v135_v14 = vld [vmem:[%s232_s0 + $0x2] ss:$16 sm:%s98_s27]  }
   0xe   :  { %51 = vrot.lane.b32.xlu0 %v128_v6, %s159_s9  ;;  %s105_s5 = smov 3  ;;  %s165_s6 = smov 24  }
   0xf   :  { %58 = vrot.lane.b32.xlu1 %v129_v7, %s160_s10  ;;  %s166_s7 = smov 16   ;;  %v136_v15 = vld [vmem:[%s232_s0 + $0x1] ss:$16 sm:%s105_s5]   ;;  %s167_s0 = smov 8  }
  0x12   :  { %65 = vrot.lane.b32.xlu0 %v130_v8, %s161_s20 }
  0x13   :  { %72 = vrot.lane.b32.xlu1 %v131_v9, %s162_s21 }
  0x16   :  { %79 = vrot.lane.b32.xlu0 %v132_v11, %s163_s28 }
  0x17   :  { %86 = vrot.lane.b32.xlu1 %v133_v12, %s164_s29 }
  0x1a   :  { %93 = vrot.lane.b32.xlu0 %v134_v13, %s165_s6 }
  0x1b   :  { %100 = vrot.lane.b32.xlu1 %v135_v14, %s166_s7 }
  0x1e   :  { %107 = vrot.lane.b32.xlu0 %v136_v15, %s167_s0 }
  0x74   :  { %v10_v16 = vpop.permute.xlu0 %9  }
  0x75   :  { %12 = vst.msk [vmem:[#allocation0] ss:$8 sm:$0x3] %vm11_vm1, %v10_v16   ;;  %v24_v17 = vpop.permute.xlu1 %23  }
  0x78   :  { %v17_v18 = vpop.permute.xlu0 %16  }
  0x79   :  { %19 = vst.msk [vmem:[#allocation0] ss:$8 sm:$0x3] %vm18_vm2, %v17_v18   ;;  %v31_v19 = vpop.permute.xlu1 %30  }
  0x7a   :  { %26 = vst.msk [vmem:[#allocation0] ss:$8 sm:$0x3] %vm25_vm3, %v24_v17  }
  0x7b   :  { %33 = vst.msk [vmem:[#allocation0] ss:$8 sm:$0x3] %vm32_vm4, %v31_v19  }
  0x7c   :  { %v38_v20 = vpop.permute.xlu0 %37  }
  0x7d   :  { %40 = vst.msk [vmem:[#allocation0] ss:$8 sm:$0x3] %vm39_vm5, %v38_v20   ;;  %v45_v21 = vpop.permute.xlu1 %44  }
  0x7e   :  { %47 = vst.msk [vmem:[#allocation0] ss:$8 sm:$0x3] %vm46_vm6, %v45_v21  }
  0x80   :  { %v52_v22 = vpop.permute.xlu0 %51  }
  0x81   :  { %54 = vst.msk [vmem:[#allocation0] ss:$8 sm:$0x3] %vm53_vm7, %v52_v22   ;;  %v59_v23 = vpop.permute.xlu1 %58  }
  0x82   :  { %61 = vst.msk [vmem:[#allocation0] ss:$8 sm:$0x3] %vm60_vm8, %v59_v23  }
  0x84   :  { %v66_v24 = vpop.permute.xlu0 %65  }
  0x85   :  { %68 = vst.msk [vmem:[#allocation0] ss:$8 sm:$0x3] %vm67_vm9, %v66_v24   ;;  %v73_v25 = vpop.permute.xlu1 %72  }
  0x86   :  { %75 = vst.msk [vmem:[#allocation0] ss:$8 sm:$0x3] %vm74_vm10, %v73_v25  }
  0x88   :  { %v80_v26 = vpop.permute.xlu0 %79  }
  0x89   :  { %82 = vst.msk [vmem:[#allocation0] ss:$8 sm:$0x3] %vm81_vm11, %v80_v26   ;;  %v87_v27 = vpop.permute.xlu1 %86  }
  0x8a   :  { %89 = vst.msk [vmem:[#allocation0] ss:$8 sm:$0x3] %vm88_vm12, %v87_v27  }
  0x8c   :  { %v94_v28 = vpop.permute.xlu0 %93  }
  0x8d   :  { %96 = vst.msk [vmem:[#allocation0] ss:$8 sm:$0x3] %vm95_vm13, %v94_v28   ;;  %v101_v29 = vpop.permute.xlu1 %100  }
  0x8e   :  { %103 = vst.msk [vmem:[#allocation0] ss:$8 sm:$0x3] %vm102_vm14, %v101_v29  }
  0x90   :  { %v108_v30 = vpop.permute.xlu0 %107  }
  0x91   :  { %110 = vst.msk [vmem:[#allocation0] ss:$8 sm:$0x3] %vm109_vm15, %v108_v30  }
  0x98   :  { %v114_v31 = vld [vmem:[#allocation0] sm:$0x1]  ;;  %v118_v32 = vld [vmem:[#allocation0 + $0x8] sm:$0x1] }
  0x99   :  { %116 = vst [vmem:[%s233_s1] sm:$0x1] %v114_v31  ;;  %137 = vst [vmem:[%s233_s1 + $0x1] sm:$0x1] %v118_v32 }

// kernel: aspp_block_forward.3
= control target key start
LH: loop header
LB: loop body
LE: loop exit
PB: predicated region body
PF: predicated region fallthrough
CT: control target
= control target key end

     0   :  { %s4425_s24 = smov 0   ;;  %s5606_s0 = inlined_call_operand.vmem [shape: bf16[2,16,128], index: 0, kind: input, shape index: {}]   ;;  %s5607_s1 = inlined_call_operand.vmem [shape: bf16[32,16], index: 1, kind: input, shape index: {}]   ;;  %s5608_s2 = inlined_call_operand.vmem [shape: bf16[128,256], index: 2, kind: input, shape index: {}]   ;;  %s5609_s3 = inlined_call_operand.vmem [shape: bf16[9,256,256], index: 3, kind: input, shape index: {}]   ;;  %s5610_s4 = inlined_call_operand.vmem [shape: f32[1,256], index: 4, kind: input, shape index: {}]   ;;  %s5611_s5 = inlined_call_operand.vmem [shape: f32[1,256], index: 5, kind: input, shape index: {}]   ;;  %s5612_s6 = inlined_call_operand.vmem [shape: f32[1,256], index: 6, kind: input, shape index: {}]   ;;  %s5613_s7 = inlined_call_operand.vmem [shape: f32[2,32,256], index: 7, kind: output, shape index: {}]  }
   0x1 LB: > { %s3249_s25 = sadd.s32 4294967295, %s4378_s24   ;;  %p3253_p0 = scmp.ge.s32.totalorder %s4378_s24, 1  ;;  %s4378_s24 = sphi %s4425_s24, %s17_s24  }
   0x2   : > { %p237_p1 = scmp.lt.s32.totalorder %s4378_s24, 3 }
   0x4   : > { %p238_p2 = pnand %p3253_p0, %p237_p1 }
   0x5   : > { %p269_p3 = scmp.lt.s32.totalorder (!%p238_p2), %s3249_s25, 1  ;;  %v3914_v0 = vld [vmem:[%s5607_s1] sm:$0xff] (!%p238_p2)   ;;  %vm302_vm0 = vcmask (!%p238_p2), 130048   ;;  %v3915_v3 = vld [vmem:[%s5607_s1 + $0x8] sm:$0xff] (!%p238_p2)   ;;  %v3921_v5 = vld [vmem:[%s5608_s2 + $0x14] ss:$8 sps:$4 sm:$0xff] (!%p238_p2)  }
   0x6   : > { %241 = sbr.rel (%p238_p2) target bundleno = 1204 (0x4b4), region = 48  ;;  %3832 = vmatprep.mubr.msk.bf16.mxu1 (!%p238_p2), %vm302_vm0, %v3914_v0  ;;  %v3918_v1 = vld [vmem:[%s5608_s2 + $0x4] ss:$8 sps:$4 sm:$0xff] (!%p238_p2)   ;;  %v3916_v4 = vld [vmem:[%s5608_s2] ss:$8 sps:$4 sm:$0xff] (!%p238_p2)   ;;  %v4380_v19 = vmov (!%p238_p2), 0  }
   0x7   : > { %v3919_v6 = vld [vmem:[%s5608_s2 + $0x10] ss:$8 sps:$4 sm:$0xff] (!%p238_p2)   ;;  %v3924_v7 = vld [vmem:[%s5608_s2 + $0x24] ss:$8 sps:$4 sm:$0xff] (!%p238_p2)   ;;  %v3922_v8 = vld [vmem:[%s5608_s2 + $0x20] ss:$8 sps:$4 sm:$0xff] (!%p238_p2)  }
   0x8   : > { %v3927_v9 = vld [vmem:[%s5608_s2 + $0x34] ss:$8 sps:$4 sm:$0xff] (!%p238_p2)   ;;  %v3925_v10 = vld [vmem:[%s5608_s2 + $0x30] ss:$8 sps:$4 sm:$0xff] (!%p238_p2)   ;;  %v3930_v11 = vld [vmem:[%s5608_s2 + $0x44] ss:$8 sps:$4 sm:$0xff] (!%p238_p2)  }
   0x9   : > { %v3928_v12 = vld [vmem:[%s5608_s2 + $0x40] ss:$8 sps:$4 sm:$0xff] (!%p238_p2)   ;;  %v3933_v13 = vld [vmem:[%s5608_s2 + $0x54] ss:$8 sps:$4 sm:$0xff] (!%p238_p2)   ;;  %v3931_v14 = vld [vmem:[%s5608_s2 + $0x50] ss:$8 sps:$4 sm:$0xff] (!%p238_p2)  }
   0xa   : > { %v3936_v15 = vld [vmem:[%s5608_s2 + $0x64] ss:$8 sps:$4 sm:$0xff] (!%p238_p2)   ;;  %v3934_v16 = vld [vmem:[%s5608_s2 + $0x60] ss:$8 sps:$4 sm:$0xff] (!%p238_p2)   ;;  %v3939_v17 = vld [vmem:[%s5608_s2 + $0x74] ss:$8 sps:$4 sm:$0xff] (!%p238_p2)  }
   0xb   : > { %v3937_v18 = vld [vmem:[%s5608_s2 + $0x70] ss:$8 sps:$4 sm:$0xff] (!%p238_p2)   ;;  %v4381_v26 = vmov (!%p238_p2), 0.0   ;;  %vm533_vm1 = vcmask (!%p238_p2), 1040384   ;;  %s4382_s22 = smov (!%p238_p2), 8   ;;  %vm523_vm2 = vcmask (!%p238_p2), 123904  }
   0xc   : > { %509 = vst [vmem:[#allocation2] sm:$0xff] (!%p238_p2), %v4381_v26  ;;  %510 = vst [vmem:[#allocation2 + $0x8] sm:$0xff] (!%p238_p2), %v4381_v26  ;;  %v3940_v49 = vld [vmem:[%s5609_s3 + $0x404] ss:$8 sps:$4 sm:$0xff] (!%p238_p2)   ;;  %v3942_v50 = vld [vmem:[%s5609_s3 + $0x400] ss:$8 sps:$4 sm:$0xff] (!%p238_p2)  }
   0xd   : > { %s5615_s25 = smov (!%p269_p3, %s3249_s25), 1  ;;  %511 = vst.msk [vmem:[#allocation2 + $0x10] sm:$0xff] %vm302_vm0, %v4381_v26  ;;  %512 = vst [vmem:[#allocation2 + $0x18] sm:$0xff] %v4381_v26  ;;  %1958 = vmatprep.subr.bf16.mxu0 %v3940_v49  ;;  %v3943_v51 = vld [vmem:[%s5609_s3 + $0x414] ss:$8 sps:$4 sm:$0xff]   ;;  %vm589_vm3 = vcmask 1047617  }
   0xe   : > { %s3825_s28 = sshll.u32 %s5615_s25, 3  ;;  %514 = vst.msk [vmem:[#allocation2 + $0x28] sm:$0xff] %vm302_vm0, %v4381_v26  ;;  %515 = vst [vmem:[#allocation2 + $0x30] sm:$0xff] %v4381_v26  ;;  %1959 = vmatpush1.bf16.msra.mxu0 %v3942_v50  ;;  %v3945_v52 = vld [vmem:[%s5609_s3 + $0x410] ss:$8 sps:$4 sm:$0xff]   ;;  %vm594_vm4 = vcmask 1047616  }
   0xf   : > { %s273_s8 = scalar_lea.vmem %s5606_s0, %s3825_s28  ;;  %517 = vst.msk [vmem:[#allocation2 + $0x40] sm:$0xff] %vm302_vm0, %v4381_v26  ;;  %518 = vst [vmem:[#allocation2 + $0x48] sm:$0xff] %v4381_v26  ;;  %1960 = vmatprep.subr.bf16.mxu0 %v3943_v51  ;;  %v3946_v53 = vld [vmem:[%s5609_s3 + $0x424] ss:$8 sps:$4 sm:$0xff]   ;;  %v3948_v54 = vld [vmem:[%s5609_s3 + $0x420] ss:$8 sps:$4 sm:$0xff]  }
  0x10   : > { %v3913_v2 = vld [vmem:[%s273_s8] sm:$0xff]   ;;  %520 = vst.msk [vmem:[#allocation2 + $0x58] sm:$0xff] %vm302_vm0, %v4381_v26  ;;  %521 = vst [vmem:[#allocation2 + $0x60] sm:$0x3] %v4381_v26  ;;  %v3949_v55 = vld [vmem:[%s5609_s3 + $0x434] ss:$8 sps:$4 sm:$0xff]  }
  0x11   : > { %3830 = vmatprep.subr.bf16.mxu1 %v3913_v2  ;;  %522 = vst [vmem:[#allocation2 + $0x68] sm:$0x3] %v4381_v26  ;;  %524 = vst.msk [vmem:[#allocation2 + $0x70] sm:$0x3] %vm523_vm2, %v4381_v26  ;;  %v3951_v56 = vld [vmem:[%s5609_s3 + $0x430] ss:$8 sps:$4 sm:$0xff]  }
  0x12   : > { %3831 = vmatpush3.bf16.msra.mxu1 %v3913_v2  ;;  %1961 = vmatpush1.bf16.msra.mxu0 %v3945_v52  ;;  %v3954_v57 = vld [vmem:[%s5609_s3 + $0x104] ss:$8 sps:$4 sm:$0xff]   ;;  %v3952_v58 = vld [vmem:[%s5609_s3 + $0x100] ss:$8 sps:$4 sm:$0xff]   ;;  %v3960_v61 = vld [vmem:[%s5609_s3 + $0x114] ss:$8 sps:$4 sm:$0xff]  }
  0x13   : > { %456 = vmatprep.subr.bf16.mxu1 %v3918_v1  ;;  %1962 = vmatprep.subr.bf16.mxu0 %v3946_v53  ;;  %v3955_v59 = vld [vmem:[%s5609_s3 + $0x444] ss:$8 sps:$4 sm:$0xff]   ;;  %v3957_v60 = vld [vmem:[%s5609_s3 + $0x440] ss:$8 sps:$4 sm:$0xff]   ;;  %v3961_v62 = vld [vmem:[%s5609_s3 + $0x454] ss:$8 sps:$4 sm:$0xff]  }
  0x14   : > { %v3958_v63 = vld [vmem:[%s5609_s3 + $0x110] ss:$8 sps:$4 sm:$0xff]   ;;  %v3966_v1 = vld [vmem:[%s5609_s3 + $0x124] ss:$8 sps:$4 sm:$0xff]   ;;  %vm568_vm5 = vcmask 64512   ;;  %vm592_vm6 = vcmask 64513  }
  0x15   : > { %3833 = vmatmul.mubr.msk.bf16.vlgmr.msra.gmra.mrb[0].mxu1 %vm302_vm0, %v3915_v3  ;;  %v3963_v0 = vld [vmem:[%s5609_s3 + $0x450] ss:$8 sps:$4 sm:$0xff]   ;;  %v3967_v2 = vld [vmem:[%s5609_s3 + $0x464] ss:$8 sps:$4 sm:$0xff]   ;;  %v3964_v3 = vld [vmem:[%s5609_s3 + $0x120] ss:$8 sps:$4 sm:$0xff]  }
  0x16   : > { %457 = vmatpush1.bf16.msra.mxu1 %v3916_v4  ;;  %488 = vmatprep.mubr.bf16.mxu1 %v4380_v19  ;;  %v3969_v4 = vld [vmem:[%s5609_s3 + $0x460] ss:$8 sps:$4 sm:$0xff]   ;;  %v4003_v26 = vld [vmem:[%s5609_s3 + $0x4c4] ss:$8 sps:$4 sm:$0xff]   ;;  %v4020_v53 = vld [vmem:[%s5609_s3 + $0x1b4] ss:$8 sps:$4 sm:$0xff]  }
  0x17   : > { %458 = vmatprep.subr.bf16.mxu1 %v3921_v5  ;;  %1963 = vmatpush1.bf16.msra.mxu0 %v3948_v54  ;;  %v3972_v5 = vld [vmem:[%s5609_s3 + $0x134] ss:$8 sps:$4 sm:$0xff]   ;;  %vm604_vm7 = vcmask 1040448   ;;  %vm607_vm8 = vcmask 57344   ;;  %vm1458_vm9 = vsmask.f32 7424 }
  0x18   : > { %1964 = vmatprep.subr.bf16.mxu0 %v3949_v55  ;;  %s4383_s19 = smov 120   ;;  %s4384_s9 = smov 112   ;;  %vm2328_vm10 = vcmask 1046528   ;;  %vm713_vm11 = vcmask 982016   ;;  %vm1193_vm12 = vcmask 916480  }
  0x1a   : > { %459 = vmatpush1.bf16.msra.mxu1 %v3919_v6  ;;  %v3973_v6 = vld [vmem:[%s5609_s3 + $0x474] ss:$8 sps:$4 sm:$0xff]  }
  0x1b   : > { %460 = vmatprep.subr.bf16.mxu1 %v3924_v7  ;;  %1965 = vmatpush1.bf16.msra.mxu0 %v3951_v56  ;;  %v3970_v7 = vld [vmem:[%s5609_s3 + $0x130] ss:$8 sps:$4 sm:$0xff]  }
  0x1c   : > { %1966 = vmatprep.subr.bf16.mxu0 %v3955_v59  ;;  %v4018_v56 = vld [vmem:[%s5609_s3 + $0x1b0] ss:$8 sps:$4 sm:$0xff]  }
  0x1e   : > { %461 = vmatpush1.bf16.msra.mxu1 %v3922_v8  ;;  %v3975_v8 = vld [vmem:[%s5609_s3 + $0x470] ss:$8 sps:$4 sm:$0xff]  }
  0x1f   : > { %462 = vmatprep.subr.bf16.mxu1 %v3927_v9  ;;  %1967 = vmatpush1.bf16.msra.mxu0 %v3957_v60  ;;  %v3978_v9 = vld [vmem:[%s5609_s3 + $0x144] ss:$8 sps:$4 sm:$0xff]  }
  0x20   : > { %1968 = vmatprep.subr.bf16.mxu0 %v3961_v62 }
  0x22   : > { %463 = vmatpush1.bf16.msra.mxu1 %v3925_v10  ;;  %v3979_v10 = vld [vmem:[%s5609_s3 + $0x484] ss:$8 sps:$4 sm:$0xff]  }
  0x23   : > { %464 = vmatprep.subr.bf16.mxu1 %v3930_v11  ;;  %1969 = vmatpush1.bf16.msra.mxu0 %v3963_v0  ;;  %v3976_v11 = vld [vmem:[%s5609_s3 + $0x140] ss:$8 sps:$4 sm:$0xff]  }
  0x24   : > { %1970 = vmatprep.subr.bf16.mxu0 %v3967_v2 }
  0x26   : > { %465 = vmatpush1.bf16.msra.mxu1 %v3928_v12  ;;  %v3981_v12 = vld [vmem:[%s5609_s3 + $0x480] ss:$8 sps:$4 sm:$0xff]  }
  0x27   : > { %466 = vmatprep.subr.bf16.mxu1 %v3933_v13  ;;  %1971 = vmatpush1.bf16.msra.mxu0 %v3969_v4  ;;  %v3984_v13 = vld [vmem:[%s5609_s3 + $0x154] ss:$8 sps:$4 sm:$0xff]  }
  0x28   : > { %1972 = vmatprep.subr.bf16.mxu0 %v3973_v6  ;;  %v4024_v6 = vld [vmem:[%s5609_s3 + $0x1c0] ss:$8 sps:$4 sm:$0xff]  }
  0x2a   : > { %467 = vmatpush1.bf16.msra.mxu1 %v3931_v14  ;;  %v3985_v14 = vld [vmem:[%s5609_s3 + $0x494] ss:$8 sps:$4 sm:$0xff]  }
  0x2b   : > { %468 = vmatprep.subr.bf16.mxu1 %v3936_v15  ;;  %1973 = vmatpush1.bf16.msra.mxu0 %v3975_v8  ;;  %v3982_v15 = vld [vmem:[%s5609_s3 + $0x150] ss:$8 sps:$4 sm:$0xff]  }
  0x2c   : > { %1974 = vmatprep.subr.bf16.mxu0 %v3979_v10  ;;  %v4029_v10 = vld [vmem:[%s5609_s3 + $0x504] ss:$8 sps:$4 sm:$0xff]  }
  0x2e   : > { %469 = vmatpush1.bf16.msra.mxu1 %v3934_v16  ;;  %v3987_v16 = vld [vmem:[%s5609_s3 + $0x490] ss:$8 sps:$4 sm:$0xff]  }
  0x2f   : > { %470 = vmatprep.subr.bf16.mxu1 %v3939_v17  ;;  %1975 = vmatpush1.bf16.msra.mxu0 %v3981_v12  ;;  %v3990_v17 = vld [vmem:[%s5609_s3 + $0x164] ss:$8 sps:$4 sm:$0xff]  }
  0x30   : > { %1976 = vmatprep.subr.bf16.mxu0 %v3985_v14 }
  0x32   : > { %471 = vmatpush1.bf16.msra.mxu1 %v3937_v18  ;;  %v3991_v18 = vld [vmem:[%s5609_s3 + $0x4a4] ss:$8 sps:$4 sm:$0xff]  }
  0x33   : > { %882 = vmatprep.subr.bf16.mxu1 %v3954_v57  ;;  %1977 = vmatpush1.bf16.msra.mxu0 %v3987_v16  ;;  %v4021_v57 = vld [vmem:[%s5609_s3 + $0x4f4] ss:$8 sps:$4 sm:$0xff]  }
  0x34   : > { %1978 = vmatprep.subr.bf16.mxu0 %v3991_v18  ;;  %v4032_v16 = vld [vmem:[%s5609_s3 + $0x1d4] ss:$8 sps:$4 sm:$0xff]  }
  0xe8   : > { %v3834_v20 = vpop.f32.mrb[0].mxu1 }
  0xe9   : > { %v343_v21 = vpop.f32.mrb[1].mxu1 }
  0xea   : > { %v3835_v22 = vpop.f32.mrb[2].mxu1 }
  0xeb   : > { %v359_v23 = vpack.c.bf16 %v3835_v22, %v3834_v20  ;;  %v346_v24 = vpop.f32.mrb[3].mxu1  ;;  %v3993_v20 = vld [vmem:[%s5609_s3 + $0x4a0] ss:$8 sps:$4 sm:$0xff]   ;;  %v3997_v22 = vld [vmem:[%s5609_s3 + $0x4b4] ss:$8 sps:$4 sm:$0xff]  }
  0xec   : > { %v358_v25 = vpack.c.bf16 %v346_v24, %v343_v21  ;;  %v3996_v21 = vld [vmem:[%s5609_s3 + $0x174] ss:$8 sps:$4 sm:$0xff]   ;;  %1979 = vmatpush1.bf16.msra.mxu0 %v3993_v20  ;;  %v3999_v24 = vld [vmem:[%s5609_s3 + $0x4b0] ss:$8 sps:$4 sm:$0xff]  }
  0xed   : > { %1980 = vmatprep.subr.bf16.mxu0 %v3997_v22  ;;  %v4030_v20 = vld [vmem:[%s5609_s3 + $0x1d0] ss:$8 sps:$4 sm:$0xff]  }
  0xee   : > { %489 = vmatmul.mubr.bf16.vlgmr.msra.gmra.mrb[4].mxu1 %v358_v25  ;;  %v4002_v25 = vld [vmem:[%s5609_s3 + $0x184] ss:$8 sps:$4 sm:$0xff]  }
  0xef   : > { %498 = vmatprep.mubr.bf16.mxu1 %v4380_v19  ;;  %883 = vmatpush1.bf16.msra.mxu1 %v3952_v58  ;;  %v3988_v19 = vld [vmem:[%s5609_s3 + $0x160] ss:$8 sps:$4 sm:$0xff]  }
  0xf0   : > { %884 = vmatprep.subr.bf16.mxu1 %v3960_v61  ;;  %1981 = vmatpush1.bf16.msra.mxu0 %v3999_v24  ;;  %v4023_v61 = vld [vmem:[%s5609_s3 + $0x4f0] ss:$8 sps:$4 sm:$0xff]  }
  0xf1   : > { %1982 = vmatprep.subr.bf16.mxu0 %v4003_v26 }
  0xf3   : > { %885 = vmatpush1.bf16.msra.mxu1 %v3958_v63 }
  0xf4   : > { %886 = vmatprep.subr.bf16.mxu1 %v3966_v1 }
  0xf6   : > { %499 = vmatmul.mubr.bf16.gmra.mrb[8].mxu1 %v359_v23  ;;  %v3994_v23 = vld [vmem:[%s5609_s3 + $0x170] ss:$8 sps:$4 sm:$0xff]  }
  0xf7   : > { %887 = vmatpush1.bf16.msra.mxu1 %v3964_v3  ;;  %v4026_v3 = vld [vmem:[%s5609_s3 + $0x1c4] ss:$8 sps:$4 sm:$0xff]  }
  0xf8   : > { %888 = vmatprep.subr.bf16.mxu1 %v3972_v5 }
  0xfb   : > { %889 = vmatpush1.bf16.msra.mxu1 %v3970_v7 }
  0xfc   : > { %890 = vmatprep.subr.bf16.mxu1 %v3978_v9 }
  0xff   : > { %891 = vmatpush1.bf16.msra.mxu1 %v3976_v11 }
 0x100   : > { %892 = vmatprep.subr.bf16.mxu1 %v3984_v13 }
 0x103   : > { %893 = vmatpush1.bf16.msra.mxu1 %v3982_v15 }
 0x104   : > { %894 = vmatprep.subr.bf16.mxu1 %v3990_v17 }
 0x107   : > { %895 = vmatpush1.bf16.msra.mxu1 %v3988_v19 }
 0x108   : > { %896 = vmatprep.subr.bf16.mxu1 %v3996_v21 }
 0x10b   : > { %897 = vmatpush1.bf16.msra.mxu1 %v3994_v23 }
 0x10c   : > { %898 = vmatprep.subr.bf16.mxu1 %v4002_v25 }
 0x1c1   : > { %v490_v27 = vpop.f32.mrb[4].mxu1 }
 0x1c2   : > { %v534_v28 = vrot.slane %v490_v27, 7  ;;  %v492_v29 = vpop.f32.mrb[5].mxu1 }
 0x1c3   : > { %v494_v30 = vpop.f32.mrb[6].mxu1  ;;  %v535_v33 = vrot.slane %v492_v29, 7  ;;  %v4005_v29 = vld [vmem:[%s5609_s3 + $0x4c0] ss:$8 sps:$4 sm:$0xff]  }
 0x1c4   : > { %v536_v31 = vrot.slane %v494_v30, 7  ;;  %548 = vrot.lane.b32.xlu0 %v534_v28, %s4382_s22  ;;  %v496_v32 = vpop.f32.mrb[7].mxu1  ;;  %v4008_v30 = vld [vmem:[%s5609_s3 + $0x194] ss:$8 sps:$4 sm:$0xff]   ;;  %1983 = vmatpush1.bf16.msra.mxu0 %v4005_v29 }
 0x1c5   : > { %v538_v34 = vrot.slane %v496_v32, 7  ;;  %v4009_v32 = vld [vmem:[%s5609_s3 + $0x4d4] ss:$8 sps:$4 sm:$0xff]  }
 0x1c6   : > { %v537_v35 = vsel %vm533_vm1, %v534_v28, %v536_v31  ;;  %v4000_v28 = vld [vmem:[%s5609_s3 + $0x180] ss:$8 sps:$4 sm:$0xff]   ;;  %1984 = vmatprep.subr.bf16.mxu0 %v4009_v32 }
 0x1c7   : > { %552 = vrot.lane.b32.xlu1 %v537_v35, %s4382_s22  ;;  %v539_v36 = vsel %vm533_vm1, %v535_v33, %v538_v34  ;;  %899 = vmatpush1.bf16.msra.mxu1 %v4000_v28  ;;  %v4006_v35 = vld [vmem:[%s5609_s3 + $0x190] ss:$8 sps:$4 sm:$0xff]  }
 0x1c8   : > { %550 = vrot.lane.b32.xlu0 %v535_v33, %s4382_s22  ;;  %900 = vmatprep.subr.bf16.mxu1 %v4008_v30 }
 0x1c9   : > { %v500_v37 = vpop.f32.mrb[8].mxu1 }
 0x1ca   : > { %v540_v38 = vrot.slane %v500_v37, 7  ;;  %v502_v39 = vpop.f32.mrb[9].mxu1  ;;  %v4014_v37 = vld [vmem:[%s5609_s3 + $0x1a4] ss:$8 sps:$4 sm:$0xff]  }
 0x1cb   : > { %v542_v40 = vrot.slane %v502_v39, 7  ;;  %554 = vrot.lane.b32.xlu1 %v539_v36, %s4382_s22  ;;  %v504_v41 = vpop.f32.mrb[10].mxu1  ;;  %v4011_v36 = vld [vmem:[%s5609_s3 + $0x4d0] ss:$8 sps:$4 sm:$0xff]   ;;  %v4015_v39 = vld [vmem:[%s5609_s3 + $0x4e4] ss:$8 sps:$4 sm:$0xff]   ;;  %901 = vmatpush1.bf16.msra.mxu1 %v4006_v35 }
 0x1cc   : > { %v544_v42 = vrot.slane %v504_v41, 7  ;;  %v506_v43 = vpop.f32.mrb[11].mxu1  ;;  %v541_v44 = vsel %vm533_vm1, %v536_v31, %v540_v38  ;;  %1985 = vmatpush1.bf16.msra.mxu0 %v4011_v36  ;;  %902 = vmatprep.subr.bf16.mxu1 %v4014_v37 }
 0x1cd   : > { %v546_v45 = vrot.slane %v506_v43, 7  ;;  %556 = vrot.lane.b32.xlu0 %v541_v44, %s4382_s22  ;;  %v543_v46 = vsel %vm533_vm1, %v538_v34, %v542_v40  ;;  %v4017_v43 = vld [vmem:[%s5609_s3 + $0x4e0] ss:$8 sps:$4 sm:$0xff]   ;;  %1986 = vmatprep.subr.bf16.mxu0 %v4015_v39 }
 0x1ce   : > { %v545_v47 = vsel %vm533_vm1, %v540_v38, %v544_v42 }
 0x1cf   : > { %558 = vrot.lane.b32.xlu1 %v543_v46, %s4382_s22  ;;  %v547_v48 = vsel %vm533_vm1, %v542_v40, %v546_v45 }
 0x1d0   : > { %1987 = vmatpush1.bf16.msra.mxu0 %v4017_v43 }
 0x1d1   : > { %560 = vrot.lane.b32.xlu0 %v545_v47, %s4382_s22  ;;  %1988 = vmatprep.subr.bf16.mxu0 %v4021_v57  ;;  %v4050_v57 = vld [vmem:[%s5609_s3 + $0x4] ss:$8 sps:$4 sm:$0xff]  }
 0x1d3   : > { %562 = vrot.lane.b32.xlu1 %v547_v48, %s4382_s22 }
 0x1d4   : > { %1989 = vmatpush1.bf16.msra.mxu0 %v4023_v61 }
 0x1d5   : > { %564 = vrot.lane.b32.xlu0 %v544_v42, %s4382_s22  ;;  %v4012_v42 = vld [vmem:[%s5609_s3 + $0x1a0] ss:$8 sps:$4 sm:$0xff]   ;;  %2232 = vmatprep.subr.bf16.mxu0 %v4029_v10 }
 0x1d6   : > { %903 = vmatpush1.bf16.msra.mxu1 %v4012_v42 }
 0x1d7   : > { %566 = vrot.lane.b32.xlu1 %v546_v45, %s4382_s22  ;;  %904 = vmatprep.subr.bf16.mxu1 %v4020_v53 }
 0x1da   : > { %905 = vmatpush1.bf16.msra.mxu1 %v4018_v56 }
 0x1db   : > { %906 = vmatprep.subr.bf16.mxu1 %v4026_v3 }
 0x1de   : > { %907 = vmatpush1.bf16.msra.mxu1 %v4024_v6 }
 0x1df   : > { %908 = vmatprep.subr.bf16.mxu1 %v4032_v16 }
 0x1e2   : > { %909 = vmatpush1.bf16.msra.mxu1 %v4030_v20  ;;  %v4035_v20 = vld [vmem:[%s5609_s3 + $0x514] ss:$8 sps:$4 sm:$0xff]  }
 0x236   : > { %v549_v27 = vpop.permute.xlu0 %548 }
 0x237   : > { %590 = vst.msk [vmem:[#allocation2] sm:$0xfe] %vm589_vm3, %v549_v27 }
 0x239   : > { %v553_v31 = vpop.permute.xlu1 %552 }
 0x23a   : > { %595 = vst.msk [vmem:[#allocation2 + $0x18] sm:$0xff] %vm594_vm4, %v553_v31  ;;  %v551_v33 = vpop.permute.xlu0 %550 }
 0x23b   : > { %v569_v34 = vsel %vm568_vm5, %v549_v27, %v551_v33  ;;  %593 = vst.msk [vmem:[#allocation2 + $0x10] sm:$0xfe] %vm592_vm6, %v551_v33  ;;  %v4036_v33 = vld [vmem:[%s5609_s3 + $0x1e0] ss:$8 sps:$4 sm:$0xff]  }
 0x23c   : > { %591 = vst [vmem:[#allocation2 + $0x8] sm:$0xfe] %v569_v34 }
 0x23d   : > { %v555_v38 = vpop.permute.xlu1 %554 }
 0x23e   : > { %v570_v40 = vsel %vm568_vm5, %v553_v31, %v555_v38  ;;  %597 = vst.msk [vmem:[#allocation2 + $0x28] sm:$0xff] %vm568_vm5, %v555_v38  ;;  %v609_v49 = vld [vmem:[#allocation2] sm:$0xff] }
 0x23f   : > { %v557_v41 = vpop.permute.xlu0 %556  ;;  %v4038_v31 = vld [vmem:[%s5609_s3 + $0x1e4] ss:$8 sps:$4 sm:$0xff]  }
 0x240   : > { %598 = vst.msk [vmem:[#allocation2 + $0x30] sm:$0xff] %vm594_vm4, %v557_v41  ;;  %910 = vmatprep.subr.bf16.mxu1 %v4038_v31  ;;  %v4047_v31 = vld [vmem:[%s5609_s3 + $0x534] ss:$8 sps:$4 sm:$0xff]  }
 0x241   : > { %v559_v44 = vpop.permute.xlu1 %558  ;;  %v612_v45 = vld [vmem:[#allocation2 + $0x18] sm:$0xff]  ;;  %911 = vmatpush1.bf16.msra.mxu1 %v4036_v33 }
 0x242   : > { %v571_v46 = vsel %vm568_vm5, %v557_v41, %v559_v44  ;;  %600 = vst.msk [vmem:[#allocation2 + $0x40] sm:$0xff] %vm568_vm5, %v559_v44  ;;  %v611_v50 = vld [vmem:[#allocation2 + $0x10] sm:$0xff]  ;;  %v4671_v52 = vpack.c.bf16 %v612_v45, %v609_v49 }
 0x243   : > { %v561_v47 = vpop.permute.xlu0 %560  ;;  %v610_v48 = vld [vmem:[#allocation2 + $0x8] sm:$0xff]  ;;  %v4044_v44 = vld [vmem:[%s5609_s3 + $0x1f4] ss:$8 sps:$4 sm:$0xff]   ;;  %v4045_v33 = vld [vmem:[%s5609_s3 + $0x530] ss:$8 sps:$4 sm:$0xff]  }
 0x244   : > { %601 = vst.msk [vmem:[#allocation2 + $0x48] sm:$0xff] %vm594_vm4, %v561_v47  ;;  %v4669_v51 = vpack.c.bf16 %v570_v40, %v610_v48  ;;  %v1462_v2 = vshll.u32 %v4671_v52, 16  ;;  %v1460_v24 = vshrl.u32 %v4671_v52, 16  ;;  %v4042_v48 = vld [vmem:[%s5609_s3 + $0x1f0] ss:$8 sps:$4 sm:$0xff]   ;;  %912 = vmatprep.subr.bf16.mxu1 %v4044_v44  ;;  %v2329_v6 = vrot.slane %v4671_v52, 1 }
 0x245   : > { %v563_v54 = vpop.permute.xlu1 %562  ;;  %v614_v55 = vld [vmem:[#allocation2 + $0x28] sm:$0xff]  ;;  %913 = vmatpush1.bf16.msra.mxu1 %v4042_v48  ;;  %v4059_v44 = vld [vmem:[%s5609_s3 + $0x554] ss:$8 sps:$4 sm:$0xff]   ;;  %v4057_v48 = vld [vmem:[%s5609_s3 + $0x550] ss:$8 sps:$4 sm:$0xff]  }
 0x246   : > { %v572_v58 = vsel %vm568_vm5, %v561_v47, %v563_v54  ;;  %603 = vst.msk [vmem:[#allocation2 + $0x58] sm:$0xff] %vm568_vm5, %v563_v54  ;;  %v4684_v59 = vpack.c.bf16 %v614_v55, %v611_v50  ;;  %v1474_v60 = vshll.u32 %v4669_v51, 16  ;;  %v1472_v0 = vshrl.u32 %v4669_v51, 16  ;;  %1095 = vmatprep.subr.bf16.mxu1 %v4050_v57  ;;  %v4063_v57 = vld [vmem:[%s5609_s3 + $0x560] ss:$8 sps:$4 sm:$0xff]  }
 0x247   : > { %v565_v62 = vpop.permute.xlu0 %564  ;;  %v4690_v63 = vpack.c.bf16 %v572_v58, %v571_v46  ;;  %v615_v12 = vld [vmem:[#allocation2 + $0x30] sm:$0xff]  ;;  %v1464_v15 = vrot.slane %v1462_v2, 1 }
 0x248   : > { %605 = vst.msk [vmem:[#allocation2 + $0x60] sm:$0x1] %vm604_vm7, %v565_v62  ;;  %v1476_v1 = vrot.slane %v1474_v60, 1  ;;  %v1761_v8 = vshll.u32 %v4684_v59, 16  ;;  %v1759_v25 = vshrl.u32 %v4684_v59, 16  ;;  %v2598_v3 = vrot.slane %v4684_v59, 1 }
 0x249   : > { %v567_v4 = vpop.permute.xlu1 %566  ;;  %v1479_v5 = vshll.u32 %v4690_v63, 16  ;;  %v617_v17 = vld [vmem:[#allocation2 + $0x40] sm:$0xff]  ;;  %v1465_v30 = vor.u32 %v1464_v15, %v1460_v24  ;;  %v1491_v55 = vshrl.u32 %v4690_v63, 16 }
 0x24a   : > { %v573_v7 = vsel %vm568_vm5, %v565_v62, %v567_v4  ;;  %608 = vst.msk [vmem:[#allocation2 + $0x70] sm:$0x1] %vm607_vm8, %v567_v4  ;;  %v1477_v9 = vor.u32 %v1476_v1, %v1472_v0  ;;  %v1763_v22 = vrot.slane %v1761_v8, 1  ;;  %v2333_v62 = vrot.slane %v4690_v63, 1 }
 0x24b   : > { %606 = vst [vmem:[#allocation2 + $0x68] sm:$0x1] %v573_v7  ;;  %v1481_v11 = vrot.slane %v1479_v5, 1  ;;  %v618_v13 = vld [vmem:[#allocation2 + $0x48] sm:$0xff]  ;;  %v2332_v0 = vrot.slane %v4669_v51, 1 }
 0x24c   : > { %v4706_v14 = vpack.c.bf16 %v618_v13, %v615_v12  ;;  %v1764_v34 = vor.u32 %v1763_v22, %v1759_v25  ;;  %v4041_v25 = vld [vmem:[%s5609_s3 + $0x524] ss:$8 sps:$4 sm:$0xff]  }
 0x24d   : > { %v620_v18 = vld [vmem:[#allocation2 + $0x58] sm:$0xff]  ;;  %v4712_v19 = vsel %vm1458_vm9, %v1477_v9, %v1481_v11  ;;  %v1493_v60 = vor.u32 %v1491_v55, %v1481_v11  ;;  %v4801_v2 = vsel %vm2328_vm10, %v2332_v0, %v2333_v62 }
 0x24e   : > { %v4717_v21 = vpack.c.bf16 %v620_v18, %v617_v17  ;;  %1780 = vrot.lane.b32.xlu0 %v4712_v19, %s4383_s19  ;;  %v1467_v23 = vshll.u32 %v4706_v14, 16  ;;  %v1483_v42 = vshrl.u32 %v4706_v14, 16  ;;  %v2330_v5 = vrot.slane %v4706_v14, 1  ;;  %v4027_v17 = vld [vmem:[%s5609_s3 + $0x500] ss:$8 sps:$4 sm:$0xff]  }
 0x24f   : > { %v621_v26 = vld [vmem:[#allocation2 + $0x60] sm:$0x3]  ;;  %v4071_v0 = vld [vmem:[%s5609_s3 + $0x574] ss:$8 sps:$4 sm:$0xff]  }
 0x250   : > { %v1766_v27 = vshll.u32 %v4717_v21, 16  ;;  %v4725_v28 = vpack.c.bf16 %v621_v26, %v621_v26  ;;  %v1469_v29 = vrot.slane %v1467_v23, 1  ;;  %v1770_v46 = vshrl.u32 %v4717_v21, 16  ;;  %v4033_v23 = vld [vmem:[%s5609_s3 + $0x510] ss:$8 sps:$4 sm:$0xff]  }
 0x251   : > { %v623_v32 = vld [vmem:[#allocation2 + $0x70] sm:$0x3]  ;;  %v2599_v1 = vrot.slane %v4717_v21, 1  ;;  %v4813_v7 = vsel %vm2328_vm10, %v2329_v6, %v2330_v5 }
 0x252   : > { %v1768_v35 = vrot.slane %v1766_v27, 1  ;;  %v1487_v36 = vshll.u32 %v4725_v28, 16  ;;  %v4735_v37 = vsel %vm1458_vm9, %v1465_v30, %v1469_v29  ;;  %v622_v38 = vld [vmem:[#allocation2 + $0x68] sm:$0x3]  ;;  %v4741_v40 = vpack.c.bf16 %v623_v32, %v623_v32 }
 0x253   : > { %1778 = vrot.lane.b32.xlu0 %v4735_v37, %s4383_s19  ;;  %v4739_v39 = vpack.c.bf16 %v622_v38, %v622_v38  ;;  %v1485_v49 = vor.u32 %v1483_v42, %v1469_v29  ;;  %v2600_v4 = vsel %vm2328_vm10, %v2598_v3, %v2599_v1  ;;  %v2335_v11 = vrot.slane %v4725_v28, 1  ;;  %v4039_v27 = vld [vmem:[%s5609_s3 + $0x520] ss:$8 sps:$4 sm:$0xff]   ;;  %v4069_v3 = vld [vmem:[%s5609_s3 + $0x570] ss:$8 sps:$4 sm:$0xff]  }
 0x254   : > { %v1769_v41 = vsel %vm1458_vm9, %v1764_v34, %v1768_v35  ;;  %v1489_v43 = vrot.slane %v1487_v36, 1  ;;  %v1774_v47 = vshll.u32 %v4741_v40, 16  ;;  %v1772_v50 = vor.u32 %v1770_v46, %v1768_v35  ;;  %v4053_v36 = vld [vmem:[%s5609_s3 + $0x544] ss:$8 sps:$4 sm:$0xff]  }
 0x255   : > { %1782 = vrot.lane.b32.xlu1 %v1769_v41, %s4383_s19  ;;  %v1495_v45 = vshll.u32 %v4739_v39, 16  ;;  %v2601_v8 = vrot.slane %v4741_v40, 1  ;;  %v4834_v12 = vsel %vm2328_vm10, %v2330_v5, %v2335_v11  ;;  %v4051_v40 = vld [vmem:[%s5609_s3 + $0x540] ss:$8 sps:$4 sm:$0xff]   ;;  %v4074_v5 = vld [vmem:[%s5609_s3 + $0x44] ss:$8 sps:$4 sm:$0xff]  }
 0x256   : > { %v1776_v53 = vrot.slane %v1774_v47, 1  ;;  %v4756_v54 = vsel %vm1458_vm9, %v1485_v49, %v1489_v43  ;;  %v4056_v43 = vld [vmem:[%s5609_s3 + $0x14] ss:$8 sps:$4 sm:$0xff]   ;;  %v4054_v47 = vld [vmem:[%s5609_s3 + $0x10] ss:$8 sps:$4 sm:$0xff]  }
 0x257   : > { %v1497_v56 = vrot.slane %v1495_v45, 1  ;;  %v2602_v10 = vsel %vm2328_vm10, %v2599_v1, %v2601_v8  ;;  %v4066_v1 = vld [vmem:[%s5609_s3 + $0x30] ss:$8 sps:$4 sm:$0xff]   ;;  %v4072_v8 = vld [vmem:[%s5609_s3 + $0x40] ss:$8 sps:$4 sm:$0xff]  }
 0x258   : > { %v1777_v58 = vsel %vm1458_vm9, %v1772_v50, %v1776_v53  ;;  %v4062_v50 = vld [vmem:[%s5609_s3 + $0x24] ss:$8 sps:$4 sm:$0xff]   ;;  %v4080_v11 = vld [vmem:[%s5609_s3 + $0x54] ss:$8 sps:$4 sm:$0xff]  }
 0x259   : > { %1784 = vrot.lane.b32.xlu1 %v4756_v54, %s4383_s19  ;;  %1788 = vrot.lane.b32.xlu0 %v1777_v58, %s4383_s19  ;;  %v4767_v61 = vsel %vm1458_vm9, %v1493_v60, %v1497_v56  ;;  %v4065_v53 = vld [vmem:[%s5609_s3 + $0x564] ss:$8 sps:$4 sm:$0xff]   ;;  %v4060_v56 = vld [vmem:[%s5609_s3 + $0x20] ss:$8 sps:$4 sm:$0xff]  }
 0x25d   : > { %1786 = vrot.lane.b32.xlu1 %v4767_v61, %s4383_s19  ;;  %703 = vrot.lane.b32.xlu0 %v4669_v51, %s4383_s19 }
 0x261   : > { %705 = vrot.lane.b32.xlu1 %v4684_v59, %s4383_s19  ;;  %2054 = vrot.lane.b32.xlu0 %v4712_v19, %s4384_s9 }
 0x265   : > { %2056 = vrot.lane.b32.xlu1 %v1769_v41, %s4384_s9  ;;  %701 = vrot.lane.b32.xlu0 %v4671_v52, %s4383_s19 }
 0x269   : > { %2052 = vrot.lane.b32.xlu1 %v4735_v37, %s4384_s9  ;;  %709 = vrot.lane.b32.xlu0 %v4690_v63, %s4383_s19 }
 0x26d   : > { %711 = vrot.lane.b32.xlu1 %v4717_v21, %s4383_s19  ;;  %2060 = vrot.lane.b32.xlu0 %v4767_v61, %s4384_s9 }
 0x271   : > { %2062 = vrot.lane.b32.xlu1 %v1777_v58, %s4384_s9  ;;  %707 = vrot.lane.b32.xlu0 %v4706_v14, %s4383_s19 }
 0x275   : > { %2058 = vrot.lane.b32.xlu1 %v4756_v54, %s4384_s9  ;;  %1183 = vrot.lane.b32.xlu0 %v4669_v51, %s4384_s9 }
 0x279   : > { %1185 = vrot.lane.b32.xlu1 %v4684_v59, %s4384_s9  ;;  %2605 = vrot.lane.b32.xlu0 %v4801_v2, %s4383_s19  ;;  %v2337_v59 = vrot.slane %v4739_v39, 1  ;;  %v4048_v39 = vld [vmem:[%s5609_s3] ss:$8 sps:$4 sm:$0xff]  }
 0x27b   : > { %v4824_v9 = vsel %vm2328_vm10, %v2333_v62, %v2337_v59  ;;  %v4068_v62 = vld [vmem:[%s5609_s3 + $0x34] ss:$8 sps:$4 sm:$0xff]   ;;  %v4077_v59 = vld [vmem:[%s5609_s3 + $0x584] ss:$8 sps:$4 sm:$0xff]  }
 0x27d   : > { %2607 = vrot.lane.b32.xlu1 %v2600_v4, %s4383_s19  ;;  %1181 = vrot.lane.b32.xlu0 %v4671_v52, %s4384_s9 }
 0x281   : > { %2603 = vrot.lane.b32.xlu1 %v4813_v7, %s4383_s19  ;;  %1189 = vrot.lane.b32.xlu0 %v4690_v63, %s4384_s9 }
 0x285   : > { %1191 = vrot.lane.b32.xlu1 %v4717_v21, %s4384_s9  ;;  %2611 = vrot.lane.b32.xlu0 %v4824_v9, %s4383_s19 }
 0x289   : > { %2613 = vrot.lane.b32.xlu1 %v2602_v10, %s4383_s19  ;;  %1187 = vrot.lane.b32.xlu0 %v4706_v14, %s4384_s9 }
 0x28d   : > { %2609 = vrot.lane.b32.xlu1 %v4834_v12, %s4383_s19  ;;  %2879 = vrot.lane.b32.xlu0 %v4801_v2, %s4384_s9  ;;  %s3826_s19 = sshll.u32 %s5615_s25, 6 }
 0x28e   : > { %s5593_s22 = scalar_lea.vmem %s5613_s7, %s3826_s19 }
 0x291   : > { %2881 = vrot.lane.b32.xlu1 %v2600_v4, %s4384_s9  ;;  %2877 = vrot.lane.b32.xlu0 %v4813_v7, %s4384_s9 }
 0x295   : > { %2885 = vrot.lane.b32.xlu1 %v4824_v9, %s4384_s9  ;;  %2887 = vrot.lane.b32.xlu0 %v2602_v10, %s4384_s9  ;;  %v4075_v10 = vld [vmem:[%s5609_s3 + $0x580] ss:$8 sps:$4 sm:$0xff]  }
 0x299   : > { %2883 = vrot.lane.b32.xlu1 %v4834_v12, %s4384_s9 }
 0x2c0   : > { %v1781_v13 = vpop.permute.xlu0 %1780 }
 0x2c5   : > { %v1779_v15 = vpop.permute.xlu0 %1778 }
 0x2c6   : > { %v1790_v21 = vsel %vm713_vm11, %v1779_v15, %v1781_v13  ;;  %v4078_v15 = vld [vmem:[%s5609_s3 + $0x50] ss:$8 sps:$4 sm:$0xff]  }
 0x2c7   : > { %v1783_v16 = vpop.permute.xlu1 %1782 }
 0x2c8   : > { %v1791_v18 = vsel %vm713_vm11, %v1781_v13, %v1783_v16  ;;  %v4083_v13 = vld [vmem:[%s5609_s3 + $0x594] ss:$8 sps:$4 sm:$0xff]   ;;  %v4086_v16 = vld [vmem:[%s5609_s3 + $0x64] ss:$8 sps:$4 sm:$0xff]  }
 0x2c9   : > { %1990 = vmatprep.mubr.bf16.mxu0 %v1791_v18  ;;  %v4084_v18 = vld [vmem:[%s5609_s3 + $0x60] ss:$8 sps:$4 sm:$0xff]  }
 0x2ca   : > { %1991 = vmatmul.mubr.bf16.vlgmr.msra.gmra.mrb[0].mxu0 %v1790_v21  ;;  %v4092_v21 = vld [vmem:[%s5609_s3 + $0x74] ss:$8 sps:$4 sm:$0xff]  }
 0x2cb   : > { %v1785_v22 = vpop.permute.xlu1 %1784  ;;  %2233 = vmatpush1.bf16.msra.mxu0 %v4027_v17  ;;  %v1789_v24 = vpop.permute.xlu0 %1788  ;;  %v4089_v17 = vld [vmem:[%s5609_s3 + $0x5a4] ss:$8 sps:$4 sm:$0xff]  }
 0x2cc   : > { %2234 = vmatprep.subr.bf16.mxu0 %v4035_v20  ;;  %v4087_v20 = vld [vmem:[%s5609_s3 + $0x5a0] ss:$8 sps:$4 sm:$0xff]  }
 0x2cf   : > { %v1787_v26 = vpop.permute.xlu1 %1786  ;;  %2235 = vmatpush1.bf16.msra.mxu0 %v4033_v23  ;;  %v704_v29 = vpop.permute.xlu0 %703  ;;  %v4090_v23 = vld [vmem:[%s5609_s3 + $0x70] ss:$8 sps:$4 sm:$0xff]  }
 0x2d0   : > { %v1793_v28 = vsel %vm713_vm11, %v1787_v26, %v1789_v24  ;;  %2236 = vmatprep.subr.bf16.mxu0 %v4041_v25  ;;  %v1792_v30 = vsel %vm713_vm11, %v1785_v22, %v1787_v26  ;;  %v4095_v22 = vld [vmem:[%s5609_s3 + $0x5b4] ss:$8 sps:$4 sm:$0xff]   ;;  %v4093_v24 = vld [vmem:[%s5609_s3 + $0x5b0] ss:$8 sps:$4 sm:$0xff]   ;;  %v4098_v25 = vld [vmem:[%s5609_s3 + $0x84] ss:$8 sps:$4 sm:$0xff]  }
 0x2d1   : > { %2000 = vmatprep.mubr.bf16.mxu0 %v1793_v28  ;;  %v4101_v26 = vld [vmem:[%s5609_s3 + $0x5c4] ss:$8 sps:$4 sm:$0xff]   ;;  %v4099_v28 = vld [vmem:[%s5609_s3 + $0x5c0] ss:$8 sps:$4 sm:$0xff]  }
 0x2d2   : > { %2001 = vmatmul.mubr.bf16.gmra.mrb[4].mxu0 %v1792_v30  ;;  %v4107_v30 = vld [vmem:[%s5609_s3 + $0x5d4] ss:$8 sps:$4 sm:$0xff]  }
 0x2d3   : > { %v706_v32 = vpop.permute.xlu1 %705  ;;  %2237 = vmatpush1.bf16.msra.mxu0 %v4039_v27  ;;  %v4874_v35 = vpop.permute.xlu0 %2054  ;;  %v4096_v27 = vld [vmem:[%s5609_s3 + $0x80] ss:$8 sps:$4 sm:$0xff]  }
 0x2d4   : > { %v715_v34 = vsel %vm713_vm11, %v704_v29, %v706_v32  ;;  %2238 = vmatprep.subr.bf16.mxu0 %v4047_v31  ;;  %v4102_v31 = vld [vmem:[%s5609_s3 + $0x90] ss:$8 sps:$4 sm:$0xff]  }
 0x2d5   : > { %914 = vmatprep.mubr.bf16.mxu1 %v715_v34  ;;  %v4105_v32 = vld [vmem:[%s5609_s3 + $0x5d0] ss:$8 sps:$4 sm:$0xff]   ;;  %v4113_v34 = vld [vmem:[%s5609_s3 + $0x5e4] ss:$8 sps:$4 sm:$0xff]  }
 0x2d7   : > { %v2057_v38 = vpop.permute.xlu1 %2056  ;;  %2239 = vmatpush1.bf16.msra.mxu0 %v4045_v33  ;;  %v702_v42 = vpop.permute.xlu0 %701  ;;  %v4110_v33 = vld [vmem:[%s5609_s3 + $0xa4] ss:$8 sps:$4 sm:$0xff]  }
 0x2d8   : > { %v2065_v41 = vsel %vm1193_vm12, %v4874_v35, %v2057_v38  ;;  %2240 = vmatprep.subr.bf16.mxu0 %v4053_v36  ;;  %v714_v45 = vsel %vm713_vm11, %v702_v42, %v704_v29  ;;  %v4104_v29 = vld [vmem:[%s5609_s3 + $0x94] ss:$8 sps:$4 sm:$0xff]   ;;  %v4108_v36 = vld [vmem:[%s5609_s3 + $0xa0] ss:$8 sps:$4 sm:$0xff]   ;;  %v4117_v42 = vld [vmem:[%s5609_s3 + $0x5f0] ss:$8 sps:$4 sm:$0xff]  }
 0x2d9   : > { %2264 = vmatprep.mubr.bf16.mxu0 %v2065_v41  ;;  %915 = vmatmul.mubr.bf16.vlgmr.msra.gmra.mrb[12].mxu1 %v714_v45  ;;  %v4111_v38 = vld [vmem:[%s5609_s3 + $0x5e0] ss:$8 sps:$4 sm:$0xff]   ;;  %v4114_v41 = vld [vmem:[%s5609_s3 + $0xb0] ss:$8 sps:$4 sm:$0xff]  }
 0x2da   : > { %1096 = vmatpush1.bf16.msra.mxu1 %v4048_v39  ;;  %v4116_v39 = vld [vmem:[%s5609_s3 + $0xb4] ss:$8 sps:$4 sm:$0xff]  }
 0x2db   : > { %v4894_v46 = vpop.permute.xlu1 %2052  ;;  %2241 = vmatpush1.bf16.msra.mxu0 %v4051_v40  ;;  %v710_v49 = vpop.permute.xlu0 %709  ;;  %1097 = vmatprep.subr.bf16.mxu1 %v4056_v43  ;;  %v4119_v40 = vld [vmem:[%s5609_s3 + $0x5f4] ss:$8 sps:$4 sm:$0xff]   ;;  %v4122_v43 = vld [vmem:[%s5609_s3 + $0xc4] ss:$8 sps:$4 sm:$0xff]  }
 0x2dc   : > { %2242 = vmatprep.subr.bf16.mxu0 %v4059_v44  ;;  %v4125_v44 = vld [vmem:[%s5609_s3 + $0x604] ss:$8 sps:$4 sm:$0xff]  }
 0x2de   : > { %1098 = vmatpush1.bf16.msra.mxu1 %v4054_v47  ;;  %v4120_v47 = vld [vmem:[%s5609_s3 + $0xc0] ss:$8 sps:$4 sm:$0xff]  }
 0x2df   : > { %v712_v55 = vpop.permute.xlu1 %711  ;;  %2243 = vmatpush1.bf16.msra.mxu0 %v4057_v48  ;;  %v4915_v60 = vpop.permute.xlu0 %2060  ;;  %1099 = vmatprep.subr.bf16.mxu1 %v4062_v50  ;;  %v4123_v48 = vld [vmem:[%s5609_s3 + $0x600] ss:$8 sps:$4 sm:$0xff]   ;;  %v2064_v50 = vsel %vm1193_vm12, %v4894_v46, %v4874_v35  ;;  %v4129_v35 = vld [vmem:[%s5609_s3 + $0x610] ss:$8 sps:$4 sm:$0xff]   ;;  %v4134_v46 = vld [vmem:[%s5609_s3 + $0xe4] ss:$8 sps:$4 sm:$0xff]  }
 0x2e0   : > { %v717_v58 = vsel %vm713_vm11, %v710_v49, %v712_v55  ;;  %2244 = vmatprep.subr.bf16.mxu0 %v4065_v53  ;;  %v4131_v53 = vld [vmem:[%s5609_s3 + $0x614] ss:$8 sps:$4 sm:$0xff]  }
 0x2e1   : > { %924 = vmatprep.mubr.bf16.mxu1 %v717_v58 }
 0x2e2   : > { %1100 = vmatpush1.bf16.msra.mxu1 %v4060_v56  ;;  %v4126_v56 = vld [vmem:[%s5609_s3 + $0xd0] ss:$8 sps:$4 sm:$0xff]  }
 0x2e3   : > { %2245 = vmatpush1.bf16.msra.mxu0 %v4063_v57  ;;  %v708_v4 = vpop.permute.xlu0 %707  ;;  %1101 = vmatprep.subr.bf16.mxu1 %v4068_v62  ;;  %v2063_v45 = vpop.permute.xlu1 %2062  ;;  %v4137_v57 = vld [vmem:[%s5609_s3 + $0x624] ss:$8 sps:$4 sm:$0xff]   ;;  %v4132_v62 = vld [vmem:[%s5609_s3 + $0xe0] ss:$8 sps:$4 sm:$0xff]  }
 0x2e4   : > { %2246 = vmatprep.subr.bf16.mxu0 %v4071_v0  ;;  %v716_v6 = vsel %vm713_vm11, %v708_v4, %v710_v49  ;;  %v4128_v49 = vld [vmem:[%s5609_s3 + $0xd4] ss:$8 sps:$4 sm:$0xff]   ;;  %v2067_v55 = vsel %vm1193_vm12, %v4915_v60, %v2063_v45  ;;  %v4135_v0 = vld [vmem:[%s5609_s3 + $0x620] ss:$8 sps:$4 sm:$0xff]  }
 0x2e5   : > { %925 = vmatmul.mubr.bf16.gmra.mrb[16].mxu1 %v716_v6  ;;  %v4143_v4 = vld [vmem:[%s5609_s3 + $0x634] ss:$8 sps:$4 sm:$0xff]   ;;  %v4141_v6 = vld [vmem:[%s5609_s3 + $0x630] ss:$8 sps:$4 sm:$0xff]   ;;  %v4195_v45 = vld [vmem:[%s5609_s3 + $0x6c0] ss:$8 sps:$4 sm:$0xff]  }
 0x2e6   : > { %1102 = vmatpush1.bf16.msra.mxu1 %v4066_v1  ;;  %1127 = vmatprep.mubr.bf16.mxu1 %v4669_v51  ;;  %v4081_v51 = vld [vmem:[%s5609_s3 + $0x590] ss:$8 sps:$4 sm:$0xff]   ;;  %v4140_v1 = vld [vmem:[%s5609_s3 + $0xf4] ss:$8 sps:$4 sm:$0xff]  }
 0x2e7   : > { %2247 = vmatpush1.bf16.msra.mxu0 %v4069_v3  ;;  %1103 = vmatprep.subr.bf16.mxu1 %v4074_v5  ;;  %v2059_v58 = vpop.permute.xlu1 %2058  ;;  %v4138_v5 = vld [vmem:[%s5609_s3 + $0xf0] ss:$8 sps:$4 sm:$0xff]  }
 0x2e8   : > { %2248 = vmatprep.subr.bf16.mxu0 %v4077_v59  ;;  %v2066_v3 = vsel %vm1193_vm12, %v2059_v58, %v4915_v60  ;;  %v4146_v60 = vld [vmem:[%s5609_s3 + $0x204] ss:$8 sps:$4 sm:$0xff]   ;;  %v4210_v58 = vld [vmem:[%s5609_s3 + $0x2b0] ss:$8 sps:$4 sm:$0xff]  }
 0x2e9   : > { %v4149_v59 = vld [vmem:[%s5609_s3 + $0x644] ss:$8 sps:$4 sm:$0xff]  }
 0x2ea   : > { %1104 = vmatpush1.bf16.msra.mxu1 %v4072_v8  ;;  %v4147_v8 = vld [vmem:[%s5609_s3 + $0x640] ss:$8 sps:$4 sm:$0xff]  }
 0x2eb   : > { %2249 = vmatpush1.bf16.msra.mxu0 %v4075_v10  ;;  %1105 = vmatprep.subr.bf16.mxu1 %v4080_v11  ;;  %v4152_v10 = vld [vmem:[%s5609_s3 + $0x214] ss:$8 sps:$4 sm:$0xff]  }
 0x2ec   : > { %2250 = vmatprep.subr.bf16.mxu0 %v4083_v13  ;;  %v4155_v11 = vld [vmem:[%s5609_s3 + $0x654] ss:$8 sps:$4 sm:$0xff]   ;;  %v4150_v13 = vld [vmem:[%s5609_s3 + $0x210] ss:$8 sps:$4 sm:$0xff]  }
 0x2ee   : > { %1106 = vmatpush1.bf16.msra.mxu1 %v4078_v15  ;;  %v4153_v15 = vld [vmem:[%s5609_s3 + $0x650] ss:$8 sps:$4 sm:$0xff]  }
 0x2ef   : > { %2251 = vmatpush1.bf16.msra.mxu0 %v4081_v51  ;;  %1107 = vmatprep.subr.bf16.mxu1 %v4086_v16  ;;  %v4158_v51 = vld [vmem:[%s5609_s3 + $0x224] ss:$8 sps:$4 sm:$0xff]   ;;  %v4156_v16 = vld [vmem:[%s5609_s3 + $0x220] ss:$8 sps:$4 sm:$0xff]  }
 0x2f0   : > { %2252 = vmatprep.subr.bf16.mxu0 %v4089_v17  ;;  %v4159_v17 = vld [vmem:[%s5609_s3 + $0x660] ss:$8 sps:$4 sm:$0xff]  }
 0x2f2   : > { %1108 = vmatpush1.bf16.msra.mxu1 %v4084_v18  ;;  %v4164_v18 = vld [vmem:[%s5609_s3 + $0x234] ss:$8 sps:$4 sm:$0xff]  }
 0x2f3   : > { %2253 = vmatpush1.bf16.msra.mxu0 %v4087_v20  ;;  %1109 = vmatprep.subr.bf16.mxu1 %v4092_v21  ;;  %v5124_v20 = vpop.permute.xlu0 %1183  ;;  %v4167_v21 = vld [vmem:[%s5609_s3 + $0x674] ss:$8 sps:$4 sm:$0xff]  }
 0x2f4   : > { %2254 = vmatprep.subr.bf16.mxu0 %v4095_v22 }
 0x2f6   : > { %1110 = vmatpush1.bf16.msra.mxu1 %v4090_v23  ;;  %v4162_v23 = vld [vmem:[%s5609_s3 + $0x230] ss:$8 sps:$4 sm:$0xff]  }
 0x2f7   : > { %2255 = vmatpush1.bf16.msra.mxu0 %v4093_v24  ;;  %1111 = vmatprep.subr.bf16.mxu1 %v4098_v25  ;;  %v4165_v24 = vld [vmem:[%s5609_s3 + $0x670] ss:$8 sps:$4 sm:$0xff]   ;;  %v4170_v25 = vld [vmem:[%s5609_s3 + $0x244] ss:$8 sps:$4 sm:$0xff]  }
 0x2f8   : > { %2256 = vmatprep.subr.bf16.mxu0 %v4101_v26  ;;  %v4168_v26 = vld [vmem:[%s5609_s3 + $0x240] ss:$8 sps:$4 sm:$0xff]  }
 0x2fa   : > { %1112 = vmatpush1.bf16.msra.mxu1 %v4096_v27  ;;  %v4171_v27 = vld [vmem:[%s5609_s3 + $0x680] ss:$8 sps:$4 sm:$0xff]  }
 0x2fb   : > { %2257 = vmatpush1.bf16.msra.mxu0 %v4099_v28  ;;  %1113 = vmatprep.subr.bf16.mxu1 %v4104_v29  ;;  %v4176_v28 = vld [vmem:[%s5609_s3 + $0x254] ss:$8 sps:$4 sm:$0xff]  }
 0x2fc   : > { %2258 = vmatprep.subr.bf16.mxu0 %v4107_v30  ;;  %v4179_v29 = vld [vmem:[%s5609_s3 + $0x694] ss:$8 sps:$4 sm:$0xff]   ;;  %v4174_v30 = vld [vmem:[%s5609_s3 + $0x250] ss:$8 sps:$4 sm:$0xff]  }
 0x2fe   : > { %1114 = vmatpush1.bf16.msra.mxu1 %v4102_v31  ;;  %v4177_v31 = vld [vmem:[%s5609_s3 + $0x690] ss:$8 sps:$4 sm:$0xff]  }
 0x2ff   : > { %2259 = vmatpush1.bf16.msra.mxu0 %v4105_v32  ;;  %1115 = vmatprep.subr.bf16.mxu1 %v4110_v33  ;;  %v4182_v32 = vld [vmem:[%s5609_s3 + $0x264] ss:$8 sps:$4 sm:$0xff]  }
 0x300   : > { %2260 = vmatprep.subr.bf16.mxu0 %v4113_v34  ;;  %v4185_v33 = vld [vmem:[%s5609_s3 + $0x6a4] ss:$8 sps:$4 sm:$0xff]   ;;  %v4180_v34 = vld [vmem:[%s5609_s3 + $0x260] ss:$8 sps:$4 sm:$0xff]  }
 0x302   : > { %1116 = vmatpush1.bf16.msra.mxu1 %v4108_v36  ;;  %v4183_v36 = vld [vmem:[%s5609_s3 + $0x6a0] ss:$8 sps:$4 sm:$0xff]  }
 0x303   : > { %2261 = vmatpush1.bf16.msra.mxu0 %v4111_v38  ;;  %1117 = vmatprep.subr.bf16.mxu1 %v4116_v39  ;;  %v4188_v38 = vld [vmem:[%s5609_s3 + $0x274] ss:$8 sps:$4 sm:$0xff]  }
 0x304   : > { %2262 = vmatprep.subr.bf16.mxu0 %v4119_v40  ;;  %v4191_v39 = vld [vmem:[%s5609_s3 + $0x6b4] ss:$8 sps:$4 sm:$0xff]   ;;  %v4186_v40 = vld [vmem:[%s5609_s3 + $0x270] ss:$8 sps:$4 sm:$0xff]  }
 0x306   : > { %1118 = vmatpush1.bf16.msra.mxu1 %v4114_v41  ;;  %v4189_v41 = vld [vmem:[%s5609_s3 + $0x6b0] ss:$8 sps:$4 sm:$0xff]  }
 0x307   : > { %2263 = vmatpush1.bf16.msra.mxu0 %v4117_v42  ;;  %1119 = vmatprep.subr.bf16.mxu1 %v4122_v43  ;;  %v4194_v42 = vld [vmem:[%s5609_s3 + $0x284] ss:$8 sps:$4 sm:$0xff]  }
 0x308   : > { %2503 = vmatprep.subr.bf16.mxu0 %v4125_v44  ;;  %v4197_v43 = vld [vmem:[%s5609_s3 + $0x6c4] ss:$8 sps:$4 sm:$0xff]   ;;  %v4192_v44 = vld [vmem:[%s5609_s3 + $0x280] ss:$8 sps:$4 sm:$0xff]  }
 0x30a   : > { %2265 = vmatmul.mubr.bf16.vlgmr.msra.gmra.mrb[0].mxu0 %v2064_v50  ;;  %1120 = vmatpush1.bf16.msra.mxu1 %v4120_v47  ;;  %v4200_v47 = vld [vmem:[%s5609_s3 + $0x294] ss:$8 sps:$4 sm:$0xff]   ;;  %v4201_v50 = vld [vmem:[%s5609_s3 + $0x6d0] ss:$8 sps:$4 sm:$0xff]  }
 0x30b   : > { %2274 = vmatprep.mubr.bf16.mxu0 %v2067_v55  ;;  %2504 = vmatpush1.bf16.msra.mxu0 %v4123_v48  ;;  %v4203_v48 = vld [vmem:[%s5609_s3 + $0x6d4] ss:$8 sps:$4 sm:$0xff]   ;;  %v4209_v55 = vld [vmem:[%s5609_s3 + $0x6e4] ss:$8 sps:$4 sm:$0xff]  }
 0x30c   : > { %1121 = vmatprep.subr.bf16.mxu1 %v4128_v49  ;;  %2505 = vmatprep.subr.bf16.mxu0 %v4131_v53  ;;  %v4198_v49 = vld [vmem:[%s5609_s3 + $0x290] ss:$8 sps:$4 sm:$0xff]   ;;  %v4206_v53 = vld [vmem:[%s5609_s3 + $0x2a4] ss:$8 sps:$4 sm:$0xff]  }
 0x30e   : > { %1122 = vmatpush1.bf16.msra.mxu1 %v4126_v56  ;;  %v4204_v56 = vld [vmem:[%s5609_s3 + $0x2a0] ss:$8 sps:$4 sm:$0xff]  }
 0x30f   : > { %2506 = vmatpush1.bf16.msra.mxu0 %v4129_v35  ;;  %1123 = vmatprep.subr.bf16.mxu1 %v4134_v46  ;;  %v4207_v35 = vld [vmem:[%s5609_s3 + $0x6e0] ss:$8 sps:$4 sm:$0xff]   ;;  %v4212_v46 = vld [vmem:[%s5609_s3 + $0x2b4] ss:$8 sps:$4 sm:$0xff]  }
 0x310   : > { %2507 = vmatprep.subr.bf16.mxu0 %v4137_v57  ;;  %v4215_v57 = vld [vmem:[%s5609_s3 + $0x6f4] ss:$8 sps:$4 sm:$0xff]  }
 0x312   : > { %2275 = vmatmul.mubr.bf16.gmra.mrb[4].mxu0 %v2066_v3  ;;  %1124 = vmatpush1.bf16.msra.mxu1 %v4132_v62  ;;  %v4213_v62 = vld [vmem:[%s5609_s3 + $0x6f0] ss:$8 sps:$4 sm:$0xff]   ;;  %v5240_v3 = vpop.permute.xlu0 %2605 }
 0x313   : > { %2535 = vmatprep.mubr.bf16.mxu0 %v4801_v2  ;;  %2508 = vmatpush1.bf16.msra.mxu0 %v4135_v0  ;;  %v4144_v2 = vld [vmem:[%s5609_s3 + $0x200] ss:$8 sps:$4 sm:$0xff]   ;;  %v4218_v0 = vld [vmem:[%s5609_s3 + $0x2c4] ss:$8 sps:$4 sm:$0xff]  }
 0x314   : > { %1125 = vmatprep.subr.bf16.mxu1 %v4140_v1  ;;  %2509 = vmatprep.subr.bf16.mxu0 %v4143_v4  ;;  %v4221_v1 = vld [vmem:[%s5609_s3 + $0x704] ss:$8 sps:$4 sm:$0xff]   ;;  %v4216_v4 = vld [vmem:[%s5609_s3 + $0x2c0] ss:$8 sps:$4 sm:$0xff]  }
 0x316   : > { %1126 = vmatpush1.bf16.msra.mxu1 %v4138_v5  ;;  %v4219_v5 = vld [vmem:[%s5609_s3 + $0x700] ss:$8 sps:$4 sm:$0xff]  }
 0x317   : > { %2510 = vmatpush1.bf16.msra.mxu0 %v4141_v6  ;;  %1362 = vmatprep.subr.bf16.mxu1 %v4146_v60  ;;  %v4224_v6 = vld [vmem:[%s5609_s3 + $0x2d4] ss:$8 sps:$4 sm:$0xff]  }
 0x318   : > { %2511 = vmatprep.subr.bf16.mxu0 %v4149_v59  ;;  %v4227_v60 = vld [vmem:[%s5609_s3 + $0x714] ss:$8 sps:$4 sm:$0xff]  }
 0x319   : > { %1128 = vmatmul.mubr.bf16.vlgmr.msra.gmra.mrb[12].mxu1 %v4671_v52  ;;  %v4161_v52 = vld [vmem:[%s5609_s3 + $0x664] ss:$8 sps:$4 sm:$0xff]  }
 0x31a   : > { %1137 = vmatprep.mubr.bf16.mxu1 %v4690_v63  ;;  %1363 = vmatpush1.bf16.msra.mxu1 %v4144_v2  ;;  %v1186_v63 = vpop.permute.xlu1 %1185  ;;  %v4222_v2 = vld [vmem:[%s5609_s3 + $0x2d0] ss:$8 sps:$4 sm:$0xff]  }
 0x31b   : > { %2512 = vmatpush1.bf16.msra.mxu0 %v4147_v8  ;;  %1364 = vmatprep.subr.bf16.mxu1 %v4152_v10  ;;  %v1195_v22 = vsel %vm1193_vm12, %v5124_v20, %v1186_v63  ;;  %v1182_v8 = vpop.permute.xlu0 %1181  ;;  %v4225_v10 = vld [vmem:[%s5609_s3 + $0x710] ss:$8 sps:$4 sm:$0xff]  }
 0x31c   : > { %2513 = vmatprep.subr.bf16.mxu0 %v4155_v11  ;;  %v4230_v11 = vld [vmem:[%s5609_s3 + $0x2e4] ss:$8 sps:$4 sm:$0xff]  }
 0x31e   : > { %1365 = vmatpush1.bf16.msra.mxu1 %v4150_v13  ;;  %v2608_v59 = vpop.permute.xlu1 %2607  ;;  %v4231_v13 = vld [vmem:[%s5609_s3 + $0x720] ss:$8 sps:$4 sm:$0xff]  }
 0x31f   : > { %2514 = vmatpush1.bf16.msra.mxu0 %v4153_v15  ;;  %1366 = vmatprep.subr.bf16.mxu1 %v4158_v51  ;;  %v4236_v51 = vld [vmem:[%s5609_s3 + $0x2f4] ss:$8 sps:$4 sm:$0xff]   ;;  %v1190_v63 = vpop.permute.xlu0 %1189 }
 0x320   : > { %2515 = vmatprep.subr.bf16.mxu0 %v4161_v52  ;;  %v4239_v52 = vld [vmem:[%s5609_s3 + $0x734] ss:$8 sps:$4 sm:$0xff]  }
 0x321   : > { %1138 = vmatmul.mubr.bf16.gmra.mrb[16].mxu1 %v4706_v14  ;;  %v4173_v14 = vld [vmem:[%s5609_s3 + $0x684] ss:$8 sps:$4 sm:$0xff]  }
 0x322   : > { %1367 = vmatpush1.bf16.msra.mxu1 %v4156_v16  ;;  %1394 = vmatprep.mubr.bf16.mxu1 %v1195_v22  ;;  %v5274_v15 = vpop.permute.xlu1 %2603  ;;  %v2616_v16 = vsel %vm713_vm11, %v5240_v3, %v2608_v59  ;;  %v4297_v59 = vld [vmem:[%s5609_s3 + $0x7d0] ss:$8 sps:$4 sm:$0xff]  }
 0x323   : > { %2516 = vmatpush1.bf16.msra.mxu0 %v4159_v17  ;;  %1368 = vmatprep.subr.bf16.mxu1 %v4164_v18  ;;  %v4234_v17 = vld [vmem:[%s5609_s3 + $0x2f0] ss:$8 sps:$4 sm:$0xff]  }
 0x324   : > { %2517 = vmatprep.subr.bf16.mxu0 %v4167_v21  ;;  %v4237_v18 = vld [vmem:[%s5609_s3 + $0x730] ss:$8 sps:$4 sm:$0xff]   ;;  %v4242_v21 = vld [vmem:[%s5609_s3 + $0x304] ss:$8 sps:$4 sm:$0xff]  }
 0x326   : > { %1369 = vmatpush1.bf16.msra.mxu1 %v4162_v23  ;;  %v1192_v22 = vpop.permute.xlu1 %1191  ;;  %v4240_v23 = vld [vmem:[%s5609_s3 + $0x300] ss:$8 sps:$4 sm:$0xff]  }
 0x327   : > { %2518 = vmatpush1.bf16.msra.mxu0 %v4165_v24  ;;  %1370 = vmatprep.subr.bf16.mxu1 %v4170_v25  ;;  %v5300_v24 = vpop.permute.xlu0 %2611  ;;  %v4243_v25 = vld [vmem:[%s5609_s3 + $0x740] ss:$8 sps:$4 sm:$0xff]  }
 0x328   : > { %2519 = vmatprep.subr.bf16.mxu0 %v4173_v14  ;;  %v4248_v14 = vld [vmem:[%s5609_s3 + $0x314] ss:$8 sps:$4 sm:$0xff]  }
 0x32a   : > { %1371 = vmatpush1.bf16.msra.mxu1 %v4168_v26  ;;  %v1194_v26 = vsel %vm1193_vm12, %v1182_v8, %v5124_v20  ;;  %v4249_v20 = vld [vmem:[%s5609_s3 + $0x750] ss:$8 sps:$4 sm:$0xff]   ;;  %v4305_v8 = vld [vmem:[%s5609_s3 + $0x7e4] ss:$8 sps:$4 sm:$0xff]  }
 0x32b   : > { %2520 = vmatpush1.bf16.msra.mxu0 %v4171_v27  ;;  %1372 = vmatprep.subr.bf16.mxu1 %v4176_v28  ;;  %v4251_v27 = vld [vmem:[%s5609_s3 + $0x754] ss:$8 sps:$4 sm:$0xff]   ;;  %v1197_v28 = vsel %vm1193_vm12, %v1190_v63, %v1192_v22  ;;  %v2615_v22 = vsel %vm713_vm11, %v5274_v15, %v5240_v3  ;;  %v4326_v3 = vld [vmem:[%s5609_s3 + $0x3e4] ss:$8 sps:$4 sm:$0xff]  }
 0x32c   : > { %2521 = vmatprep.subr.bf16.mxu0 %v4179_v29  ;;  %v4246_v29 = vld [vmem:[%s5609_s3 + $0x310] ss:$8 sps:$4 sm:$0xff]   ;;  %v4329_v15 = vld [vmem:[%s5609_s3 + $0x824] ss:$8 sps:$4 sm:$0xff]  }
 0x32e   : > { %1373 = vmatpush1.bf16.msra.mxu1 %v4174_v30  ;;  %v4254_v30 = vld [vmem:[%s5609_s3 + $0x324] ss:$8 sps:$4 sm:$0xff]  }
 0x32f   : > { %2522 = vmatpush1.bf16.msra.mxu0 %v4177_v31  ;;  %1374 = vmatprep.subr.bf16.mxu1 %v4182_v32  ;;  %v4257_v31 = vld [vmem:[%s5609_s3 + $0x764] ss:$8 sps:$4 sm:$0xff]   ;;  %v1188_v32 = vpop.permute.xlu0 %1187 }
 0x330   : > { %2523 = vmatprep.subr.bf16.mxu0 %v4185_v33  ;;  %v4252_v33 = vld [vmem:[%s5609_s3 + $0x320] ss:$8 sps:$4 sm:$0xff]  }
 0x332   : > { %1375 = vmatpush1.bf16.msra.mxu1 %v4180_v34  ;;  %v4255_v34 = vld [vmem:[%s5609_s3 + $0x760] ss:$8 sps:$4 sm:$0xff]  }
 0x333   : > { %2524 = vmatpush1.bf16.msra.mxu0 %v4183_v36  ;;  %1376 = vmatprep.subr.bf16.mxu1 %v4188_v38  ;;  %v4260_v36 = vld [vmem:[%s5609_s3 + $0x334] ss:$8 sps:$4 sm:$0xff]   ;;  %v1196_v38 = vsel %vm1193_vm12, %v1188_v32, %v1190_v63  ;;  %v4314_v63 = vld [vmem:[%s5609_s3 + $0x3c4] ss:$8 sps:$4 sm:$0xff]  }
 0x334   : > { %2525 = vmatprep.subr.bf16.mxu0 %v4191_v39  ;;  %v4263_v39 = vld [vmem:[%s5609_s3 + $0x774] ss:$8 sps:$4 sm:$0xff]  }
 0x336   : > { %1377 = vmatpush1.bf16.msra.mxu1 %v4186_v40  ;;  %v4258_v40 = vld [vmem:[%s5609_s3 + $0x330] ss:$8 sps:$4 sm:$0xff]  }
 0x337   : > { %2526 = vmatpush1.bf16.msra.mxu0 %v4189_v41  ;;  %1378 = vmatprep.subr.bf16.mxu1 %v4194_v42  ;;  %v4261_v41 = vld [vmem:[%s5609_s3 + $0x770] ss:$8 sps:$4 sm:$0xff]   ;;  %v4266_v42 = vld [vmem:[%s5609_s3 + $0x344] ss:$8 sps:$4 sm:$0xff]  }
 0x338   : > { %2527 = vmatprep.subr.bf16.mxu0 %v4197_v43  ;;  %v4269_v43 = vld [vmem:[%s5609_s3 + $0x784] ss:$8 sps:$4 sm:$0xff]  }
 0x33a   : > { %1379 = vmatpush1.bf16.msra.mxu1 %v4192_v44  ;;  %v4267_v44 = vld [vmem:[%s5609_s3 + $0x780] ss:$8 sps:$4 sm:$0xff]  }
 0x33b   : > { %2528 = vmatpush1.bf16.msra.mxu0 %v4195_v45  ;;  %1380 = vmatprep.subr.bf16.mxu1 %v4200_v47  ;;  %v4272_v45 = vld [vmem:[%s5609_s3 + $0x354] ss:$8 sps:$4 sm:$0xff]  }
 0x33c   : > { %2529 = vmatprep.subr.bf16.mxu0 %v4203_v48  ;;  %v4275_v47 = vld [vmem:[%s5609_s3 + $0x794] ss:$8 sps:$4 sm:$0xff]   ;;  %v4270_v48 = vld [vmem:[%s5609_s3 + $0x350] ss:$8 sps:$4 sm:$0xff]  }
 0x33e   : > { %1381 = vmatpush1.bf16.msra.mxu1 %v4198_v49  ;;  %v4273_v49 = vld [vmem:[%s5609_s3 + $0x790] ss:$8 sps:$4 sm:$0xff]  }
 0x33f   : > { %2530 = vmatpush1.bf16.msra.mxu0 %v4201_v50  ;;  %1382 = vmatprep.subr.bf16.mxu1 %v4206_v53  ;;  %v4278_v50 = vld [vmem:[%s5609_s3 + $0x364] ss:$8 sps:$4 sm:$0xff]  }
 0x340   : > { %2531 = vmatprep.subr.bf16.mxu0 %v4209_v55  ;;  %v4281_v53 = vld [vmem:[%s5609_s3 + $0x7a4] ss:$8 sps:$4 sm:$0xff]   ;;  %v4276_v55 = vld [vmem:[%s5609_s3 + $0x360] ss:$8 sps:$4 sm:$0xff]  }
 0x342   : > { %1383 = vmatpush1.bf16.msra.mxu1 %v4204_v56  ;;  %v4279_v56 = vld [vmem:[%s5609_s3 + $0x7a0] ss:$8 sps:$4 sm:$0xff]  }
 0x343   : > { %2532 = vmatpush1.bf16.msra.mxu0 %v4207_v35  ;;  %1384 = vmatprep.subr.bf16.mxu1 %v4212_v46  ;;  %v4284_v35 = vld [vmem:[%s5609_s3 + $0x374] ss:$8 sps:$4 sm:$0xff]  }
 0x344   : > { %2533 = vmatprep.subr.bf16.mxu0 %v4215_v57  ;;  %v4287_v46 = vld [vmem:[%s5609_s3 + $0x7b4] ss:$8 sps:$4 sm:$0xff]   ;;  %v4282_v57 = vld [vmem:[%s5609_s3 + $0x370] ss:$8 sps:$4 sm:$0xff]  }
 0x346   : > { %1385 = vmatpush1.bf16.msra.mxu1 %v4210_v58  ;;  %v4285_v58 = vld [vmem:[%s5609_s3 + $0x7b0] ss:$8 sps:$4 sm:$0xff]  }
 0x347   : > { %2534 = vmatpush1.bf16.msra.mxu0 %v4213_v62  ;;  %1386 = vmatprep.subr.bf16.mxu1 %v4218_v0  ;;  %v4290_v62 = vld [vmem:[%s5609_s3 + $0x384] ss:$8 sps:$4 sm:$0xff]  }
 0x348   : > { %2783 = vmatprep.subr.bf16.mxu0 %v4221_v1  ;;  %v4293_v0 = vld [vmem:[%s5609_s3 + $0x7c4] ss:$8 sps:$4 sm:$0xff]   ;;  %v4288_v1 = vld [vmem:[%s5609_s3 + $0x380] ss:$8 sps:$4 sm:$0xff]  }
 0x34a   : > { %2536 = vmatmul.mubr.bf16.vlgmr.msra.gmra.mrb[0].mxu0 %v4813_v7  ;;  %1387 = vmatpush1.bf16.msra.mxu1 %v4216_v4  ;;  %v4233_v7 = vld [vmem:[%s5609_s3 + $0x724] ss:$8 sps:$4 sm:$0xff]   ;;  %v4291_v4 = vld [vmem:[%s5609_s3 + $0x7c0] ss:$8 sps:$4 sm:$0xff]  }
 0x34b   : > { %2545 = vmatprep.mubr.bf16.mxu0 %v4824_v9  ;;  %2784 = vmatpush1.bf16.msra.mxu0 %v4219_v5  ;;  %v4228_v9 = vld [vmem:[%s5609_s3 + $0x2e0] ss:$8 sps:$4 sm:$0xff]   ;;  %v4296_v5 = vld [vmem:[%s5609_s3 + $0x394] ss:$8 sps:$4 sm:$0xff]  }
 0x34c   : > { %1388 = vmatprep.subr.bf16.mxu1 %v4224_v6  ;;  %2785 = vmatprep.subr.bf16.mxu0 %v4227_v60  ;;  %v4299_v6 = vld [vmem:[%s5609_s3 + $0x7d4] ss:$8 sps:$4 sm:$0xff]   ;;  %v4294_v60 = vld [vmem:[%s5609_s3 + $0x390] ss:$8 sps:$4 sm:$0xff]  }
 0x34e   : > { %1389 = vmatpush1.bf16.msra.mxu1 %v4222_v2  ;;  %v4302_v2 = vld [vmem:[%s5609_s3 + $0x3a4] ss:$8 sps:$4 sm:$0xff]  }
 0x34f   : > { %2786 = vmatpush1.bf16.msra.mxu0 %v4225_v10  ;;  %1390 = vmatprep.subr.bf16.mxu1 %v4230_v11  ;;  %v4300_v10 = vld [vmem:[%s5609_s3 + $0x3a0] ss:$8 sps:$4 sm:$0xff]  }
 0x350   : > { %2787 = vmatprep.subr.bf16.mxu0 %v4233_v7  ;;  %v4303_v11 = vld [vmem:[%s5609_s3 + $0x7e0] ss:$8 sps:$4 sm:$0xff]   ;;  %v4308_v7 = vld [vmem:[%s5609_s3 + $0x3b4] ss:$8 sps:$4 sm:$0xff]  }
 0x352   : > { %2546 = vmatmul.mubr.bf16.gmra.mrb[4].mxu0 %v4834_v12  ;;  %1391 = vmatpush1.bf16.msra.mxu1 %v4228_v9  ;;  %v4245_v12 = vld [vmem:[%s5609_s3 + $0x744] ss:$8 sps:$4 sm:$0xff]   ;;  %v4311_v9 = vld [vmem:[%s5609_s3 + $0x7f4] ss:$8 sps:$4 sm:$0xff]  }
 0x353   : > { %2788 = vmatpush1.bf16.msra.mxu0 %v4231_v13  ;;  %2815 = vmatprep.mubr.bf16.mxu0 %v2616_v16  ;;  %v4306_v13 = vld [vmem:[%s5609_s3 + $0x3b0] ss:$8 sps:$4 sm:$0xff]   ;;  %v4317_v16 = vld [vmem:[%s5609_s3 + $0x804] ss:$8 sps:$4 sm:$0xff]  }
 0x354   : > { %1392 = vmatprep.subr.bf16.mxu1 %v4236_v51  ;;  %2789 = vmatprep.subr.bf16.mxu0 %v4239_v52  ;;  %v2614_v51 = vpop.permute.xlu1 %2613  ;;  %v4309_v52 = vld [vmem:[%s5609_s3 + $0x7f0] ss:$8 sps:$4 sm:$0xff]  }
 0x356   : > { %1393 = vmatpush1.bf16.msra.mxu1 %v4234_v17  ;;  %v4312_v17 = vld [vmem:[%s5609_s3 + $0x3c0] ss:$8 sps:$4 sm:$0xff]  }
 0x357   : > { %2790 = vmatpush1.bf16.msra.mxu0 %v4237_v18  ;;  %1663 = vmatprep.subr.bf16.mxu1 %v4242_v21  ;;  %v4315_v18 = vld [vmem:[%s5609_s3 + $0x800] ss:$8 sps:$4 sm:$0xff]   ;;  %v4320_v21 = vld [vmem:[%s5609_s3 + $0x3d4] ss:$8 sps:$4 sm:$0xff]  }
 0x358   : > { %2791 = vmatprep.subr.bf16.mxu0 %v4245_v12  ;;  %v4323_v12 = vld [vmem:[%s5609_s3 + $0x814] ss:$8 sps:$4 sm:$0xff]  }
 0x359   : > { %1395 = vmatmul.mubr.bf16.vlgmr.msra.gmra.mrb[12].mxu1 %v1194_v26  ;;  %v4321_v26 = vld [vmem:[%s5609_s3 + $0x810] ss:$8 sps:$4 sm:$0xff]  }
 0x35a   : > { %1404 = vmatprep.mubr.bf16.mxu1 %v1197_v28  ;;  %1664 = vmatpush1.bf16.msra.mxu1 %v4240_v23  ;;  %v2610_v23 = vpop.permute.xlu1 %2609 }
 0x35b   : > { %2792 = vmatpush1.bf16.msra.mxu0 %v4243_v25  ;;  %1665 = vmatprep.subr.bf16.mxu1 %v4248_v14  ;;  %v2618_v25 = vsel %vm713_vm11, %v5300_v24, %v2614_v51  ;;  %v4318_v14 = vld [vmem:[%s5609_s3 + $0x3d0] ss:$8 sps:$4 sm:$0xff]   ;;  %v2617_v32 = vsel %vm713_vm11, %v2610_v23, %v5300_v24  ;;  %v4338_v24 = vld [vmem:[%s5609_s3 + $0x844] ss:$8 sps:$4 sm:$0xff]   ;;  %v3120_v51 = vlaneseq }
 0x35c   : > { %2793 = vmatprep.subr.bf16.mxu0 %v4251_v27  ;;  %v4324_v27 = vld [vmem:[%s5609_s3 + $0x3e0] ss:$8 sps:$4 sm:$0xff]  }
 0x35e   : > { %1666 = vmatpush1.bf16.msra.mxu1 %v4246_v29  ;;  %v2882_v28 = vpop.permute.xlu1 %2881  ;;  %v4327_v29 = vld [vmem:[%s5609_s3 + $0x820] ss:$8 sps:$4 sm:$0xff]  }
 0x35f   : > { %2794 = vmatpush1.bf16.msra.mxu0 %v4249_v20  ;;  %1667 = vmatprep.subr.bf16.mxu1 %v4254_v30  ;;  %v4332_v20 = vld [vmem:[%s5609_s3 + $0x3f4] ss:$8 sps:$4 sm:$0xff]  }
 0x360   : > { %2795 = vmatprep.subr.bf16.mxu0 %v4257_v31  ;;  %v4335_v30 = vld [vmem:[%s5609_s3 + $0x834] ss:$8 sps:$4 sm:$0xff]   ;;  %v5489_v31 = vpop.permute.xlu0 %2879 }
 0x361   : > { %1405 = vmatmul.mubr.bf16.gmra.mrb[16].mxu1 %v1196_v38  ;;  %v4336_v38 = vld [vmem:[%s5609_s3 + $0x840] ss:$8 sps:$4 sm:$0xff]  }
 0x362   : > { %1668 = vmatpush1.bf16.msra.mxu1 %v4252_v33  ;;  %1695 = vmatprep.mubr.bf16.mxu1 %v4712_v19  ;;  %v4264_v19 = vld [vmem:[%s5609_s3 + $0x340] ss:$8 sps:$4 sm:$0xff]   ;;  %v2890_v33 = vsel %vm1193_vm12, %v5489_v31, %v2882_v28 }
 0x363   : > { %2796 = vmatpush1.bf16.msra.mxu0 %v4255_v34  ;;  %1669 = vmatprep.subr.bf16.mxu1 %v4260_v36  ;;  %v4330_v34 = vld [vmem:[%s5609_s3 + $0x3f0] ss:$8 sps:$4 sm:$0xff]  }
 0x364   : > { %2797 = vmatprep.subr.bf16.mxu0 %v4263_v39  ;;  %v4333_v36 = vld [vmem:[%s5609_s3 + $0x830] ss:$8 sps:$4 sm:$0xff]   ;;  %v4341_v39 = vld [vmem:[%s5609_s3 + $0x854] ss:$8 sps:$4 sm:$0xff]  }
 0x366   : > { %1670 = vmatpush1.bf16.msra.mxu1 %v4258_v40  ;;  %v4339_v40 = vld [vmem:[%s5609_s3 + $0x850] ss:$8 sps:$4 sm:$0xff]  }
 0x367   : > { %2798 = vmatpush1.bf16.msra.mxu0 %v4261_v41  ;;  %1671 = vmatprep.subr.bf16.mxu1 %v4266_v42  ;;  %v4344_v41 = vld [vmem:[%s5609_s3 + $0x864] ss:$8 sps:$4 sm:$0xff]   ;;  %v4342_v42 = vld [vmem:[%s5609_s3 + $0x860] ss:$8 sps:$4 sm:$0xff]  }
 0x368   : > { %2799 = vmatprep.subr.bf16.mxu0 %v4269_v43  ;;  %v4350_v43 = vld [vmem:[%s5609_s3 + $0x884] ss:$8 sps:$4 sm:$0xff]  }
 0x36a   : > { %1672 = vmatpush1.bf16.msra.mxu1 %v4264_v19  ;;  %v4348_v19 = vld [vmem:[%s5609_s3 + $0x880] ss:$8 sps:$4 sm:$0xff]  }
 0x36b   : > { %2800 = vmatpush1.bf16.msra.mxu0 %v4267_v44  ;;  %1673 = vmatprep.subr.bf16.mxu1 %v4272_v45  ;;  %v4351_v44 = vld [vmem:[%s5609_s3 + $0x890] ss:$8 sps:$4 sm:$0xff]   ;;  %v4356_v45 = vld [vmem:[%s5609_s3 + $0x8a4] ss:$8 sps:$4 sm:$0xff]  }
 0x36c   : > { %2801 = vmatprep.subr.bf16.mxu0 %v4275_v47  ;;  %v4354_v47 = vld [vmem:[%s5609_s3 + $0x8a0] ss:$8 sps:$4 sm:$0xff]  }
 0x36e   : > { %1674 = vmatpush1.bf16.msra.mxu1 %v4270_v48  ;;  %v4359_v48 = vld [vmem:[%s5609_s3 + $0x8b4] ss:$8 sps:$4 sm:$0xff]  }
 0x36f   : > { %2802 = vmatpush1.bf16.msra.mxu0 %v4273_v49  ;;  %1675 = vmatprep.subr.bf16.mxu1 %v4278_v50  ;;  %v4357_v49 = vld [vmem:[%s5609_s3 + $0x8b0] ss:$8 sps:$4 sm:$0xff]   ;;  %v4362_v50 = vld [vmem:[%s5609_s3 + $0x8c4] ss:$8 sps:$4 sm:$0xff]  }
 0x370   : > { %2803 = vmatprep.subr.bf16.mxu0 %v4281_v53  ;;  %v4360_v53 = vld [vmem:[%s5609_s3 + $0x8c0] ss:$8 sps:$4 sm:$0xff]  }
 0x372   : > { %1676 = vmatpush1.bf16.msra.mxu1 %v4276_v55  ;;  %v4365_v55 = vld [vmem:[%s5609_s3 + $0x8d4] ss:$8 sps:$4 sm:$0xff]  }
 0x373   : > { %2804 = vmatpush1.bf16.msra.mxu0 %v4279_v56  ;;  %1677 = vmatprep.subr.bf16.mxu1 %v4284_v35  ;;  %v4363_v56 = vld [vmem:[%s5609_s3 + $0x8d0] ss:$8 sps:$4 sm:$0xff]   ;;  %v4368_v35 = vld [vmem:[%s5609_s3 + $0x8e4] ss:$8 sps:$4 sm:$0xff]  }
 0x374   : > { %2805 = vmatprep.subr.bf16.mxu0 %v4287_v46  ;;  %v4366_v46 = vld [vmem:[%s5609_s3 + $0x8e0] ss:$8 sps:$4 sm:$0xff]  }
 0x376   : > { %1678 = vmatpush1.bf16.msra.mxu1 %v4282_v57  ;;  %v4371_v57 = vld [vmem:[%s5609_s3 + $0x8f4] ss:$8 sps:$4 sm:$0xff]  }
 0x377   : > { %2806 = vmatpush1.bf16.msra.mxu0 %v4285_v58  ;;  %1679 = vmatprep.subr.bf16.mxu1 %v4290_v62  ;;  %v2878_v58 = vpop.permute.xlu0 %2877  ;;  %v4369_v62 = vld [vmem:[%s5609_s3 + $0x8f0] ss:$8 sps:$4 sm:$0xff]  }
 0x378   : > { %2807 = vmatprep.subr.bf16.mxu0 %v4293_v0  ;;  %v2886_v0 = vpop.permute.xlu1 %2885 }
 0x37a   : > { %1680 = vmatpush1.bf16.msra.mxu1 %v4288_v1 }
 0x37b   : > { %2808 = vmatpush1.bf16.msra.mxu0 %v4291_v4  ;;  %1681 = vmatprep.subr.bf16.mxu1 %v4296_v5  ;;  %v2888_v1 = vpop.permute.xlu0 %2887  ;;  %v2889_v4 = vsel %vm1193_vm12, %v2878_v58, %v5489_v31 }
 0x37c   : > { %2809 = vmatprep.subr.bf16.mxu0 %v4299_v6  ;;  %v2892_v5 = vsel %vm1193_vm12, %v2886_v0, %v2888_v1  ;;  %v2884_v6 = vpop.permute.xlu1 %2883 }
 0x37e   : > { %1682 = vmatpush1.bf16.msra.mxu1 %v4294_v60  ;;  %v2891_v60 = vsel %vm1193_vm12, %v2884_v6, %v2886_v0 }
 0x37f   : > { %2810 = vmatpush1.bf16.msra.mxu0 %v4297_v59  ;;  %1683 = vmatprep.subr.bf16.mxu1 %v4302_v2 }
 0x380   : > { %2811 = vmatprep.subr.bf16.mxu0 %v4305_v8 }
 0x382   : > { %1684 = vmatpush1.bf16.msra.mxu1 %v4300_v10 }
 0x383   : > { %2812 = vmatpush1.bf16.msra.mxu0 %v4303_v11  ;;  %1685 = vmatprep.subr.bf16.mxu1 %v4308_v7 }
 0x384   : > { %2813 = vmatprep.subr.bf16.mxu0 %v4311_v9 }
 0x386   : > { %1686 = vmatpush1.bf16.msra.mxu1 %v4306_v13 }
 0x387   : > { %2814 = vmatpush1.bf16.msra.mxu0 %v4309_v52  ;;  %1687 = vmatprep.subr.bf16.mxu1 %v4314_v63  ;;  %v3121_v52 = vshrl.u32 %v3120_v51, 7 }
 0x388   : > { %3057 = vmatprep.subr.bf16.mxu0 %v4317_v16  ;;  %v3118_v16 = vld [vmem:[%s5610_s4] sm:$0x3] }
 0x389   : > { %v3122_v63 = vsub.s32 0, %v3121_v52 }
 0x38a   : > { %2816 = vmatmul.mubr.bf16.vlgmr.msra.gmra.mrb[0].mxu0 %v2615_v22  ;;  %1688 = vmatpush1.bf16.msra.mxu1 %v4312_v17  ;;  %v3126_v17 = vsub.s32 1, %v3121_v52 }
 0x38b   : > { %2825 = vmatprep.mubr.bf16.mxu0 %v2618_v25  ;;  %3058 = vmatpush1.bf16.msra.mxu0 %v4315_v18  ;;  %v3123_v18 = vrot.slane %v3118_v16, %v3122_v63 }
 0x38c   : > { %1689 = vmatprep.subr.bf16.mxu1 %v4320_v21  ;;  %3059 = vmatprep.subr.bf16.mxu0 %v4323_v12  ;;  %v3146_v12 = vld [vmem:[%s5611_s5] sm:$0x3]  ;;  %v3127_v22 = vrot.slane %v3118_v16, %v3126_v17 }
 0x38e   : > { %1690 = vmatpush1.bf16.msra.mxu1 %v4318_v14  ;;  %v3166_v14 = vld [vmem:[%s5612_s6] sm:$0x3] }
 0x38f   : > { %3060 = vmatpush1.bf16.msra.mxu0 %v4321_v26  ;;  %1691 = vmatprep.subr.bf16.mxu1 %v4326_v3 }
 0x390   : > { %3061 = vmatprep.subr.bf16.mxu0 %v4329_v15 }
 0x392   : > { %2826 = vmatmul.mubr.bf16.gmra.mrb[4].mxu0 %v2617_v32  ;;  %1692 = vmatpush1.bf16.msra.mxu1 %v4324_v27  ;;  %v3151_v27 = vrot.slane %v3146_v12, %v3122_v63 }
 0x393   : > { %3062 = vmatpush1.bf16.msra.mxu0 %v4327_v29  ;;  %3089 = vmatprep.mubr.bf16.mxu0 %v2890_v33  ;;  %v3171_v33 = vrot.slane %v3166_v14, %v3122_v63 }
 0x394   : > { %1693 = vmatprep.subr.bf16.mxu1 %v4332_v20  ;;  %3063 = vmatprep.subr.bf16.mxu0 %v4335_v30  ;;  %v3155_v30 = vrot.slane %v3146_v12, %v3126_v17 }
 0x396   : > { %1694 = vmatpush1.bf16.msra.mxu1 %v4330_v34 }
 0x397   : > { %3064 = vmatpush1.bf16.msra.mxu0 %v4333_v36 }
 0x398   : > { %3065 = vmatprep.subr.bf16.mxu0 %v4338_v24  ;;  %v3175_v24 = vrot.slane %v3166_v14, %v3126_v17 }
 0x399   : > { %1696 = vmatmul.mubr.bf16.vlgmr.msra.gmra.mrb[12].mxu1 %v4735_v37  ;;  %v4347_v37 = vld [vmem:[%s5609_s3 + $0x874] ss:$8 sps:$4 sm:$0xff]  }
 0x39a   : > { %1705 = vmatprep.mubr.bf16.mxu1 %v4767_v61  ;;  %v4345_v61 = vld [vmem:[%s5609_s3 + $0x870] ss:$8 sps:$4 sm:$0xff]  }
 0x39b   : > { %3066 = vmatpush1.bf16.msra.mxu0 %v4336_v38 }
 0x39c   : > { %3067 = vmatprep.subr.bf16.mxu0 %v4341_v39 }
 0x39f   : > { %3068 = vmatpush1.bf16.msra.mxu0 %v4339_v40 }
 0x3a0   : > { %3069 = vmatprep.subr.bf16.mxu0 %v4344_v41 }
 0x3a1   : > { %1706 = vmatmul.mubr.bf16.gmra.mrb[16].mxu1 %v4756_v54  ;;  %v4353_v54 = vld [vmem:[%s5609_s3 + $0x894] ss:$8 sps:$4 sm:$0xff]  }
 0x3a3   : > { %3070 = vmatpush1.bf16.msra.mxu0 %v4342_v42 }
 0x3a4   : > { %3071 = vmatprep.subr.bf16.mxu0 %v4347_v37 }
 0x3a7   : > { %3072 = vmatpush1.bf16.msra.mxu0 %v4345_v61 }
 0x3a8   : > { %3073 = vmatprep.subr.bf16.mxu0 %v4350_v43 }
 0x3ab   : > { %3074 = vmatpush1.bf16.msra.mxu0 %v4348_v19 }
 0x3ac   : > { %3075 = vmatprep.subr.bf16.mxu0 %v4353_v54 }
 0x3af   : > { %3076 = vmatpush1.bf16.msra.mxu0 %v4351_v44 }
 0x3b0   : > { %3077 = vmatprep.subr.bf16.mxu0 %v4356_v45 }
 0x3b3   : > { %3078 = vmatpush1.bf16.msra.mxu0 %v4354_v47 }
 0x3b4   : > { %3079 = vmatprep.subr.bf16.mxu0 %v4359_v48 }
 0x3b7   : > { %3080 = vmatpush1.bf16.msra.mxu0 %v4357_v49 }
 0x3b8   : > { %3081 = vmatprep.subr.bf16.mxu0 %v4362_v50 }
 0x3bb   : > { %3082 = vmatpush1.bf16.msra.mxu0 %v4360_v53 }
 0x3bc   : > { %3083 = vmatprep.subr.bf16.mxu0 %v4365_v55 }
 0x3bf   : > { %3084 = vmatpush1.bf16.msra.mxu0 %v4363_v56 }
 0x3c0   : > { %3085 = vmatprep.subr.bf16.mxu0 %v4368_v35 }
 0x3c3   : > { %3086 = vmatpush1.bf16.msra.mxu0 %v4366_v46 }
 0x3c4   : > { %3087 = vmatprep.subr.bf16.mxu0 %v4371_v57 }
 0x3c7   : > { %3088 = vmatpush1.bf16.msra.mxu0 %v4369_v62 }
 0x3ca   : > { %3090 = vmatmul.mubr.bf16.vlgmr.msra.gmra.mrb[0].mxu0 %v2889_v4 }
 0x3cb   : > { %3099 = vmatprep.mubr.bf16.mxu0 %v2892_v5 }
 0x3d2   : > { %3100 = vmatmul.mubr.bf16.gmra.mrb[4].mxu0 %v2891_v60 }
 0x46c   : > { %v1697_v59 = vpop.f32.mrb[12].mxu1 }
 0x46d   : > { %v1699_v2 = vpop.f32.mrb[13].mxu1 }
 0x46e   : > { %v1701_v8 = vpop.f32.mrb[14].mxu1 }
 0x46f   : > { %v1703_v10 = vpop.f32.mrb[15].mxu1 }
 0x474   : > { %v1707_v11 = vpop.f32.mrb[16].mxu1 }
 0x475   : > { %v1709_v7 = vpop.f32.mrb[17].mxu1 }
 0x476   : > { %v1711_v9 = vpop.f32.mrb[18].mxu1 }
 0x477   : > { %v1713_v13 = vpop.f32.mrb[19].mxu1 }
 0x49d   : > { %v3091_v21 = vpop.f32.mrb[0].mxu0 }
 0x49e   : > { %v3836_v23 = vadd.f32 %v3091_v21, %v1697_v59  ;;  %v3093_v25 = vpop.f32.mrb[1].mxu0 }
 0x49f   : > { %v3837_v26 = vadd.f32 %v3093_v25, %v1699_v2  ;;  %v3095_v3 = vpop.f32.mrb[2].mxu0 }
 0x4a0   : > { %v3130_v15 = vadd.f32 %v3836_v23, %v3123_v18  ;;  %v3838_v28 = vadd.f32 %v3095_v3, %v1701_v8  ;;  %v3097_v29 = vpop.f32.mrb[3].mxu0 }
 0x4a1   : > { %v3131_v20 = vadd.f32 %v3837_v26, %v3127_v22  ;;  %v3839_v31 = vadd.f32 %v3097_v29, %v1703_v10 }
 0x4a2   : > { %v3138_v32 = vmax.f32 %v3130_v15, 0.0  ;;  %v3132_v34 = vadd.f32 %v3838_v28, %v3123_v18 }
 0x4a3   : > { %v3139_v36 = vmax.f32 %v3131_v20, 0.0  ;;  %v3133_v38 = vadd.f32 %v3839_v31, %v3127_v22 }
 0x4a4   : > { %v3158_v39 = vmul.f32 %v3151_v27, %v3138_v32  ;;  %v3140_v40 = vmax.f32 %v3132_v34, 0.0 }
 0x4a5   : > { %v3159_v41 = vmul.f32 %v3155_v30, %v3139_v36  ;;  %v3141_v42 = vmax.f32 %v3133_v38, 0.0  ;;  %v3101_v37 = vpop.f32.mrb[4].mxu0 }
 0x4a6   : > { %v3178_v61 = vadd.f32 %v3171_v33, %v3158_v39  ;;  %v3160_v43 = vmul.f32 %v3151_v27, %v3140_v40  ;;  %v3840_v19 = vadd.f32 %v3101_v37, %v1707_v11  ;;  %v3103_v54 = vpop.f32.mrb[5].mxu0 }
 0x4a7   : > { %v3179_v44 = vadd.f32 %v3175_v24, %v3159_v41  ;;  %v3161_v45 = vmul.f32 %v3155_v30, %v3141_v42  ;;  %v3841_v47 = vadd.f32 %v3103_v54, %v1709_v7  ;;  %v3105_v48 = vpop.f32.mrb[6].mxu0 }
 0x4a8   : > { %3186 = vst [vmem:[%s5593_s22] sm:$0xff] %v3178_v61  ;;  %v3180_v49 = vadd.f32 %v3171_v33, %v3160_v43  ;;  %v3134_v50 = vadd.f32 %v3840_v19, %v3123_v18  ;;  %v3842_v53 = vadd.f32 %v3105_v48, %v1711_v9  ;;  %v3107_v55 = vpop.f32.mrb[7].mxu0 }
 0x4a9   : > { %3187 = vst [vmem:[%s5593_s22 + $0x8] sm:$0xff] %v3179_v44  ;;  %v3181_v56 = vadd.f32 %v3175_v24, %v3161_v45  ;;  %v3135_v35 = vadd.f32 %v3841_v47, %v3127_v22  ;;  %v3843_v46 = vadd.f32 %v3107_v55, %v1713_v13 }
 0x4aa   : > { %3188 = vst [vmem:[%s5593_s22 + $0x10] sm:$0xff] %v3180_v49  ;;  %v3142_v57 = vmax.f32 %v3134_v50, 0.0  ;;  %v3136_v58 = vadd.f32 %v3842_v53, %v3123_v18 }
 0x4ab   : > { %3189 = vst [vmem:[%s5593_s22 + $0x18] sm:$0xff] %v3181_v56  ;;  %v3143_v62 = vmax.f32 %v3135_v35, 0.0  ;;  %v3137_v0 = vadd.f32 %v3843_v46, %v3127_v22 }
 0x4ac   : > { %v3162_v1 = vmul.f32 %v3151_v27, %v3142_v57  ;;  %v3144_v4 = vmax.f32 %v3136_v58, 0.0 }
 0x4ad   : > { %v3163_v5 = vmul.f32 %v3155_v30, %v3143_v62  ;;  %v3145_v6 = vmax.f32 %v3137_v0, 0.0 }
 0x4ae   : > { %v3182_v60 = vadd.f32 %v3171_v33, %v3162_v1  ;;  %v3164_v59 = vmul.f32 %v3151_v27, %v3144_v4 }
 0x4af   : > { %v3183_v2 = vadd.f32 %v3175_v24, %v3163_v5  ;;  %v3165_v8 = vmul.f32 %v3155_v30, %v3145_v6 }
 0x4b0   : > { %3190 = vst [vmem:[%s5593_s22 + $0x20] sm:$0xff] %v3182_v60  ;;  %v3184_v10 = vadd.f32 %v3171_v33, %v3164_v59 }
 0x4b1   : > { %3191 = vst [vmem:[%s5593_s22 + $0x28] sm:$0xff] %v3183_v2  ;;  %v3185_v11 = vadd.f32 %v3175_v24, %v3165_v8 }
 0x4b2   : > { %3192 = vst [vmem:[%s5593_s22 + $0x30] sm:$0xff] %v3184_v10 }
 0x4b3   : > { %3193 = vst [vmem:[%s5593_s22 + $0x38] sm:$0xff] %v3185_v11 }
 0x4b4 PF: > { %s17_s24 = sadd.s32 1, %s4378_s24  }
 0x4b5   : > { %p14_p4 = scmp.ge.s32.totalorder %s17_s24, 4  }
 0x4b7   :  { %16 = sbr.rel (!%p14_p4) target bundleno = 1 (0x1), region = 86 }

</bundles_post_ra>
